<compile_context>
chip_gen: v5e
topology: v5e:2x2
jax: 0.10.0
libtpu: 0.0.40
codegen_flags: <defaults>
</compile_context>

<pallas_src>
import functools

import jax
import jax.numpy as jnp
from jax.experimental import pallas as pl
from jax.experimental.pallas import tpu as pltpu

NUM_CLASSES = 16      # small synthetic head (B7 default is 1000)
FEAT_DIM = 2560       # efficientnet_b7 final feature width (fixed by the module)
STEM_CH = 32


def _round_up(x, m):
    return ((x + m - 1) // m) * m


# ----------------------------------------------------------------------------
# Fused kernel:
#   stem conv (matmul) -> SiLU -> 1x1 head conv -> SiLU (bf16 sigmoid)
#   -> masked spatial-sum via MXU (global average pool accumulation)
#   -> at last hw step: merged classifier+conf matmul on the pooled row
# ----------------------------------------------------------------------------
def _netconf_kernel(p_ref, sw_ref, sb_ref, hw_ref, hb_ref, wc_ref, bc_ref,
                    out_ref, acc_ref, *, inv_hw, true_hw, thw):
    h = pl.program_id(1)

    @pl.when(h == 0)
    def _init():
        acc_ref[...] = jnp.zeros_like(acc_ref)

    patches = p_ref[0]                                          # (thw, 9*Cin) bf16
    stem = jnp.dot(patches, sw_ref[...],
                   preferred_element_type=jnp.float32) + sb_ref[...]
    stem = stem * jax.nn.sigmoid(stem)                          # tiny (thw, 32) f32 SiLU
    stem = stem.astype(hw_ref.dtype)                            # bf16 into the MXU

    feats = jnp.dot(stem, hw_ref[...],
                    preferred_element_type=jnp.float32) + hb_ref[...]
    # Big SiLU: sigmoid on the EUP in bf16 (2x transcendental throughput on
    # v6e/v7x), f32 multiply keeps the pooled accumulation accurate.
    sig = jax.nn.sigmoid(feats.astype(jnp.bfloat16))
    feats = feats * sig.astype(jnp.float32)                     # (thw, FEAT) f32, VMEM-only

    # Global-average-pool accumulation routed through the (idle) MXU instead of
    # the XLU; the validity mask also zeroes padded-HW rows exactly.
    row = h * thw + jax.lax.broadcasted_iota(jnp.int32, (1, thw), 1)
    mask = (row < true_hw).astype(jnp.float32)                  # (1, thw)
    acc_ref[...] += jnp.dot(mask, feats, preferred_element_type=jnp.float32)

    @pl.when(h == pl.num_programs(1) - 1)
    def _finalize():
        pooled = (acc_ref[...] * inv_hw).astype(wc_ref.dtype)   # (1, FEAT) bf16
        out_ref[0] = (jnp.dot(pooled, wc_ref[...],
                              preferred_element_type=jnp.float32)
                      + bc_ref[...]).astype(out_ref.dtype)      # (1, 128) lane-dense


def fused_forward(patches, stem_w, stem_b, head_w, head_b, w_cat, b_cat,
                  *, thw_target=1024):
    """patches: (B, HW, 9*Cin) bf16 -> merged head output (B, npad) f32."""
    B, HW, K1 = patches.shape
    C1 = stem_w.shape[1]
    FEAT = head_w.shape[1]
    NP = w_cat.shape[1]

    # Tile the spatial axis: multiple-of-8 tile <= target, pad HW up to a
    # multiple of the tile (padded rows are masked out of the pooled sum).
    thw = min(thw_target, _round_up(HW, 8))
    thw = max(8, (thw // 8) * 8)
    hw_pad = _round_up(HW, thw)
    if hw_pad != HW:
        patches = jnp.pad(patches, ((0, 0), (0, hw_pad - HW), (0, 0)))
    ht = hw_pad // thw
    inv_hw = 1.0 / float(HW)

    out = pl.pallas_call(
        functools.partial(_netconf_kernel, inv_hw=inv_hw, true_hw=HW, thw=thw),
        out_shape=jax.ShapeDtypeStruct((B, 1, NP), jnp.float32),
        grid=(B, ht),
        in_specs=[
            pl.BlockSpec((1, thw, K1), lambda b, h: (b, h, 0)),
            pl.BlockSpec((K1, C1), lambda b, h: (0, 0)),
            pl.BlockSpec((1, C1), lambda b, h: (0, 0)),
            pl.BlockSpec((C1, FEAT), lambda b, h: (0, 0)),
            pl.BlockSpec((1, FEAT), lambda b, h: (0, 0)),
            pl.BlockSpec((FEAT, NP), lambda b, h: (0, 0)),
            pl.BlockSpec((1, NP), lambda b, h: (0, 0)),
        ],
        out_specs=pl.BlockSpec((1, 1, NP), lambda b, h: (b, 0, 0)),
        scratch_shapes=[pltpu.VMEM((1, FEAT), jnp.float32)],
        compiler_params=pltpu.CompilerParams(
            dimension_semantics=("parallel", "arbitrary"),
            vmem_limit_bytes=32 * 1024 * 1024),
    )(patches, stem_w, stem_b, head_w, head_b, w_cat, b_cat)
    return out.reshape(B, NP)


# ----------------------------------------------------------------------------
# Glue: im2col for the 3x3 stride-2 pad-1 stem conv (pure layout plumbing).
# TODO(synk): replace with in-kernel 9-tap accumulation / DMA gather for real
# 600x600 B7 inputs (avoids the 2.25x-expanded patches HBM round trip).
# ----------------------------------------------------------------------------
def im2col_3x3_s2_p1(x_nhwc):
    B, H, W, C = x_nhwc.shape
    xp = jnp.pad(x_nhwc, ((0, 0), (1, 1), (1, 1), (0, 0)))
    Ho, Wo = H // 2, W // 2
    cols = []
    for dh in range(3):
        for dw in range(3):
            cols.append(xp[:, dh:dh + 2 * Ho:2, dw:dw + 2 * Wo:2, :])
    patches = jnp.concatenate(cols, axis=-1)                    # (B, Ho, Wo, 9*C)
    return patches.reshape(B, Ho * Wo, 9 * C), (B, Ho, Wo)


# ----------------------------------------------------------------------------
# Parameters (deterministic synthetic init; BN folded into weight/bias)
# ----------------------------------------------------------------------------
def init_params(key, num_classes=NUM_CLASSES):
    ks = jax.random.split(key, 8)
    return {
        # feature-extractor path: bf16 weights (MXU-native), f32 biases
        "stem_w": (jax.random.normal(ks[0], (27, STEM_CH), jnp.float32)
                   * 0.1).astype(jnp.bfloat16),
        "stem_b": jax.random.normal(ks[1], (1, STEM_CH), jnp.float32) * 0.01,
        "head_w": (jax.random.normal(ks[2], (STEM_CH, FEAT_DIM), jnp.float32)
                   * 0.1).astype(jnp.bfloat16),
        "head_b": jax.random.normal(ks[3], (1, FEAT_DIM), jnp.float32) * 0.01,
        # classifier + conf heads
        "cls_w": jax.random.normal(ks[4], (FEAT_DIM, num_classes), jnp.float32) * 0.02,
        "cls_b": jax.random.normal(ks[5], (1, num_classes), jnp.float32) * 0.01,
        "conf_w": jax.random.normal(ks[6], (FEAT_DIM, 1), jnp.float32) * 0.02,
        "conf_b": jax.random.normal(ks[7], (1, 1), jnp.float32) * 0.01,
    }


def netconf_forward(params, x_nchw):
    # ---- self.net.features(x): reduced EfficientNet-style feature extractor
    x = jnp.transpose(x_nchw, (0, 2, 3, 1)).astype(jnp.bfloat16)    # NCHW -> NHWC
    patches, (B, Ho, Wo) = im2col_3x3_s2_p1(x)                      # (B, HW, 27)

    # ---- merged classifier + conf weights: one lane-dense (128-wide) head,
    #      bf16 into the MXU (f32 accumulate + f32 bias inside the kernel)
    nc = params["cls_w"].shape[1]
    ncat = nc + 1
    npad = _round_up(ncat, 128)
    w_cat = jnp.concatenate([params["cls_w"], params["conf_w"]], axis=1)
    w_cat = jnp.pad(w_cat, ((0, 0), (0, npad - ncat))).astype(jnp.bfloat16)
    b_cat = jnp.concatenate([params["cls_b"], params["conf_b"]], axis=1)
    b_cat = jnp.pad(b_cat, ((0, 0), (0, npad - ncat)))

    # ---- fully fused: features + global_pool + flatten + classifier/conf.
    #      Dropout is identity (eval mode), matching the PyTorch eval path.
    out = fused_forward(patches, params["stem_w"], params["stem_b"],
                        params["head_w"], params["head_b"], w_cat, b_cat)

    clazz = out[:, :nc]
    conf = out[:, nc]
    return clazz, conf                                              # (B, nc), (B,)


if __name__ == "__main__":
    key = jax.random.PRNGKey(0)
    pkey, xkey = jax.random.split(key)
    params = init_params(pkey)
    x = jax.random.normal(xkey, (2, 3, 16, 16), jnp.float32)        # NCHW, like PyTorch
    clazz, conf = jax.jit(netconf_forward)(params, x)
    jax.block_until_ready((clazz, conf))
    assert clazz.shape == (2, NUM_CLASSES) and conf.shape == (2,)
    print("KERNEL_OK")
</pallas_src>

<mosaic_0001>
module attributes {stable_mosaic.version = 11 : i64} {
  func.func @_netconf_kernel(%arg0: i32, %arg1: i32, %arg2: memref<1x64x27xbf16, #tpu.memory_space<vmem>>, %arg3: memref<27x32xbf16, #tpu.memory_space<vmem>>, %arg4: memref<1x32xf32, #tpu.memory_space<vmem>>, %arg5: memref<32x2560xbf16, #tpu.memory_space<vmem>>, %arg6: memref<1x2560xf32, #tpu.memory_space<vmem>>, %arg7: memref<2560x128xbf16, #tpu.memory_space<vmem>>, %arg8: memref<1x128xf32, #tpu.memory_space<vmem>>, %arg9: memref<1x1x128xf32, #tpu.memory_space<vmem>>, %arg10: memref<1x2560xf32, #tpu.memory_space<vmem>>) attributes {dimension_semantics = [#tpu.dimension_semantics<parallel>, #tpu.dimension_semantics<arbitrary>], iteration_bounds = array<i64: 2, 1>, scalar_prefetch = 0 : i64, scratch_operands = 1 : i64, tpu.core_type = #tpu.core_type<tc>, window_params = [{transform_indices = @transform_0, window_bounds = array<i64: 1, 64, 27>}, {pipeline_mode = #tpu.pipeline_mode<synchronous>, transform_indices = @transform_1, window_bounds = array<i64: 27, 32>}, {pipeline_mode = #tpu.pipeline_mode<synchronous>, transform_indices = @transform_2, window_bounds = array<i64: 1, 32>}, {pipeline_mode = #tpu.pipeline_mode<synchronous>, transform_indices = @transform_3, window_bounds = array<i64: 32, 2560>}, {pipeline_mode = #tpu.pipeline_mode<synchronous>, transform_indices = @transform_4, window_bounds = array<i64: 1, 2560>}, {pipeline_mode = #tpu.pipeline_mode<synchronous>, transform_indices = @transform_5, window_bounds = array<i64: 2560, 128>}, {pipeline_mode = #tpu.pipeline_mode<synchronous>, transform_indices = @transform_6, window_bounds = array<i64: 1, 128>}, {transform_indices = @transform_7, window_bounds = array<i64: 1, 1, 128>}]} {
    %c0_i32 = arith.constant 0 : i32
    %0 = arith.cmpi eq, %arg1, %c0_i32 : i32
    %1 = arith.extui %0 : i1 to i32
    %c0_i32_0 = arith.constant 0 : i32
    %2 = arith.cmpi ne, %1, %c0_i32_0 : i32
    scf.if %2 {
      %cst_22 = arith.constant 0.000000e+00 : f32
      %45 = vector.broadcast %cst_22 : f32 to vector<1x2560xf32>
      %c0_23 = arith.constant 0 : index
      %c0_24 = arith.constant 0 : index
      %46 = vector.load %arg10[%c0_23, %c0_24] : memref<1x2560xf32, #tpu.memory_space<vmem>>, vector<1x2560xf32>
      tpu.vector_store %arg10[%c0_23, %c0_24], %45 {strides = array<i32>} : memref<1x2560xf32, #tpu.memory_space<vmem>>, vector<1x2560xf32>,
    } else {
    }
    %c0 = arith.constant 0 : index
    %c0_1 = arith.constant 0 : index
    %c0_2 = arith.constant 0 : index
    %3 = vector.load %arg2[%c0, %c0_1, %c0_2] : memref<1x64x27xbf16, #tpu.memory_space<vmem>>, vector<1x64x27xbf16>
    %4 = vector.shape_cast %3 : vector<1x64x27xbf16> to vector<64x27xbf16>
    %c0_3 = arith.constant 0 : index
    %c0_4 = arith.constant 0 : index
    %5 = vector.load %arg3[%c0_3, %c0_4] : memref<27x32xbf16, #tpu.memory_space<vmem>>, vector<27x32xbf16>
    %cst = arith.constant dense<0.000000e+00> : vector<64x32xf32>
    %6 = tpu.matmul %4, %5, %cst {dimension_numbers = #tpu.dot_dimension_numbers<[1], [0], [0], [1], [0, 0, 1, 1], [], []>} : vector<64x27xbf16>, vector<27x32xbf16>, vector<64x32xf32> -> vector<64x32xf32>
    %c0_5 = arith.constant 0 : index
    %c0_6 = arith.constant 0 : index
    %7 = vector.load %arg4[%c0_5, %c0_6] : memref<1x32xf32, #tpu.memory_space<vmem>>, vector<1x32xf32>
    %8 = vector.broadcast %7 : vector<1x32xf32> to vector<64x32xf32>
    %9 = arith.addf %6, %8 : vector<64x32xf32>
    %10 = arith.negf %9 : vector<64x32xf32>
    %11 = math.exp %10 : vector<64x32xf32>
    %cst_7 = arith.constant 1.000000e+00 : f32
    %12 = vector.broadcast %cst_7 : f32 to vector<64x32xf32>
    %13 = arith.addf %12, %11 : vector<64x32xf32>
    %14 = arith.divf %12, %13 : vector<64x32xf32>
    %15 = arith.mulf %9, %14 : vector<64x32xf32>
    %16 = arith.truncf %15 : vector<64x32xf32> to vector<64x32xbf16>
    %c0_8 = arith.constant 0 : index
    %c0_9 = arith.constant 0 : index
    %17 = vector.load %arg5[%c0_8, %c0_9] : memref<32x2560xbf16, #tpu.memory_space<vmem>>, vector<32x2560xbf16>
    %cst_10 = arith.constant dense<0.000000e+00> : vector<64x2560xf32>
    %18 = tpu.matmul %16, %17, %cst_10 {dimension_numbers = #tpu.dot_dimension_numbers<[1], [0], [0], [1], [0, 0, 1, 1], [], []>} : vector<64x32xbf16>, vector<32x2560xbf16>, vector<64x2560xf32> -> vector<64x2560xf32>
    %c0_11 = arith.constant 0 : index
    %c0_12 = arith.constant 0 : index
    %19 = vector.load %arg6[%c0_11, %c0_12] : memref<1x2560xf32, #tpu.memory_space<vmem>>, vector<1x2560xf32>
    %20 = vector.broadcast %19 : vector<1x2560xf32> to vector<64x2560xf32>
    %21 = arith.addf %18, %20 : vector<64x2560xf32>
    %22 = arith.truncf %21 : vector<64x2560xf32> to vector<64x2560xbf16>
    %23 = arith.negf %22 : vector<64x2560xbf16>
    %24 = math.exp %23 : vector<64x2560xbf16>
    %cst_13 = arith.constant 1.000000e+00 : bf16
    %25 = vector.broadcast %cst_13 : bf16 to vector<64x2560xbf16>
    %26 = arith.addf %25, %24 : vector<64x2560xbf16>
    %27 = arith.divf %25, %26 : vector<64x2560xbf16>
    %28 = arith.extf %27 : vector<64x2560xbf16> to vector<64x2560xf32>
    %29 = arith.mulf %21, %28 : vector<64x2560xf32>
    %c64_i32 = arith.constant 64 : i32
    %30 = arith.muli %arg1, %c64_i32 : i32
    %31 = tpu.iota {dimensions = array<i32: 1>} : vector<1x64xi32>
    %32 = vector.broadcast %30 : i32 to vector<1x64xi32>
    %33 = arith.addi %32, %31 : vector<1x64xi32>
    %c64_i32_14 = arith.constant 64 : i32
    %34 = vector.broadcast %c64_i32_14 : i32 to vector<1x64xi32>
    %35 = arith.cmpi slt, %33, %34 : vector<1x64xi32>
    %36 = arith.extui %35 : vector<1x64xi1> to vector<1x64xi32>
    %37 = arith.sitofp %36 : vector<1x64xi32> to vector<1x64xf32>
    %c0_15 = arith.constant 0 : index
    %c0_16 = arith.constant 0 : index
    %38 = vector.load %arg10[%c0_15, %c0_16] : memref<1x2560xf32, #tpu.memory_space<vmem>>, vector<1x2560xf32>
    %cst_17 = arith.constant dense<0.000000e+00> : vector<1x2560xf32>
    %39 = tpu.matmul %37, %29, %cst_17 {dimension_numbers = #tpu.dot_dimension_numbers<[1], [0], [0], [1], [0, 0, 1, 1], [], []>} : vector<1x64xf32>, vector<64x2560xf32>, vector<1x2560xf32> -> vector<1x2560xf32>
    %40 = arith.addf %38, %39 : vector<1x2560xf32>
    %c0_18 = arith.constant 0 : index
    %c0_19 = arith.constant 0 : index
    %41 = vector.load %arg10[%c0_18, %c0_19] : memref<1x2560xf32, #tpu.memory_space<vmem>>, vector<1x2560xf32>
    tpu.vector_store %arg10[%c0_18, %c0_19], %40 {strides = array<i32>} : memref<1x2560xf32, #tpu.memory_space<vmem>>, vector<1x2560xf32>,
    %c0_i32_20 = arith.constant 0 : i32
    %42 = arith.cmpi eq, %arg1, %c0_i32_20 : i32
    %43 = arith.extui %42 : i1 to i32
    %c0_i32_21 = arith.constant 0 : i32
    %44 = arith.cmpi ne, %43, %c0_i32_21 : i32
    scf.if %44 {
      %c0_22 = arith.constant 0 : index
      %c0_23 = arith.constant 0 : index
      %45 = vector.load %arg10[%c0_22, %c0_23] : memref<1x2560xf32, #tpu.memory_space<vmem>>, vector<1x2560xf32>
      %cst_24 = arith.constant 1.562500e-02 : f32
      %46 = vector.broadcast %cst_24 : f32 to vector<1x2560xf32>
      %47 = arith.mulf %45, %46 : vector<1x2560xf32>
      %48 = arith.truncf %47 : vector<1x2560xf32> to vector<1x2560xbf16>
      %c0_25 = arith.constant 0 : index
      %c0_26 = arith.constant 0 : index
      %49 = vector.load %arg7[%c0_25, %c0_26] : memref<2560x128xbf16, #tpu.memory_space<vmem>>, vector<2560x128xbf16>
      %cst_27 = arith.constant dense<0.000000e+00> : vector<1x128xf32>
      %50 = tpu.matmul %48, %49, %cst_27 {dimension_numbers = #tpu.dot_dimension_numbers<[1], [0], [0], [1], [0, 0, 1, 1], [], []>} : vector<1x2560xbf16>, vector<2560x128xbf16>, vector<1x128xf32> -> vector<1x128xf32>
      %c0_28 = arith.constant 0 : index
      %c0_29 = arith.constant 0 : index
      %51 = vector.load %arg8[%c0_28, %c0_29] : memref<1x128xf32, #tpu.memory_space<vmem>>, vector<1x128xf32>
      %52 = arith.addf %50, %51 : vector<1x128xf32>
      %c0_30 = arith.constant 0 : index
      %c0_31 = arith.constant 0 : index
      %c0_32 = arith.constant 0 : index
      %53 = vector.load %arg9[%c0_30, %c0_31, %c0_32] : memref<1x1x128xf32, #tpu.memory_space<vmem>>, vector<1x1x128xf32>
      %54 = vector.shape_cast %53 : vector<1x1x128xf32> to vector<1x128xf32>
      %55 = vector.shape_cast %52 : vector<1x128xf32> to vector<1x1x128xf32>
      tpu.vector_store %arg9[%c0_30, %c0_31, %c0_32], %55 {strides = array<i32>} : memref<1x1x128xf32, #tpu.memory_space<vmem>>, vector<1x1x128xf32>,
    } else {
    }
    return
  }
  func.func @transform_0(%arg0: i32, %arg1: i32) -> (i32, i32, i32) {
    %c0_i32 = arith.constant 0 : i32
    %c0_i32_0 = arith.constant 0 : i32
    return %arg0, %arg1, %c0_i32 : i32, i32, i32
  }
  func.func @transform_1(%arg0: i32, %arg1: i32) -> (i32, i32) {
    %c0_i32 = arith.constant 0 : i32
    %c0_i32_0 = arith.constant 0 : i32
    %c0_i32_1 = arith.constant 0 : i32
    return %c0_i32, %c0_i32_0 : i32, i32
  }
  func.func @transform_2(%arg0: i32, %arg1: i32) -> (i32, i32) {
    %c0_i32 = arith.constant 0 : i32
    %c0_i32_0 = arith.constant 0 : i32
    %c0_i32_1 = arith.constant 0 : i32
    return %c0_i32, %c0_i32_0 : i32, i32
  }
  func.func @transform_3(%arg0: i32, %arg1: i32) -> (i32, i32) {
    %c0_i32 = arith.constant 0 : i32
    %c0_i32_0 = arith.constant 0 : i32
    %c0_i32_1 = arith.constant 0 : i32
    return %c0_i32, %c0_i32_0 : i32, i32
  }
  func.func @transform_4(%arg0: i32, %arg1: i32) -> (i32, i32) {
    %c0_i32 = arith.constant 0 : i32
    %c0_i32_0 = arith.constant 0 : i32
    %c0_i32_1 = arith.constant 0 : i32
    return %c0_i32, %c0_i32_0 : i32, i32
  }
  func.func @transform_5(%arg0: i32, %arg1: i32) -> (i32, i32) {
    %c0_i32 = arith.constant 0 : i32
    %c0_i32_0 = arith.constant 0 : i32
    %c0_i32_1 = arith.constant 0 : i32
    return %c0_i32, %c0_i32_0 : i32, i32
  }
  func.func @transform_6(%arg0: i32, %arg1: i32) -> (i32, i32) {
    %c0_i32 = arith.constant 0 : i32
    %c0_i32_0 = arith.constant 0 : i32
    %c0_i32_1 = arith.constant 0 : i32
    return %c0_i32, %c0_i32_0 : i32, i32
  }
  func.func @transform_7(%arg0: i32, %arg1: i32) -> (i32, i32, i32) {
    %c0_i32 = arith.constant 0 : i32
    %c0_i32_0 = arith.constant 0 : i32
    %c0_i32_1 = arith.constant 0 : i32
    return %arg0, %c0_i32, %c0_i32_0 : i32, i32, i32
  }
}

</mosaic_0001>

<bundles_post_ra>
// kernel: netconf_forward.1
= control target key start
LH: loop header
LB: loop body
LE: loop exit
PB: predicated region body
PF: predicated region fallthrough
CT: control target
= control target key end

     0   :  { %s7543_s24 = smov 0   ;;  %s7545_s25 = smov 0   ;;  %s10535_s0 = inlined_call_operand.vmem [shape: bf16[2,64,27], index: 0, kind: input, shape index: {}]   ;;  %s10536_s1 = inlined_call_operand.vmem [shape: bf16[27,32], index: 1, kind: input, shape index: {}]   ;;  %s10537_s2 = inlined_call_operand.vmem [shape: f32[1,32], index: 2, kind: input, shape index: {}]   ;;  %s10538_s3 = inlined_call_operand.vmem [shape: bf16[32,2560], index: 3, kind: input, shape index: {}]   ;;  %s10539_s4 = inlined_call_operand.vmem [shape: f32[1,2560], index: 4, kind: input, shape index: {}]   ;;  %s10540_s5 = inlined_call_operand.vmem [shape: bf16[2560,128], index: 5, kind: input, shape index: {}]   ;;  %s10541_s6 = inlined_call_operand.vmem [shape: f32[1,128], index: 6, kind: input, shape index: {}]   ;;  %s10542_s7 = inlined_call_operand.vmem [shape: f32[2,1,128], index: 7, kind: output, shape index: {}]  }
   0x1   :  { %s7547_s26 = smov 0  }
   0x2 LB: > { %s29_s27 = sadd.s32 1, %s7494_s25  ;;  %p5625_p0 = scmp.ge.s32.totalorder %s7498_s26, 1  ;;  %s7498_s26 = sphi %s7547_s26, %s17_s26   ;;  %s7494_s25 = sphi %s7545_s25, %s10900_s25   ;;  %s7490_s24 = sphi %s7543_s24, %s10899_s24  }
   0x3   : > { %p31_p1 = scmp.ge.s32.totalorder %s29_s27, 2  ;;  %p256_p2 = scmp.lt.s32.totalorder %s7498_s26, 3 }
   0x5   : > { %s10902_s27 = smov (%p31_p1, %s29_s27), 0  ;;  %p257_p3 = pnand %p5625_p0, %p256_p2 }
   0x7   : > { %260 = sbr.rel (%p257_p3) target bundleno = 1220 (0x4c4), region = 48 }
   0xc   : > { %v5650_v0 = vld [vmem:[%s10536_s1 + $0x8] sm:$0xf]  ;;  %v6573_v1 = vld [vmem:[%s10536_s1 + $0x8] sm:$0x30]  ;;  %vm376_vm0 = vcmask 1044480   ;;  %vm377_vm1 = vcmask 1045504  }
   0xd   : > { %v5651_v2 = vor.u32 %v6573_v1, %v5650_v0  ;;  %p291_p4 = scmp.lt.s32.totalorder %s7490_s24, 1  ;;  %v7500_v3 = vmov 65535   ;;  %v6572_v7 = vld [vmem:[%s10536_s1] sm:$0xff]  ;;  %vm363_vm2 = vcmask 220160   ;;  %v6595_v10 = vld [vmem:[%s10538_s3 + $0xac] sm:$0xf] }
   0xe   : > { %v378_v4 = vsel %vm376_vm0, 4294967295, %v7500_v3  ;;  %v5756_v11 = vld [vmem:[%s10538_s3 + $0xf8] sm:$0xf0]  ;;  %v7585_v15 = vld [vmem:[%s10537_s2] ss:$0 sm:$0xff]  ;;  %vm862_vm11 = vcmask 261120  }
   0xf   : > { %v379_v5 = vsel %vm377_vm1, %v378_v4, 0  ;;  %s10904_s24 = smov (!%p291_p4, %s7490_s24), 1  ;;  %v5759_v12 = vor.u32 %v6595_v10, %v5756_v11  ;;  %v5746_v18 = vld [vmem:[%s10538_s3 + $0xa0] sm:$0xf]  ;;  %v6604_v19 = vld [vmem:[%s10538_s3 + $0xec] sm:$0xf0] }
  0x10   : > { %v381_v6 = vand.u32 %v5651_v2, %v379_v5  ;;  %s6567_s9 = sshll.u32 %s10904_s24, 5  ;;  %v6594_v20 = vld [vmem:[%s10538_s3 + $0xa4] sm:$0xf]  ;;  %v5747_v22 = vor.u32 %v6604_v19, %v5746_v18  ;;  %v5748_v23 = vld [vmem:[%s10538_s3 + $0xf0] sm:$0xf0]  ;;  %s302_s17 = scalar_lea.vmem %s10542_s7, %s10904_s24 }
  0x11   : > { %s298_s14 = scalar_lea.vmem %s10535_s0, %s6567_s9  ;;  %v5754_v24 = vld [vmem:[%s10538_s3 + $0xa8] sm:$0xf]  ;;  %v5751_v25 = vor.u32 %v6594_v20, %v5748_v23  ;;  %v6605_v26 = vld [vmem:[%s10538_s3 + $0xf4] sm:$0xf0]  ;;  %v6575_v28 = vld [vmem:[%s10538_s3 + $0xc] sm:$0xf] }
  0x12   : > { %389 = vmatpush.bf16.msra.mxu0 %v381_v6  ;;  %v6568_v8 = vld [vmem:[%s298_s14] sm:$0xff]  ;;  %v6569_v9 = vld [vmem:[%s298_s14 + $0x8] sm:$0xff]  ;;  %v6570_v13 = vld [vmem:[%s298_s14 + $0x10] sm:$0xff]  ;;  %881 = vmatpush.bf16.msra.mxu1 %v5747_v22  ;;  %v5755_v27 = vor.u32 %v6605_v26, %v5754_v24 }
  0x13   : > { %v6571_v14 = vld [vmem:[%s298_s14 + $0x18] sm:$0xff]  ;;  %910 = vmatpush.bf16.msra.mxu2 %v5751_v25  ;;  %v5666_v30 = vld [vmem:[%s10538_s3] sm:$0xf]  ;;  %v6584_v32 = vld [vmem:[%s10538_s3 + $0x4c] sm:$0xf0] }
  0x14   : > { %v5676_v29 = vld [vmem:[%s10538_s3 + $0x58] sm:$0xf0]  ;;  %939 = vmatpush.bf16.msra.mxu3 %v5755_v27  ;;  %v6574_v33 = vld [vmem:[%s10538_s3 + $0x4] sm:$0xf]  ;;  %v5668_v34 = vld [vmem:[%s10538_s3 + $0x50] sm:$0xf0]  ;;  %v5667_v36 = vor.u32 %v6584_v32, %v5666_v30 }
  0x15   : > { %v5679_v31 = vor.u32 %v6575_v28, %v5676_v29  ;;  %v5671_v37 = vor.u32 %v6574_v33, %v5668_v34  ;;  %v5674_v38 = vld [vmem:[%s10538_s3 + $0x8] sm:$0xf]  ;;  %v6585_v39 = vld [vmem:[%s10538_s3 + $0x54] sm:$0xf0] }
  0x16   : > { %390 = vmatpush.bf16.msra.mxu0 %v6572_v7  ;;  %v5675_v41 = vor.u32 %v6585_v39, %v5674_v38  ;;  %882 = vmatpush.bf16.msra.mxu1 %v5667_v36  ;;  %v5770_v36 = vld [vmem:[%s10538_s3 + $0xb8] sm:$0xf] }
  0x17   : > { %911 = vmatpush.bf16.msra.mxu2 %v5671_v37  ;;  %v6607_v37 = vld [vmem:[%s10538_s3 + $0x104] sm:$0xf0] }
  0x18   : > { %940 = vmatpush.bf16.msra.mxu3 %v5675_v41 }
  0x19   : > { %5652 = vmatmul.msk.bf16.vlgmr.msra.gmra.mxu0 %vm363_vm2, %v6568_v8 }
  0x1a   : > { %968 = vmatpush.bf16.msrb.mxu0 %v5759_v12 }
  0x1e   : > { %969 = vmatpush.bf16.msrb.mxu0 %v5679_v31 }
  0x29   : > { %5653 = vmatmul.msk.bf16.gmra.mxu0 %vm363_vm2, %v6569_v9 }
  0x39   : > { %5654 = vmatmul.msk.bf16.gmra.mxu0 %vm363_vm2, %v6570_v13 }
  0x49   : > { %5655 = vmatmul.msk.bf16.gmra.mxu0 %vm363_vm2, %v6571_v14 }
  0x96   : > { %v392_v16 = vpop.f32.mrf.mxu0 }
  0x97   : > { %v7588_v17 = vadd.f32 %v7585_v15, %v392_v16 }
  0x99   : > { %v5656_v21 = vmul.f32 -1.442695, %v7588_v17 }
  0x9b   : > { %6802 = vpow2.f32 %v5656_v21 }
  0x9e   : > { %v394_v35 = vpop.f32.mrf.mxu0 }
  0x9f   : > { %v7634_v40 = vadd.f32 %v7585_v15, %v394_v35 }
  0xa1   : > { %v6803_v42 = vpop.eup %6802  ;;  %v5657_v43 = vmul.f32 -1.442695, %v7634_v40 }
  0xa2   : > { %v436_v44 = vadd.f32 1.0, %v6803_v42  ;;  %v5771_v42 = vor.u32 %v6607_v37, %v5770_v36 }
  0xa3   : > { %6804 = vpow2.f32 %v5657_v43 }
  0xa4   : > { %6806 = vrcp.f32 %v436_v44  ;;  %v455_v62 = vand.u32 2147483648, %v436_v44  ;;  %vm449_vm4 = vweird.f32 %v436_v44  ;;  %v453_v63 = vand.u32 2147483647, %v436_v44  ;;  %1055 = vmatpush.bf16.msrb.mxu3 %v5771_v42 }
  0xa6   : > { %v397_v45 = vpop.f32.mrf.mxu0  ;;  %v456_v8 = vor.u32 1.1754944e-38, %v455_v62  ;;  %vm454_vm7 = vcmp.eq.f32.partialorder %v453_v63, 8.507059e+37 }
  0xa7   : > { %v7638_v46 = vadd.f32 %v7585_v15, %v397_v45 }
  0xa9   : > { %v6805_v47 = vpop.eup %6804  ;;  %v5658_v48 = vmul.f32 -1.442695, %v7638_v46 }
  0xaa   : > { %v6807_v49 = vpop.eup %6806  ;;  %v437_v50 = vadd.f32 1.0, %v6805_v47 }
  0xab   : > { %v445_v51 = vmul.f32 %v6807_v49, %v436_v44  ;;  %6808 = vpow2.f32 %v5658_v48  ;;  %vm450_vm3 = vweird.f32 %v6807_v49 }
  0xac   : > { %6810 = vrcp.f32 %v437_v50  ;;  %vm7648_vm5 = vmor %vm449_vm4, %vm450_vm3  ;;  %v468_v2 = vand.u32 2147483647, %v437_v50  ;;  %v470_v3 = vand.u32 2147483648, %v437_v50  ;;  %vm464_vm8 = vweird.f32 %v437_v50 }
  0xad   : > { %v446_v52 = vsub.f32 1.0, %v445_v51 }
  0xae   : > { %v399_v53 = vpop.f32.mrf.mxu0  ;;  %v471_v14 = vor.u32 1.1754944e-38, %v470_v3  ;;  %vm469_vm10 = vcmp.eq.f32.partialorder %v468_v2, 8.507059e+37  ;;  %v6596_v2 = vld [vmem:[%s10538_s3 + $0xb4] sm:$0xf]  ;;  %v5764_v3 = vld [vmem:[%s10538_s3 + $0x100] sm:$0xf0] }
  0xaf   : > { %v447_v54 = vmul.f32 %v6807_v49, %v446_v52  ;;  %v7642_v55 = vadd.f32 %v7585_v15, %v399_v53 }
  0xb1   : > { %v6809_v56 = vpop.eup %6808  ;;  %v5659_v57 = vmul.f32 -1.442695, %v7642_v55  ;;  %v448_v60 = vadd.f32 %v6807_v49, %v447_v54 }
  0xb2   : > { %v6811_v58 = vpop.eup %6810  ;;  %v7645_v59 = vadd.f32 1.0, %v6809_v56 }
  0xb3   : > { %v460_v61 = vmul.f32 %v6811_v58, %v437_v50  ;;  %6812 = vpow2.f32 %v5659_v57  ;;  %v452_v5 = vsel %vm7648_vm5, %v6807_v49, %v448_v60  ;;  %vm465_vm6 = vweird.f32 %v6811_v58 }
  0xb4   : > { %6814 = vrcp.f32 %v7645_v59  ;;  %v457_v13 = vsel %vm454_vm7, %v456_v8, %v452_v5  ;;  %vm466_vm9 = vmor %vm464_vm8, %vm465_vm6  ;;  %v483_v33 = vand.u32 2147483647, %v7645_v59  ;;  %v485_v34 = vand.u32 2147483648, %v7645_v59 }
  0xb5   : > { %v461_v0 = vsub.f32 1.0, %v460_v61  ;;  %v564_v21 = vmul.f32 %v457_v13, %v7588_v17  ;;  %vm479_vm13 = vweird.f32 %v7645_v59 }
  0xb6   : > { %v402_v4 = vpop.f32.mrf.mxu0  ;;  %v486_v47 = vor.u32 1.1754944e-38, %v485_v34  ;;  %vm484_vm0 = vcmp.eq.f32.partialorder %v483_v33, 8.507059e+37 }
  0xb7   : > { %v462_v6 = vmul.f32 %v6811_v58, %v461_v0  ;;  %v7655_v7 = vadd.f32 %v7585_v15, %v402_v4  ;;  %v5772_v4 = vld [vmem:[%s10538_s3 + $0x108] sm:$0xf0] }
  0xb9   : > { %v6813_v9 = vpop.eup %6812  ;;  %v463_v10 = vadd.f32 %v6811_v58, %v462_v6  ;;  %v5660_v11 = vmul.f32 -1.442695, %v7655_v7 }
  0xba   : > { %v6815_v12 = vpop.eup %6814  ;;  %v439_v16 = vadd.f32 1.0, %v6813_v9  ;;  %v6606_v9 = vld [vmem:[%s10538_s3 + $0xfc] sm:$0xf0] }
  0xbb   : > { %v467_v18 = vsel %vm466_vm9, %v6811_v58, %v463_v10  ;;  %v475_v19 = vmul.f32 %v6815_v12, %v7645_v59  ;;  %6816 = vpow2.f32 %v5660_v11  ;;  %vm480_vm12 = vweird.f32 %v6815_v12  ;;  %v5690_v10 = vld [vmem:[%s10538_s3 + $0x18] sm:$0xf] }
  0xbc   : > { %v472_v20 = vsel %vm469_vm10, %v471_v14, %v467_v18  ;;  %6818 = vrcp.f32 %v439_v16  ;;  %vm7687_vm14 = vmor %vm479_vm13, %vm480_vm12  ;;  %v498_v39 = vand.u32 2147483647, %v439_v16  ;;  %vm494_vm1 = vweird.f32 %v439_v16  ;;  %v6587_v14 = vld [vmem:[%s10538_s3 + $0x64] sm:$0xf0] }
  0xbd   : > { %v565_v22 = vmul.f32 %v472_v20, %v7634_v40  ;;  %v476_v23 = vsub.f32 1.0, %v475_v19  ;;  %v500_v40 = vand.u32 2147483648, %v439_v16  ;;  %v5684_v20 = vld [vmem:[%s10538_s3 + $0x60] sm:$0xf0] }
  0xbe   : > { %v404_v24 = vpop.f32.mrf.mxu0  ;;  %vm499_vm3 = vcmp.eq.f32.partialorder %v498_v39, 8.507059e+37 }
  0xbf   : > { %v7661_v25 = vpack.c.bf16 %v565_v22, %v564_v21  ;;  %v477_v26 = vmul.f32 %v6815_v12, %v476_v23  ;;  %v7664_v27 = vadd.f32 %v7585_v15, %v404_v24  ;;  %v501_v53 = vor.u32 1.1754944e-38, %v500_v40  ;;  %v6577_v21 = vld [vmem:[%s10538_s3 + $0x1c] sm:$0xf]  ;;  %v5692_v22 = vld [vmem:[%s10538_s3 + $0x68] sm:$0xf0] }
  0xc0   : > { %v5682_v24 = vld [vmem:[%s10538_s3 + $0x10] sm:$0xf]  ;;  %v5695_v34 = vor.u32 %v6577_v21, %v5692_v22  ;;  %v5706_v21 = vld [vmem:[%s10538_s3 + $0x28] sm:$0xf]  ;;  %v6589_v22 = vld [vmem:[%s10538_s3 + $0x74] sm:$0xf0] }
  0xc1   : > { %v6817_v28 = vpop.eup %6816  ;;  %v5661_v29 = vmul.f32 -1.442695, %v7664_v27  ;;  %5824 = vmatmul.msk.bf16.vlgmr.msra.gmra.mxu1 %vm862_vm11, %v7661_v25  ;;  %5828 = vmatmul.msk.bf16.vlgmr.msra.gmra.mxu2 %vm862_vm11, %v7661_v25  ;;  %v478_v31 = vadd.f32 %v6815_v12, %v477_v26  ;;  %v6586_v26 = vld [vmem:[%s10538_s3 + $0x5c] sm:$0xf0] }
  0xc2   : > { %v6819_v17 = vpop.eup %6818  ;;  %v7671_v30 = vadd.f32 1.0, %v6817_v28  ;;  %5832 = vmatmul.msk.bf16.vlgmr.msra.gmra.mxu3 %vm862_vm11, %v7661_v25  ;;  %5836 = vmatmul.msk.bf16.vlgmr.msrb.gmra.mxu0 %vm862_vm11, %v7661_v25 }
  0xc3   : > { %v490_v32 = vmul.f32 %v6819_v17, %v439_v16  ;;  %6820 = vpow2.f32 %v5661_v29  ;;  %v482_v43 = vsel %vm7687_vm14, %v6815_v12, %v478_v31  ;;  %vm495_vm15 = vweird.f32 %v6819_v17  ;;  %v6576_v16 = vld [vmem:[%s10538_s3 + $0x14] sm:$0xf]  ;;  %v5698_v31 = vld [vmem:[%s10538_s3 + $0x20] sm:$0xf] }
  0xc4   : > { %6822 = vrcp.f32 %v7671_v30  ;;  %v487_v52 = vsel %vm484_vm0, %v486_v47, %v482_v43  ;;  %vm496_vm2 = vmor %vm494_vm1, %vm495_vm15  ;;  %v515_v23 = vand.u32 2147483648, %v7671_v30  ;;  %vm509_vm5 = vweird.f32 %v7671_v30 }
  0xc5   : > { %v491_v35 = vsub.f32 1.0, %v490_v32  ;;  %v566_v59 = vmul.f32 %v487_v52, %v7638_v46  ;;  %v5767_v46 = vor.u32 %v6596_v2, %v5764_v3  ;;  %v513_v28 = vand.u32 2147483647, %v7671_v30 }
  0xc6   : > { %v407_v41 = vpop.f32.mrf.mxu0  ;;  %v5687_v33 = vor.u32 %v6576_v16, %v5684_v20  ;;  %v516_v38 = vor.u32 1.1754944e-38, %v515_v23  ;;  %v5778_v16 = vld [vmem:[%s10538_s3 + $0xc0] sm:$0xf]  ;;  %v5707_v23 = vor.u32 %v6589_v22, %v5706_v21  ;;  %v5794_v21 = vld [vmem:[%s10538_s3 + $0xd0] sm:$0xf] }
  0xc7   : > { %v492_v44 = vmul.f32 %v6819_v17, %v491_v35  ;;  %v7694_v45 = vadd.f32 %v7585_v15, %v407_v41  ;;  %1026 = vmatpush.bf16.msrb.mxu2 %v5767_v46  ;;  %v5683_v35 = vor.u32 %v6586_v26, %v5682_v24  ;;  %vm514_vm8 = vcmp.eq.f32.partialorder %v513_v28, 8.507059e+37  ;;  %v6578_v24 = vld [vmem:[%s10538_s3 + $0x24] sm:$0xf]  ;;  %v5700_v26 = vld [vmem:[%s10538_s3 + $0x70] sm:$0xf0] }
  0xc8   : > { %v6579_v28 = vld [vmem:[%s10538_s3 + $0x2c] sm:$0xf]  ;;  %v6610_v22 = vld [vmem:[%s10538_s3 + $0x11c] sm:$0xf0] }
  0xc9   : > { %v6821_v48 = vpop.eup %6820  ;;  %v493_v49 = vadd.f32 %v6819_v17, %v492_v44  ;;  %v5662_v50 = vmul.f32 -1.442695, %v7694_v45 }
  0xca   : > { %v7697_v51 = vpop.eup %6822  ;;  %v7699_v54 = vadd.f32 1.0, %v6821_v48 }
  0xcb   : > { %v497_v56 = vsel %vm496_vm2, %v6819_v17, %v493_v49  ;;  %v505_v57 = vmul.f32 %v7697_v51, %v7671_v30  ;;  %6824 = vpow2.f32 %v5662_v50  ;;  %vm510_vm4 = vweird.f32 %v7697_v51  ;;  %1027 = vmatpush.bf16.msrb.mxu2 %v5687_v33 }
  0xcc   : > { %v502_v58 = vsel %vm499_vm3, %v501_v53, %v497_v56  ;;  %6826 = vrcp.f32 %v7699_v54  ;;  %v5691_v17 = vor.u32 %v6587_v14, %v5690_v10  ;;  %vm7774_vm6 = vmor %vm509_vm5, %vm510_vm4  ;;  %v530_v32 = vand.u32 2147483648, %v7699_v54  ;;  %v5788_v14 = vld [vmem:[%s10538_s3 + $0x118] sm:$0xf0] }
  0xcd   : > { %v567_v60 = vmul.f32 %v502_v58, %v7642_v55  ;;  %v506_v61 = vsub.f32 1.0, %v505_v57  ;;  %v6597_v55 = vld [vmem:[%s10538_s3 + $0xbc] sm:$0xf]  ;;  %v528_v30 = vand.u32 2147483647, %v7699_v54  ;;  %vm524_vm9 = vweird.f32 %v7699_v54 }
  0xce   : > { %v409_v62 = vpop.f32.mrf.mxu0  ;;  %v5775_v8 = vor.u32 %v6597_v55, %v5772_v4  ;;  %1056 = vmatpush.bf16.msrb.mxu3 %v5691_v17  ;;  %v531_v43 = vor.u32 1.1754944e-38, %v530_v32  ;;  %v5708_v17 = vld [vmem:[%s10538_s3 + $0x78] sm:$0xf0]  ;;  %v6588_v32 = vld [vmem:[%s10538_s3 + $0x6c] sm:$0xf0]  ;;  %vm3468_vm5 = vcmask 523264  }
  0xcf   : > { %v7706_v63 = vpack.c.bf16 %v567_v60, %v566_v59  ;;  %v507_v0 = vmul.f32 %v7697_v51, %v506_v61  ;;  %v7710_v1 = vadd.f32 %v7585_v15, %v409_v62  ;;  %v5762_v15 = vld [vmem:[%s10538_s3 + $0xb0] sm:$0xf]  ;;  %vm529_vm12 = vcmp.eq.f32.partialorder %v528_v30, 8.507059e+37 }
  0xd0   : > { %v5763_v13 = vor.u32 %v6606_v9, %v5762_v15  ;;  %1084 = vmatpush.bf16.msra.mxu0 %v5775_v8  ;;  %v5711_v33 = vor.u32 %v6579_v28, %v5708_v17 }
  0xd1   : > { %10657 = vst [vmem:[#allocation3_spill] sm:$0xff] %v7706_v63  ;;  %v6825_v5 = vpop.eup %6824  ;;  %v5663_v6 = vmul.f32 -1.442695, %v7710_v1  ;;  %5825 = vmatmul.msk.bf16.gmra.mxu1 %vm862_vm11, %v7706_v63  ;;  %5829 = vmatmul.msk.bf16.gmra.mxu2 %vm862_vm11, %v7706_v63  ;;  %v508_v18 = vadd.f32 %v7697_v51, %v507_v0 }
  0xd2   : > { %v6827_v11 = vpop.eup %6826  ;;  %v7738_v12 = vadd.f32 1.0, %v6825_v5  ;;  %5833 = vmatmul.msk.bf16.gmra.mxu3 %vm862_vm11, %v7706_v63  ;;  %5837 = vmatmul.msk.bf16.gmra.mxu0 %vm862_vm11, %v7706_v63 }
  0xd3   : > { %v520_v19 = vmul.f32 %v6827_v11, %v7699_v54  ;;  %6828 = vpow2.f32 %v5663_v6  ;;  %997 = vmatpush.bf16.msrb.mxu1 %v5763_v13  ;;  %v512_v36 = vsel %vm7774_vm6, %v7697_v51, %v508_v18  ;;  %vm525_vm7 = vweird.f32 %v6827_v11  ;;  %v6608_v18 = vld [vmem:[%s10538_s3 + $0x10c] sm:$0xf0] }
  0xd4   : > { %6830 = vrcp.f32 %v7738_v12  ;;  %1085 = vmatpush.bf16.msra.mxu0 %v5695_v34  ;;  %v517_v42 = vsel %vm514_vm8, %v516_v38, %v512_v36  ;;  %vm526_vm10 = vmor %vm524_vm9, %vm525_vm7  ;;  %v545_v60 = vand.u32 2147483648, %v7738_v12  ;;  %vm539_vm14 = vweird.f32 %v7738_v12 }
  0xd5   : > { %v521_v29 = vsub.f32 1.0, %v520_v19  ;;  %v568_v50 = vmul.f32 %v517_v42, %v7655_v7  ;;  %v5786_v7 = vld [vmem:[%s10538_s3 + $0xc8] sm:$0xf]  ;;  %v543_v61 = vand.u32 2147483647, %v7738_v12  ;;  %v5779_v20 = vor.u32 %v6608_v18, %v5778_v16 }
  0xd6   : > { %v546_v55 = vor.u32 1.1754944e-38, %v545_v60  ;;  %v5699_v34 = vor.u32 %v6588_v32, %v5698_v31  ;;  %vm3909_vm6 = vcmask 1040384   ;;  %vm3911_vm7 = vcmask 1042434  }
  0xd7   : > { %v522_v37 = vmul.f32 %v6827_v11, %v521_v29  ;;  %998 = vmatpush.bf16.msrb.mxu1 %v5683_v35  ;;  %vm544_vm1 = vcmp.eq.f32.partialorder %v543_v61, 8.507059e+37  ;;  %v5703_v29 = vor.u32 %v6578_v24, %v5700_v26  ;;  %v7895_v35 = vld [vmem:[%s10539_s4] sm:$0xff]  ;;  %v5802_v61 = vld [vmem:[%s10538_s3 + $0xd8] sm:$0xf]  ;;  %v5795_v24 = vor.u32 %v6610_v22, %v5794_v21 }
  0xd8   : > { %v7898_v36 = vperm.slane %v7895_v35, 0  ;;  %v7501_v26 = vmov 1065369472   ;;  %vm3913_vm8 = vcmask 1041408   ;;  %vm3915_vm9 = vcmask 1044484  }
  0xd9   : > { %v6829_v39 = vpop.eup %6828  ;;  %v523_v40 = vadd.f32 %v6827_v11, %v522_v37  ;;  %v7905_v37 = vperm.slane %v7895_v35, 1  ;;  %v7984_v28 = vunpack.c.h.bf16 %v7501_v26  ;;  %v7989_v31 = vunpack.c.l.bf16 %v7501_v26 }
  0xda   : > { %v6831_v41 = vpop.eup %6830  ;;  %v443_v44 = vadd.f32 1.0, %v6829_v39 }
  0xdb   : > { %v527_v47 = vsel %vm526_vm10, %v6827_v11, %v523_v40  ;;  %v535_v48 = vmul.f32 %v6831_v41, %v7738_v12  ;;  %vm540_vm13 = vweird.f32 %v6831_v41  ;;  %v6599_v12 = vld [vmem:[%s10538_s3 + $0xcc] sm:$0xf]  ;;  %1113 = vmatpush.bf16.msra.mxu1 %v5779_v20  ;;  %vm3917_vm10 = vcmask 1046534  }
  0xdc   : > { %v532_v49 = vsel %vm529_vm12, %v531_v43, %v527_v47  ;;  %6832 = vrcp.f32 %v443_v44  ;;  %vm541_vm15 = vmor %vm539_vm14, %vm540_vm13  ;;  %v560_v0 = vand.u32 2147483648, %v443_v44  ;;  %v558_v46 = vand.u32 2147483647, %v443_v44 }
  0xdd   : > { %v569_v51 = vmul.f32 %v532_v49, %v7664_v27  ;;  %v536_v52 = vsub.f32 1.0, %v535_v48  ;;  %v6609_v27 = vld [vmem:[%s10538_s3 + $0x114] sm:$0xf0]  ;;  %vm554_vm2 = vweird.f32 %v443_v44  ;;  %v5791_v19 = vor.u32 %v6599_v12, %v5788_v14 }
  0xde   : > { %v5787_v59 = vor.u32 %v6609_v27, %v5786_v7  ;;  %v561_v5 = vor.u32 1.1754944e-38, %v560_v0  ;;  %vm559_vm4 = vcmp.eq.f32.partialorder %v558_v46, 8.507059e+37  ;;  %v6600_v0 = vld [vmem:[%s10538_s3 + $0xd4] sm:$0xf]  ;;  %vm3919_vm12 = vcmask 1045508  }
  0xdf   : > { %v7787_v53 = vpack.c.bf16 %v569_v51, %v568_v50  ;;  %v537_v54 = vmul.f32 %v6831_v41, %v536_v52  ;;  %1200 = vmatpush.bf16.msrb.mxu0 %v5791_v19  ;;  %1114 = vmatpush.bf16.msra.mxu1 %v5699_v34  ;;  %v7928_v52 = vperm.slane %v7895_v35, 2  ;;  %vm3921_vm13 = vcmask 1043456  }
  0xe0   : > { %1171 = vmatpush.bf16.msra.mxu3 %v5787_v59 }
  0xe1   : > { %10660 = vst [vmem:[#allocation4_spill] sm:$0xff] %v7787_v53  ;;  %5826 = vmatmul.msk.bf16.gmra.mxu1 %vm862_vm11, %v7787_v53  ;;  %5830 = vmatmul.msk.bf16.gmra.mxu2 %vm862_vm11, %v7787_v53  ;;  %v538_v57 = vadd.f32 %v6831_v41, %v537_v54 }
  0xe2   : > { %v6833_v56 = vpop.eup %6832  ;;  %5834 = vmatmul.msk.bf16.gmra.mxu3 %vm862_vm11, %v7787_v53  ;;  %5838 = vmatmul.msk.bf16.gmra.mxu0 %vm862_vm11, %v7787_v53 }
  0xe3   : > { %v550_v58 = vmul.f32 %v6833_v56, %v443_v44  ;;  %v542_v2 = vsel %vm541_vm15, %v6831_v41, %v538_v57  ;;  %vm555_vm0 = vweird.f32 %v6833_v56  ;;  %1201 = vmatpush.bf16.msrb.mxu0 %v5711_v33 }
  0xe4   : > { %v547_v15 = vsel %vm544_vm1, %v546_v55, %v542_v2  ;;  %vm556_vm3 = vmor %vm554_vm2, %vm555_vm0  ;;  %1172 = vmatpush.bf16.msra.mxu3 %v5707_v23 }
  0xe5   : > { %v551_v62 = vsub.f32 1.0, %v550_v58  ;;  %v570_v9 = vmul.f32 %v547_v15, %v7694_v45  ;;  %v6598_v45 = vld [vmem:[%s10538_s3 + $0xc4] sm:$0xf]  ;;  %v6601_v15 = vld [vmem:[%s10538_s3 + $0xdc] sm:$0xf] }
  0xe7   : > { %v552_v3 = vmul.f32 %v6833_v56, %v551_v62  ;;  %v6611_v62 = vld [vmem:[%s10538_s3 + $0x124] sm:$0xf0] }
  0xe9   : > { %v553_v4 = vadd.f32 %v6833_v56, %v552_v3 }
  0xeb   : > { %v557_v6 = vsel %vm556_vm3, %v6833_v56, %v553_v4  ;;  %v7931_v56 = vperm.slane %v7895_v35, 3  ;;  %v5796_v4 = vld [vmem:[%s10538_s3 + $0x120] sm:$0xf0] }
  0xec   : > { %v562_v8 = vsel %vm559_vm4, %v561_v5, %v557_v6  ;;  %v5803_v5 = vor.u32 %v6611_v62, %v5802_v61  ;;  %v5799_v6 = vor.u32 %v6600_v0, %v5796_v4 }
  0xed   : > { %v571_v10 = vmul.f32 %v562_v8, %v7710_v1  ;;  %v5780_v1 = vld [vmem:[%s10538_s3 + $0x110] sm:$0xf0]  ;;  %v5804_v8 = vld [vmem:[%s10538_s3 + $0x128] sm:$0xf0] }
  0xee   : > { %v5783_v13 = vor.u32 %v6598_v45, %v5780_v1  ;;  %v5807_v12 = vor.u32 %v6601_v15, %v5804_v8 }
  0xef   : > { %v7808_v11 = vpack.c.bf16 %v571_v10, %v570_v9 }
  0xf0   : > { %1142 = vmatpush.bf16.msra.mxu2 %v5783_v13 }
  0xf1   : > { %10661 = vst [vmem:[#allocation5_spill] sm:$0xff] %v7808_v11  ;;  %5827 = vmatmul.msk.bf16.gmra.mxu1 %vm862_vm11, %v7808_v11  ;;  %5831 = vmatmul.msk.bf16.gmra.mxu2 %vm862_vm11, %v7808_v11 }
  0xf2   : > { %5835 = vmatmul.msk.bf16.gmra.mxu3 %vm862_vm11, %v7808_v11  ;;  %5839 = vmatmul.msk.bf16.gmra.mxu0 %vm862_vm11, %v7808_v11 }
  0xf4   : > { %1143 = vmatpush.bf16.msra.mxu2 %v5703_v29 }
 0x101   : > { %5840 = vmatmul.msk.bf16.vlgmr.msrb.gmra.mxu1 %vm862_vm11, %v7661_v25  ;;  %5844 = vmatmul.msk.bf16.vlgmr.msrb.gmra.mxu2 %vm862_vm11, %v7661_v25 }
 0x102   : > { %5848 = vmatmul.msk.bf16.vlgmr.msrb.gmra.mxu3 %vm862_vm11, %v7661_v25  ;;  %5852 = vmatmul.msk.bf16.vlgmr.msra.gmra.mxu0 %vm862_vm11, %v7661_v25 }
 0x103   : > { %1287 = vmatpush.bf16.msrb.mxu3 %v5803_v5  ;;  %1258 = vmatpush.bf16.msrb.mxu2 %v5799_v6 }
 0x104   : > { %1316 = vmatpush.bf16.msra.mxu0 %v5807_v12  ;;  %1229 = vmatpush.bf16.msrb.mxu1 %v5795_v24 }
 0x111   : > { %5841 = vmatmul.msk.bf16.gmra.mxu1 %vm862_vm11, %v7706_v63  ;;  %5845 = vmatmul.msk.bf16.gmra.mxu2 %vm862_vm11, %v7706_v63 }
 0x112   : > { %5849 = vmatmul.msk.bf16.gmra.mxu3 %vm862_vm11, %v7706_v63  ;;  %5853 = vmatmul.msk.bf16.gmra.mxu0 %vm862_vm11, %v7706_v63 }
 0x121   : > { %5842 = vmatmul.msk.bf16.gmra.mxu1 %vm862_vm11, %v7787_v53  ;;  %5846 = vmatmul.msk.bf16.gmra.mxu2 %vm862_vm11, %v7787_v53 }
 0x122   : > { %5850 = vmatmul.msk.bf16.gmra.mxu3 %vm862_vm11, %v7787_v53  ;;  %5854 = vmatmul.msk.bf16.gmra.mxu0 %vm862_vm11, %v7787_v53 }
 0x131   : > { %5843 = vmatmul.msk.bf16.gmra.mxu1 %vm862_vm11, %v7808_v11  ;;  %5847 = vmatmul.msk.bf16.gmra.mxu2 %vm862_vm11, %v7808_v11 }
 0x132   : > { %5851 = vmatmul.msk.bf16.gmra.mxu3 %vm862_vm11, %v7808_v11  ;;  %5855 = vmatmul.msk.bf16.gmra.mxu0 %vm862_vm11, %v7808_v11 }
 0x13e   : > { %v884_v30 = vpop.f32.mrf.mxu1 }
 0x13f   : > { %v7912_v39 = vadd.f32 %v884_v30, %v7898_v36  ;;  %v971_v51 = vpop.f32.mrf.mxu0 }
 0x140   : > { %v7946_v2 = vadd.f32 %v971_v51, %v7931_v56 }
 0x141   : > { %5856 = vmatmul.msk.bf16.vlgmr.msra.gmra.mxu1 %vm862_vm11, %v7661_v25  ;;  %5860 = vmatmul.msk.bf16.vlgmr.msra.gmra.mxu2 %vm862_vm11, %v7661_v25  ;;  %10662 = vst [vmem:[#allocation6_spill] sm:$0xff] %v7912_v39 }
 0x142   : > { %5864 = vmatmul.msk.bf16.vlgmr.msra.gmra.mxu3 %vm862_vm11, %v7661_v25  ;;  %5868 = vmatmul.msk.bf16.vlgmr.msrb.gmra.mxu0 %vm862_vm11, %v7661_v25  ;;  %10664 = vst [vmem:[#allocation8_spill] sm:$0xff] %v7946_v2 }
 0x144   : > { %v913_v38 = vpop.f32.mrf.mxu2 }
 0x145   : > { %v7915_v40 = vadd.f32 %v913_v38, %v7905_v37  ;;  %v942_v49 = vpop.f32.mrf.mxu3 }
 0x146   : > { %v7934_v59 = vadd.f32 %v942_v49, %v7928_v52  ;;  %v886_v60 = vpop.f32.mrf.mxu1 }
 0x147   : > { %v1455_v41 = vpack.c.bf16 %v7915_v40, %v7912_v39  ;;  %v7963_v45 = vadd.f32 %v886_v60, %v7898_v36  ;;  %v973_v16 = vpop.f32.mrf.mxu0 }
 0x148   : > { %10663 = vst [vmem:[#allocation7_spill] sm:$0xff] %v7934_v59  ;;  %v1456_v10 = vpack.c.bf16 %v7946_v2, %v7934_v59  ;;  %v7987_v29 = vadd.f32 %v973_v16, %v7931_v56 }
 0x149   : > { %v1535_v42 = vxor.u32 2147516416, %v1455_v41  ;;  %10666 = vst [vmem:[#allocation10_spill] sm:$0xff] %v7963_v45 }
 0x14a   : > { %v1536_v19 = vxor.u32 2147516416, %v1456_v10  ;;  %10668 = vst [vmem:[#allocation12_spill] sm:$0xff] %v7987_v29 }
 0x14b   : > { %v1615_v43 = vunpack.c.l.bf16 %v1535_v42  ;;  %v1616_v44 = vunpack.c.h.bf16 %v1535_v42 }
 0x14c   : > { %v915_v27 = vpop.f32.mrf.mxu2  ;;  %v1617_v32 = vunpack.c.l.bf16 %v1536_v19  ;;  %v1618_v33 = vunpack.c.h.bf16 %v1536_v19 }
 0x14d   : > { %v1775_v47 = vmul.f32 1.442695, %v1615_v43  ;;  %v1777_v48 = vmul.f32 1.442695, %v1616_v44  ;;  %v7949_v55 = vadd.f32 %v915_v27, %v7905_v37  ;;  %v944_v1 = vpop.f32.mrf.mxu3 }
 0x14e   : > { %v7972_v20 = vadd.f32 %v944_v1, %v7928_v52  ;;  %v889_v30 = vpop.f32.mrf.mxu1 }
 0x14f   : > { %6834 = vpow2.f32 %v1775_v47  ;;  %10665 = vst [vmem:[#allocation9_spill] sm:$0xff] %v7949_v55  ;;  %v1465_v18 = vpack.c.bf16 %v7949_v55, %v7963_v45  ;;  %v7999_v51 = vadd.f32 %v889_v30, %v7898_v36 }
 0x150   : > { %6836 = vpow2.f32 %v1777_v48  ;;  %10667 = vst [vmem:[#allocation11_spill] sm:$0xff] %v7972_v20  ;;  %v1466_v34 = vpack.c.bf16 %v7987_v29, %v7972_v20 }
 0x151   : > { %5857 = vmatmul.msk.bf16.gmra.mxu1 %vm862_vm11, %v7706_v63  ;;  %5861 = vmatmul.msk.bf16.gmra.mxu2 %vm862_vm11, %v7706_v63  ;;  %v1545_v23 = vxor.u32 2147516416, %v1465_v18  ;;  %10669 = vst [vmem:[#allocation13_spill] sm:$0xff] %v7999_v51 }
 0x152   : > { %5865 = vmatmul.msk.bf16.gmra.mxu3 %vm862_vm11, %v7706_v63  ;;  %5869 = vmatmul.msk.bf16.gmra.mxu0 %vm862_vm11, %v7706_v63  ;;  %v1546_v27 = vxor.u32 2147516416, %v1466_v34 }
 0x153   : > { %v1635_v41 = vunpack.c.l.bf16 %v1545_v23  ;;  %v1636_v48 = vunpack.c.h.bf16 %v1545_v23 }
 0x154   : > { %v918_v17 = vpop.f32.mrf.mxu2  ;;  %v1638_v15 = vunpack.c.h.bf16 %v1546_v27 }
 0x155   : > { %v6835_v50 = vpop.eup %6834  ;;  %v7994_v42 = vadd.f32 %v918_v17, %v7905_v37  ;;  %v947_v43 = vpop.f32.mrf.mxu3  ;;  %v1817_v61 = vmul.f32 1.442695, %v1636_v48 }
 0x156   : > { %v6837_v54 = vpop.eup %6836  ;;  %v8007_v0 = vadd.f32 %v947_v43, %v7928_v52  ;;  %v1821_v12 = vmul.f32 1.442695, %v1638_v15 }
 0x157   : > { %v2095_v7 = vpack.c.bf16 %v6837_v54, %v6835_v50  ;;  %v1779_v50 = vmul.f32 1.442695, %v1617_v32  ;;  %v976_v54 = vpop.f32.mrf.mxu0  ;;  %v1475_v60 = vpack.c.bf16 %v7994_v42, %v7999_v51 }
 0x158   : > { %10671 = vst [vmem:[#allocation15_spill] sm:$0xff] %v8007_v0 }
 0x159   : > { %v2175_v57 = vunpack.c.l.bf16 %v2095_v7  ;;  %v2176_v58 = vunpack.c.h.bf16 %v2095_v7  ;;  %v1781_v7 = vmul.f32 1.442695, %v1618_v33  ;;  %v1555_v5 = vxor.u32 2147516416, %v1475_v60  ;;  %v6591_v60 = vld [vmem:[%s10538_s3 + $0x84] sm:$0xf0] }
 0x15b   : > { %v2335_v3 = vadd.f32 1.0, %v2175_v57  ;;  %v2336_v46 = vadd.f32 1.0, %v2176_v58  ;;  %v1815_v58 = vmul.f32 1.442695, %v1635_v41  ;;  %v1656_v18 = vunpack.c.h.bf16 %v1555_v5 }
 0x15c   : > { %v920_v6 = vpop.f32.mrf.mxu2 }
 0x15d   : > { %v2495_v9 = vpack.c.bf16 %v2336_v46, %v2335_v3  ;;  %v1637_v3 = vunpack.c.l.bf16 %v1546_v27  ;;  %v8010_v46 = vadd.f32 %v976_v54, %v7931_v56  ;;  %v949_v10 = vpop.f32.mrf.mxu3  ;;  %v1857_v26 = vmul.f32 1.442695, %v1656_v18 }
 0x15e   : > { %v8030_v27 = vadd.f32 %v920_v6, %v7905_v37 }
 0x15f   : > { %v2577_v13 = vunpack.c.h.bf16 %v2495_v9  ;;  %v2578_v14 = vunpack.c.l.bf16 %v2495_v9  ;;  %10672 = vst [vmem:[#allocation16_spill] sm:$0xff] %v8010_v46  ;;  %v1476_v8 = vpack.c.bf16 %v8010_v46, %v8007_v0  ;;  %v891_v9 = vpop.f32.mrf.mxu1  ;;  %v1819_v1 = vmul.f32 1.442695, %v1637_v3 }
 0x160   : > { %10674 = vst [vmem:[#allocation18_spill] sm:$0xff] %v8030_v27  ;;  %v8039_v15 = vadd.f32 %v891_v9, %v7898_v36 }
 0x161   : > { %6838 = vrcp.f32 %v2577_v13  ;;  %5858 = vmatmul.msk.bf16.gmra.mxu1 %vm862_vm11, %v7787_v53  ;;  %5862 = vmatmul.msk.bf16.gmra.mxu2 %vm862_vm11, %v7787_v53  ;;  %v1655_v13 = vunpack.c.l.bf16 %v1555_v5  ;;  %v1556_v21 = vxor.u32 2147516416, %v1476_v8 }
 0x162   : > { %6840 = vrcp.f32 %v2578_v14  ;;  %5866 = vmatmul.msk.bf16.gmra.mxu3 %vm862_vm11, %v7787_v53  ;;  %5870 = vmatmul.msk.bf16.gmra.mxu0 %vm862_vm11, %v7787_v53  ;;  %v978_v14 = vpop.f32.mrf.mxu0  ;;  %10675 = vst [vmem:[#allocation19_spill] sm:$0xff] %v8039_v15 }
 0x163   : > { %6842 = vpow2.f32 %v1779_v50  ;;  %v1855_v23 = vmul.f32 1.442695, %v1655_v13  ;;  %v1657_v32 = vunpack.c.l.bf16 %v1556_v21  ;;  %v1658_v34 = vunpack.c.h.bf16 %v1556_v21 }
 0x164   : > { %6844 = vpow2.f32 %v1781_v7  ;;  %v923_v33 = vpop.f32.mrf.mxu2  ;;  %v8044_v13 = vadd.f32 %v949_v10, %v7928_v52  ;;  %v8047_v9 = vadd.f32 %v978_v14, %v7931_v56 }
 0x165   : > { %6846 = vpow2.f32 %v1815_v58  ;;  %v1861_v7 = vmul.f32 1.442695, %v1658_v34  ;;  %v5722_v58 = vld [vmem:[%s10538_s3 + $0x38] sm:$0xf] }
 0x166   : > { %6848 = vpow2.f32 %v1817_v61  ;;  %10676 = vst [vmem:[#allocation20_spill] sm:$0xff] %v8044_v13  ;;  %v1486_v34 = vpack.c.bf16 %v8047_v9, %v8044_v13 }
 0x167   : > { %v6839_v38 = vpop.eup %6838  ;;  %6850 = vpow2.f32 %v1819_v1  ;;  %v894_v30 = vpop.f32.mrf.mxu1  ;;  %v5723_v1 = vor.u32 %v6591_v60, %v5722_v58  ;;  %10677 = vst [vmem:[#allocation21_spill] sm:$0xff] %v8047_v9 }
 0x168   : > { %v6841_v44 = vpop.eup %6840  ;;  %v2580_v47 = vmul.f32 %v6839_v38, %v7984_v28  ;;  %6852 = vpow2.f32 %v1821_v12  ;;  %v8025_v38 = vpop.f32.mrf.mxu3  ;;  %v1485_v12 = vpack.c.bf16 %v8030_v27, %v8039_v15 }
 0x169   : > { %v2582_v49 = vmul.f32 %v6841_v44, %v7989_v31  ;;  %6854 = vpow2.f32 %v1855_v23  ;;  %1288 = vmatpush.bf16.msrb.mxu3 %v5723_v1  ;;  %v5716_v23 = vld [vmem:[%s10538_s3 + $0x80] sm:$0xf0] }
 0x16a   : > { %6856 = vpow2.f32 %v1857_v26  ;;  %v8027_v50 = vpop.f32.mrf.mxu0 }
 0x16b   : > { %v8001_v57 = vpack.c.bf16 %v2580_v47, %v2582_v49  ;;  %v1859_v49 = vmul.f32 1.442695, %v1657_v32  ;;  %v1565_v32 = vxor.u32 2147516416, %v1485_v12 }
 0x16d   : > { %10670 = vst [vmem:[#allocation14_spill] sm:$0xff] %v8001_v57  ;;  %v3138_v62 = vunpack.c.h.bf16 %v8001_v57  ;;  %6858 = vpow2.f32 %v1859_v49 }
 0x16e   : > { %6860 = vpow2.f32 %v1861_v7 }
 0x16f   : > { %v8013_v4 = vmul.f32 %v3138_v62, %v7915_v40  ;;  %v6843_v40 = vpop.eup %6842  ;;  %v896_v26 = vpop.f32.mrf.mxu1 }
 0x170   : > { %v6845_v16 = vpop.eup %6844  ;;  %v8055_v10 = vpop.f32.mrf.mxu3 }
 0x171   : > { %10673 = vst [vmem:[#allocation17_spill] sm:$0xff] %v8013_v4  ;;  %5859 = vmatmul.msk.bf16.gmra.mxu1 %vm862_vm11, %v7808_v11  ;;  %5863 = vmatmul.msk.bf16.gmra.mxu2 %vm862_vm11, %v7808_v11  ;;  %v6847_v19 = vpop.eup %6846  ;;  %v2096_v24 = vpack.c.bf16 %v6845_v16, %v6843_v40  ;;  %v925_v16 = vpop.f32.mrf.mxu2 }
 0x172   : > { %5867 = vmatmul.msk.bf16.gmra.mxu3 %vm862_vm11, %v7808_v11  ;;  %5871 = vmatmul.msk.bf16.gmra.mxu0 %vm862_vm11, %v7808_v11  ;;  %v6849_v22 = vpop.eup %6848 }
 0x173   : > { %v2105_v17 = vpack.c.bf16 %v6849_v22, %v6847_v19  ;;  %v6851_v41 = vpop.eup %6850  ;;  %v2177_v43 = vunpack.c.l.bf16 %v2096_v24  ;;  %v2178_v44 = vunpack.c.h.bf16 %v2096_v24  ;;  %v6580_v22 = vld [vmem:[%s10538_s3 + $0x34] sm:$0xf] }
 0x174   : > { %v6853_v47 = vpop.eup %6852 }
 0x175   : > { %v2195_v48 = vunpack.c.l.bf16 %v2105_v17  ;;  %v2196_v54 = vunpack.c.h.bf16 %v2105_v17  ;;  %v2337_v61 = vadd.f32 1.0, %v2177_v43  ;;  %v2338_v62 = vadd.f32 1.0, %v2178_v44  ;;  %v6855_v5 = vpop.eup %6854  ;;  %v8064_v43 = vpop.f32.mrf.mxu0 }
 0x176   : > { %v2106_v3 = vpack.c.bf16 %v6853_v47, %v6851_v41  ;;  %v6857_v6 = vpop.eup %6856  ;;  %v8062_v41 = vadd.f32 %v923_v33, %v7905_v37  ;;  %v5719_v44 = vor.u32 %v6580_v22, %v5716_v23  ;;  %v6581_v47 = vld [vmem:[%s10538_s3 + $0x3c] sm:$0xf]  ;;  %v8073_v33 = vadd.f32 %v894_v30, %v7898_v36 }
 0x177   : > { %v2355_v8 = vadd.f32 1.0, %v2195_v48  ;;  %v2356_v40 = vadd.f32 1.0, %v2196_v54  ;;  %v2496_v18 = vpack.c.bf16 %v2338_v62, %v2337_v61  ;;  %v2115_v24 = vpack.c.bf16 %v6857_v6, %v6855_v5  ;;  %v6859_v14 = vpop.eup %6858  ;;  %v5724_v48 = vld [vmem:[%s10538_s3 + $0x88] sm:$0xf0] }
 0x178   : > { %v2197_v19 = vunpack.c.l.bf16 %v2106_v3  ;;  %v2198_v21 = vunpack.c.h.bf16 %v2106_v3  ;;  %v6861_v49 = vpop.eup %6860  ;;  %10678 = vst [vmem:[#allocation22_spill] sm:$0xff] %v8073_v33  ;;  %1259 = vmatpush.bf16.msrb.mxu2 %v5719_v44  ;;  %v1675_v5 = vunpack.c.l.bf16 %v1565_v32  ;;  %v5727_v1 = vor.u32 %v6581_v47, %v5724_v48 }
 0x179   : > { %v2505_v17 = vpack.c.bf16 %v2356_v40, %v2355_v8  ;;  %v2584_v54 = vunpack.c.h.bf16 %v2496_v18  ;;  %v2585_v60 = vunpack.c.l.bf16 %v2496_v18  ;;  %v2215_v61 = vunpack.c.l.bf16 %v2115_v24  ;;  %v928_v23 = vpop.f32.mrf.mxu2 }
 0x17a   : > { %v2357_v7 = vadd.f32 1.0, %v2197_v19  ;;  %v2358_v58 = vadd.f32 1.0, %v2198_v21  ;;  %v2216_v62 = vunpack.c.h.bf16 %v2115_v24  ;;  %v1566_v8 = vxor.u32 2147516416, %v1486_v34  ;;  %1317 = vmatpush.bf16.msra.mxu0 %v5727_v1 }
 0x17b   : > { %v2647_v3 = vunpack.c.h.bf16 %v2505_v17  ;;  %v2116_v6 = vpack.c.bf16 %v6861_v49, %v6859_v14  ;;  %v1495_v40 = vpack.c.bf16 %v8062_v41, %v8073_v33  ;;  %6862 = vrcp.f32 %v2584_v54  ;;  %v6590_v14 = vld [vmem:[%s10538_s3 + $0x7c] sm:$0xf0]  ;;  %v899_v49 = vpop.f32.mrf.mxu1  ;;  %v8096_v54 = vpop.f32.mrf.mxu3 }
 0x17c   : > { %v2648_v12 = vunpack.c.l.bf16 %v2505_v17  ;;  %v2506_v22 = vpack.c.bf16 %v2358_v58, %v2357_v7  ;;  %v1676_v19 = vunpack.c.h.bf16 %v1565_v32  ;;  %6864 = vrcp.f32 %v2585_v60  ;;  %v5714_v32 = vld [vmem:[%s10538_s3 + $0x30] sm:$0xf] }
 0x17d   : > { %v2375_v30 = vadd.f32 1.0, %v2215_v61  ;;  %v2376_v18 = vadd.f32 1.0, %v2216_v62  ;;  %v8081_v21 = vadd.f32 %v8025_v38, %v7928_v52  ;;  %6866 = vrcp.f32 %v2647_v3  ;;  %v8105_v3 = vpop.f32.mrf.mxu0 }
 0x17e   : > { %v1895_v24 = vmul.f32 1.442695, %v1675_v5  ;;  %v1677_v34 = vunpack.c.l.bf16 %v1566_v8  ;;  %v8085_v17 = vadd.f32 %v8027_v50, %v7931_v56  ;;  %v2217_v44 = vunpack.c.l.bf16 %v2116_v6 }
 0x17f   : > { %10679 = vst [vmem:[#allocation23_spill] sm:$0xff] %v8081_v21  ;;  %v2218_v47 = vunpack.c.h.bf16 %v2116_v6  ;;  %v1575_v38 = vxor.u32 2147516416, %v1495_v40  ;;  %v8094_v48 = vadd.f32 %v925_v16, %v7905_v37  ;;  %6868 = vrcp.f32 %v2648_v12 }
 0x180   : > { %10680 = vst [vmem:[#allocation24_spill] sm:$0xff] %v8085_v17  ;;  %v2654_v50 = vunpack.c.h.bf16 %v2506_v22  ;;  %v1897_v7 = vmul.f32 1.442695, %v1676_v19  ;;  %v1678_v58 = vunpack.c.h.bf16 %v1566_v8  ;;  %v2515_v60 = vpack.c.bf16 %v2376_v18, %v2375_v30 }
 0x181   : > { %5876 = vmatmul.msk.bf16.vlgmr.msrb.gmra.mxu2 %vm862_vm11, %v7661_v25  ;;  %v1496_v61 = vpack.c.bf16 %v8085_v17, %v8081_v21  ;;  %v8103_v62 = vadd.f32 %v896_v26, %v7898_v36  ;;  %v5715_v16 = vor.u32 %v6590_v14, %v5714_v32  ;;  %v8107_v5 = vpop.eup %6862  ;;  %v2655_v1 = vunpack.c.l.bf16 %v2506_v22 }
 0x182   : > { %5880 = vmatmul.msk.bf16.vlgmr.msrb.gmra.mxu3 %vm862_vm11, %v7661_v25  ;;  %5884 = vmatmul.msk.bf16.vlgmr.msra.gmra.mxu0 %vm862_vm11, %v7661_v25  ;;  %6870 = vpow2.f32 %v1895_v24  ;;  %v1899_v6 = vmul.f32 1.442695, %v1677_v34  ;;  %v8109_v40 = vpop.eup %6864  ;;  %v2377_v12 = vadd.f32 1.0, %v2217_v44  ;;  %v2378_v19 = vadd.f32 1.0, %v2218_v47 }
 0x183   : > { %10681 = vst [vmem:[#allocation25_spill] sm:$0xff] %v8103_v62  ;;  %v1695_v8 = vunpack.c.l.bf16 %v1575_v38  ;;  %v1505_v30 = vpack.c.bf16 %v8094_v48, %v8103_v62  ;;  %1230 = vmatpush.bf16.msrb.mxu1 %v5715_v16  ;;  %v8113_v18 = vpop.eup %6866  ;;  %6872 = vpow2.f32 %v1897_v7  ;;  %v1901_v26 = vmul.f32 1.442695, %v1678_v58  ;;  %v930_v7 = vpop.f32.mrf.mxu2 }
 0x184   : > { %v8117_v32 = vadd.f32 %v8055_v10, %v7928_v52  ;;  %6874 = vrcp.f32 %v2654_v50  ;;  %v2717_v22 = vunpack.c.h.bf16 %v2515_v60  ;;  %v1696_v24 = vunpack.c.h.bf16 %v1575_v38  ;;  %v959_v2 = vpop.f32.mrf.mxu3 }
 0x185   : > { %v1576_v34 = vxor.u32 2147516416, %v1496_v61  ;;  %v8119_v14 = vpop.eup %6868  ;;  %6876 = vrcp.f32 %v2655_v1  ;;  %v2718_v44 = vunpack.c.l.bf16 %v2515_v60  ;;  %v8123_v47 = vadd.f32 %v8064_v43, %v7931_v56  ;;  %v901_v1 = vpop.f32.mrf.mxu1 }
 0x186   : > { %5872 = vmatmul.msk.bf16.vlgmr.msrb.gmra.mxu1 %vm862_vm11, %v7661_v25  ;;  %v8129_v10 = vpack.c.bf16 %v2378_v19, %v2377_v12  ;;  %6878 = vpow2.f32 %v1899_v6  ;;  %v1935_v50 = vmul.f32 1.442695, %v1695_v8  ;;  %v1585_v38 = vxor.u32 2147516416, %v1505_v30 }
 0x187   : > { %10682 = vst [vmem:[#allocation26_spill] sm:$0xff] %v8123_v47  ;;  %6880 = vpow2.f32 %v1901_v26  ;;  %v1506_v60 = vpack.c.bf16 %v8123_v47, %v8117_v32  ;;  %v8134_v43 = vadd.f32 %v928_v23, %v7905_v37  ;;  %v1937_v61 = vmul.f32 1.442695, %v1696_v24 }
 0x188   : > { %v6871_v58 = vpop.eup %6870  ;;  %6882 = vrcp.f32 %v2717_v22  ;;  %v1697_v16 = vunpack.c.l.bf16 %v1576_v34  ;;  %v1698_v12 = vunpack.c.h.bf16 %v1576_v34  ;;  %v8137_v6 = vadd.f32 %v899_v49, %v7898_v36  ;;  %v988_v22 = vpop.f32.mrf.mxu0 }
 0x189   : > { %v6873_v29 = vpop.eup %6872  ;;  %6884 = vrcp.f32 %v2718_v44  ;;  %v8140_v19 = vadd.f32 %v930_v7, %v7905_v37  ;;  %v2724_v30 = vunpack.c.h.bf16 %v8129_v10  ;;  %v1715_v23 = vunpack.c.l.bf16 %v1585_v38 }
 0x18a   : > { %v8142_v8 = vpop.eup %6874  ;;  %6886 = vpow2.f32 %v1935_v50  ;;  %v1716_v26 = vunpack.c.h.bf16 %v1585_v38  ;;  %v1586_v46 = vxor.u32 2147516416, %v1506_v60  ;;  %v1515_v34 = vpack.c.bf16 %v8134_v43, %v8137_v6 }
 0x18b   : > { %v8145_v24 = vpop.eup %6876  ;;  %v8150_v49 = vadd.f32 %v901_v1, %v7898_v36  ;;  %v8153_v37 = vadd.f32 %v959_v2, %v7928_v52  ;;  %v2125_v50 = vpack.c.bf16 %v6873_v29, %v6871_v58  ;;  %6888 = vpow2.f32 %v1937_v61  ;;  %v8264_v27 = vpop.f32.mrf.mxu2 }
 0x18c   : > { %v6879_v44 = vpop.eup %6878  ;;  %v1939_v38 = vmul.f32 1.442695, %v1697_v16  ;;  %v1941_v9 = vmul.f32 1.442695, %v1698_v12  ;;  %v8159_v60 = vadd.f32 %v8096_v54, %v7928_v52  ;;  %v8162_v17 = vadd.f32 %v988_v22, %v7931_v56 }
 0x18d   : > { %v6881_v7 = vpop.eup %6880  ;;  %v1525_v36 = vpack.c.bf16 %v8140_v19, %v8150_v49  ;;  %6890 = vrcp.f32 %v2724_v30  ;;  %v1975_v1 = vmul.f32 1.442695, %v1715_v23  ;;  %v8170_v29 = vadd.f32 %v8105_v3, %v7931_v56 }
 0x18e   : > { %10683 = vst [vmem:[#allocation27_spill] sm:$0xff] %v8162_v17  ;;  %v8166_v2 = vpop.eup %6882  ;;  %v1977_v52 = vmul.f32 1.442695, %v1716_v26  ;;  %v1717_v54 = vunpack.c.l.bf16 %v1586_v46  ;;  %v1595_v61 = vxor.u32 2147516416, %v1515_v34  ;;  %v1526_v16 = vpack.c.bf16 %v8162_v17, %v8153_v37 }
 0x18f   : > { %10684 = vst [vmem:[#allocation28_spill] sm:$0xff] %v8170_v29  ;;  %v8174_v58 = vpop.eup %6884  ;;  %v2235_v22 = vunpack.c.l.bf16 %v2125_v50  ;;  %v2236_v47 = vunpack.c.h.bf16 %v2125_v50  ;;  %6892 = vpow2.f32 %v1939_v38  ;;  %v1718_v30 = vunpack.c.h.bf16 %v1586_v46 }
 0x190   : > { %v6887_v12 = vpop.eup %6886  ;;  %v2126_v23 = vpack.c.bf16 %v6881_v7, %v6879_v44  ;;  %6894 = vpow2.f32 %v1941_v9  ;;  %v1516_v56 = vpack.c.bf16 %v8170_v29, %v8159_v60  ;;  %v1605_v3 = vxor.u32 2147516416, %v1525_v36 }
 0x191   : > { %5877 = vmatmul.msk.bf16.gmra.mxu2 %vm862_vm11, %v7706_v63  ;;  %v6889_v45 = vpop.eup %6888  ;;  %v2725_v39 = vunpack.c.l.bf16 %v8129_v10  ;;  %6896 = vpow2.f32 %v1975_v1  ;;  %v1979_v26 = vmul.f32 1.442695, %v1717_v54  ;;  %v1735_v34 = vunpack.c.l.bf16 %v1595_v61  ;;  %v1058_v54 = vpop.f32.mrf.mxu3 }
 0x192   : > { %5881 = vmatmul.msk.bf16.gmra.mxu3 %vm862_vm11, %v7706_v63  ;;  %5885 = vmatmul.msk.bf16.gmra.mxu0 %vm862_vm11, %v7706_v63  ;;  %6898 = vpow2.f32 %v1977_v52  ;;  %v1606_v51 = vxor.u32 2147516416, %v1526_v16  ;;  %v2395_v57 = vadd.f32 1.0, %v2235_v22  ;;  %v2396_v50 = vadd.f32 1.0, %v2236_v47 }
 0x193   : > { %v8181_v17 = vpop.eup %6890  ;;  %v1981_v38 = vmul.f32 1.442695, %v1718_v30  ;;  %v1736_v46 = vunpack.c.h.bf16 %v1595_v61  ;;  %v2237_v44 = vunpack.c.l.bf16 %v2126_v23  ;;  %v1596_v9 = vxor.u32 2147516416, %v1516_v56 }
 0x194   : > { %v1755_v7 = vunpack.c.l.bf16 %v1605_v3  ;;  %v8184_v29 = vperm.slane %v7895_v35, 6  ;;  %6900 = vrcp.f32 %v2725_v39  ;;  %v2238_v36 = vunpack.c.h.bf16 %v2126_v23  ;;  %v1087_v23 = vpop.f32.mrf.mxu0 }
 0x195   : > { %v6893_v10 = vpop.eup %6892  ;;  %v2135_v1 = vpack.c.bf16 %v6889_v45, %v6887_v12  ;;  %v1756_v52 = vunpack.c.h.bf16 %v1605_v3  ;;  %6902 = vpow2.f32 %v1979_v26  ;;  %v2015_v61 = vmul.f32 1.442695, %v1735_v34 }
 0x196   : > { %5873 = vmatmul.msk.bf16.gmra.mxu1 %vm862_vm11, %v7706_v63  ;;  %v6895_v47 = vpop.eup %6894  ;;  %v1757_v16 = vunpack.c.l.bf16 %v1606_v51  ;;  %v8191_v22 = vperm.slane %v7895_v35, 7  ;;  %v8193_v56 = vpack.c.bf16 %v2396_v50, %v2395_v57  ;;  %6904 = vpow2.f32 %v1981_v38 }
 0x197   : > { %v6897_v30 = vpop.eup %6896  ;;  %v2017_v63 = vmul.f32 1.442695, %v1736_v46  ;;  %v1758_v39 = vunpack.c.h.bf16 %v1606_v51  ;;  %v2397_v12 = vadd.f32 1.0, %v2237_v44  ;;  %v1737_v3 = vunpack.c.l.bf16 %v1596_v9 }
 0x198   : > { %v6899_v45 = vpop.eup %6898  ;;  %v2055_v15 = vmul.f32 1.442695, %v1755_v7  ;;  %v8196_v4 = vadd.f32 %v1058_v54, %v8184_v29  ;;  %v2398_v26 = vadd.f32 1.0, %v2238_v36  ;;  %v2255_v34 = vunpack.c.l.bf16 %v2135_v1 }
 0x199   : > { %v1738_v33 = vunpack.c.h.bf16 %v1596_v9  ;;  %v2057_v59 = vmul.f32 1.442695, %v1756_v52  ;;  %v2256_v35 = vunpack.c.h.bf16 %v2135_v1  ;;  %6906 = vpow2.f32 %v2015_v61 }
 0x19a   : > { %v2059_v20 = vmul.f32 1.442695, %v1757_v16  ;;  %v8199_v57 = vadd.f32 %v1087_v23, %v8191_v22  ;;  %v8203_v51 = vpop.eup %6900  ;;  %v2136_v50 = vpack.c.bf16 %v6895_v47, %v6893_v10  ;;  %v2145_v38 = vpack.c.bf16 %v6899_v45, %v6897_v30 }
 0x19b   : > { %6908 = vpow2.f32 %v2017_v63  ;;  %v2061_v46 = vmul.f32 1.442695, %v1758_v39  ;;  %v6903_v44 = vpop.eup %6902  ;;  %v2019_v7 = vmul.f32 1.442695, %v1737_v3  ;;  %v2787_v1 = vunpack.c.h.bf16 %v8193_v56  ;;  %v8210_v3 = vpop.f32.mrf.mxu3 }
 0x19c   : > { %10685 = vst [vmem:[#allocation29_spill] sm:$0xff] %v8199_v57  ;;  %6910 = vpow2.f32 %v2055_v15  ;;  %v1458_v9 = vpack.c.bf16 %v8199_v57, %v8196_v4  ;;  %v6905_v36 = vpop.eup %6904  ;;  %v2526_v52 = vpack.c.bf16 %v2398_v26, %v2397_v12  ;;  %v2021_v54 = vmul.f32 1.442695, %v1738_v33 }
 0x19d   : > { %6912 = vpow2.f32 %v2057_v59  ;;  %v2415_v61 = vadd.f32 1.0, %v2255_v34  ;;  %v2416_v10 = vadd.f32 1.0, %v2256_v35  ;;  %v2257_v47 = vunpack.c.l.bf16 %v2136_v50 }
 0x19e   : > { %6914 = vpow2.f32 %v2059_v20  ;;  %v1538_v63 = vxor.u32 2147516416, %v1458_v9  ;;  %v2258_v16 = vunpack.c.h.bf16 %v2136_v50  ;;  %v2275_v30 = vunpack.c.l.bf16 %v2145_v38  ;;  %v8213_v50 = vpop.f32.mrf.mxu0 }
 0x19f   : > { %6916 = vpow2.f32 %v2061_v46  ;;  %v6907_v15 = vpop.eup %6906  ;;  %v2276_v39 = vunpack.c.h.bf16 %v2145_v38  ;;  %v2146_v23 = vpack.c.bf16 %v6905_v36, %v6903_v44  ;;  %v2788_v59 = vunpack.c.l.bf16 %v8193_v56  ;;  %10686 = vst [vmem:[#allocation30_spill] sm:$0xff] %v8213_v50 }
 0x1a0   : > { %6918 = vpow2.f32 %v2019_v7  ;;  %v1621_v45 = vunpack.c.l.bf16 %v1538_v63  ;;  %v1622_v12 = vunpack.c.h.bf16 %v1538_v63  ;;  %v2794_v20 = vunpack.c.h.bf16 %v2526_v52 }
 0x1a1   : > { %5878 = vmatmul.msk.bf16.gmra.mxu2 %vm862_vm11, %v7787_v53  ;;  %v6909_v33 = vpop.eup %6908  ;;  %6920 = vpow2.f32 %v2021_v54  ;;  %v2535_v34 = vpack.c.bf16 %v2416_v10, %v2415_v61  ;;  %v2795_v9 = vunpack.c.l.bf16 %v2526_v52  ;;  %v2417_v38 = vadd.f32 1.0, %v2257_v47  ;;  %v5818_v47 = vld [vmem:[%s10538_s3 + $0xe8] sm:$0xf] }
 0x1a2   : > { %5882 = vmatmul.msk.bf16.gmra.mxu3 %vm862_vm11, %v7787_v53  ;;  %5886 = vmatmul.msk.bf16.gmra.mxu0 %vm862_vm11, %v7787_v53  ;;  %v6911_v26 = vpop.eup %6910  ;;  %6922 = vrcp.f32 %v2787_v1  ;;  %v1787_v35 = vmul.f32 1.442695, %v1621_v45  ;;  %v2418_v44 = vadd.f32 1.0, %v2258_v16  ;;  %v1789_v7 = vmul.f32 1.442695, %v1622_v12 }
 0x1a3   : > { %v6913_v46 = vpop.eup %6912  ;;  %v2435_v57 = vadd.f32 1.0, %v2275_v30  ;;  %v2436_v55 = vadd.f32 1.0, %v2276_v39  ;;  %v2277_v0 = vunpack.c.l.bf16 %v2146_v23  ;;  %v2278_v1 = vunpack.c.h.bf16 %v2146_v23  ;;  %v6613_v16 = vld [vmem:[%s10538_s3 + $0x134] sm:$0xf0]  ;;  %v6602_v12 = vld [vmem:[%s10538_s3 + $0xe4] sm:$0xf] }
 0x1a4   : > { %v6915_v36 = vpop.eup %6914  ;;  %6924 = vpow2.f32 %v1787_v35  ;;  %v2155_v54 = vpack.c.bf16 %v6909_v33, %v6907_v15  ;;  %v8221_v52 = vmul.f32 %v8107_v5, %v7984_v28  ;;  %v2857_v10 = vunpack.c.h.bf16 %v2535_v34 }
 0x1a5   : > { %v6917_v56 = vpop.eup %6916  ;;  %6926 = vpow2.f32 %v1789_v7  ;;  %v2165_v63 = vpack.c.bf16 %v6913_v46, %v6911_v26  ;;  %v8231_v15 = vmul.f32 %v8109_v40, %v7989_v31  ;;  %v2858_v39 = vunpack.c.l.bf16 %v2535_v34  ;;  %v5812_v26 = vld [vmem:[%s10538_s3 + $0x130] sm:$0xf0] }
 0x1a6   : > { %5874 = vmatmul.msk.bf16.gmra.mxu1 %vm862_vm11, %v7787_v53  ;;  %v6919_v61 = vpop.eup %6918  ;;  %6928 = vrcp.f32 %v2788_v59  ;;  %v2536_v5 = vpack.c.bf16 %v2418_v44, %v2417_v38  ;;  %v8235_v45 = vpack.c.bf16 %v2436_v55, %v2435_v57  ;;  %v2437_v33 = vadd.f32 1.0, %v2277_v0  ;;  %v1063_v57 = vpop.f32.mrf.mxu3 }
 0x1a7   : > { %v6921_v30 = vpop.eup %6920  ;;  %6930 = vrcp.f32 %v2794_v20  ;;  %v2166_v59 = vpack.c.bf16 %v6917_v56, %v6915_v36  ;;  %v2438_v40 = vadd.f32 1.0, %v2278_v1  ;;  %v2295_v35 = vunpack.c.l.bf16 %v2155_v54 }
 0x1a8   : > { %v8233_v23 = vpop.eup %6922  ;;  %6932 = vrcp.f32 %v2795_v9  ;;  %v2296_v20 = vunpack.c.h.bf16 %v2155_v54  ;;  %v5819_v34 = vor.u32 %v6613_v16, %v5818_v47  ;;  %v2156_v38 = vpack.c.bf16 %v6921_v30, %v6919_v61  ;;  %v1092_v61 = vpop.f32.mrf.mxu0  ;;  %v5820_v16 = vld [vmem:[%s10538_s3 + $0x138] sm:$0xf0] }
 0x1a9   : > { %6934 = vrcp.f32 %v2857_v10  ;;  %v2315_v9 = vunpack.c.l.bf16 %v2165_v63  ;;  %v2316_v55 = vunpack.c.h.bf16 %v2165_v63  ;;  %v2864_v44 = vunpack.c.h.bf16 %v2536_v5  ;;  %v6603_v63 = vld [vmem:[%s10538_s3 + $0xec] sm:$0xf] }
 0x1aa   : > { %v6925_v46 = vpop.eup %6924  ;;  %6936 = vrcp.f32 %v2858_v39  ;;  %v2865_v7 = vunpack.c.l.bf16 %v2536_v5  ;;  %1403 = vmatpush.bf16.msra.mxu3 %v5819_v34  ;;  %v5815_v36 = vor.u32 %v6602_v12, %v5812_v26  ;;  %v2927_v1 = vunpack.c.h.bf16 %v8235_v45  ;;  %v8258_v26 = vpop.f32.mrf.mxu1 }
 0x1ab   : > { %v6927_v0 = vpop.eup %6926  ;;  %v2317_v54 = vunpack.c.l.bf16 %v2166_v59  ;;  %v2318_v47 = vunpack.c.h.bf16 %v2166_v59  ;;  %v8256_v39 = vpack.c.bf16 %v2438_v40, %v2437_v33  ;;  %v2455_v5 = vadd.f32 1.0, %v2295_v35 }
 0x1ac   : > { %v8245_v56 = vpop.eup %6928  ;;  %v2098_v10 = vpack.c.bf16 %v6927_v0, %v6925_v46  ;;  %v2456_v12 = vadd.f32 1.0, %v2296_v20  ;;  %1374 = vmatpush.bf16.msra.mxu2 %v5815_v36  ;;  %v5823_v59 = vor.u32 %v6603_v63, %v5820_v16  ;;  %v2297_v46 = vunpack.c.l.bf16 %v2156_v38 }
 0x1ad   : > { %v8254_v30 = vpop.eup %6930  ;;  %v2475_v0 = vadd.f32 1.0, %v2315_v9  ;;  %v2476_v53 = vadd.f32 1.0, %v2316_v55  ;;  %v2298_v50 = vunpack.c.h.bf16 %v2156_v38  ;;  %v8267_v40 = vadd.f32 %v1092_v61, %v8191_v22 }
 0x1ae   : > { %v8262_v34 = vpop.eup %6932  ;;  %v2181_v13 = vunpack.c.l.bf16 %v2098_v10  ;;  %v2182_v33 = vunpack.c.h.bf16 %v2098_v10  ;;  %1432 = vmatpush.bf16.msrb.mxu0 %v5823_v59  ;;  %v8270_v35 = vadd.f32 %v1063_v57, %v8184_v29  ;;  %v2928_v36 = vunpack.c.l.bf16 %v8235_v45 }
 0x1af   : > { %10687 = vst [vmem:[#allocation31_spill] sm:$0xff] %v8267_v40  ;;  %v8272_v20 = vpop.eup %6934  ;;  %v2477_v63 = vadd.f32 1.0, %v2317_v54  ;;  %v2478_v16 = vadd.f32 1.0, %v2318_v47  ;;  %6938 = vrcp.f32 %v2864_v44  ;;  %v8277_v38 = vpack.c.bf16 %v2456_v12, %v2455_v5  ;;  %v8286_v54 = vpop.f32.mrf.mxu3  ;;  %v5810_v12 = vld [vmem:[%s10538_s3 + $0xe0] sm:$0xf] }
 0x1b0   : > { %v2341_v9 = vadd.f32 1.0, %v2181_v13  ;;  %v8275_v55 = vpop.eup %6936  ;;  %v2342_v10 = vadd.f32 1.0, %v2182_v33  ;;  %v1478_v61 = vpack.c.bf16 %v8267_v40, %v8270_v35  ;;  %6940 = vrcp.f32 %v2865_v7  ;;  %10689 = vst [vmem:[#allocation33_spill] sm:$0xff] %v8286_v54 }
 0x1b1   : > { %5879 = vmatmul.msk.bf16.gmra.mxu2 %vm862_vm11, %v7808_v11  ;;  %v2934_v57 = vunpack.c.h.bf16 %v8256_v39  ;;  %v2565_v59 = vpack.c.bf16 %v2476_v53, %v2475_v0  ;;  %6942 = vrcp.f32 %v2927_v1  ;;  %v2457_v21 = vadd.f32 1.0, %v2297_v46  ;;  %v6612_v46 = vld [vmem:[%s10538_s3 + $0x12c] sm:$0xf0] }
 0x1b2   : > { %5883 = vmatmul.msk.bf16.gmra.mxu3 %vm862_vm11, %v7808_v11  ;;  %5887 = vmatmul.msk.bf16.gmra.mxu0 %vm862_vm11, %v7808_v11  ;;  %v2458_v62 = vadd.f32 1.0, %v2298_v50  ;;  %v2498_v45 = vpack.c.bf16 %v2342_v10, %v2341_v9  ;;  %v8284_v13 = vpack.c.bf16 %v8221_v52, %v8231_v15  ;;  %6944 = vrcp.f32 %v2928_v36  ;;  %v8295_v15 = vpop.f32.mrf.mxu0  ;;  %v8309_v36 = vpop.f32.mrf.mxu1 }
 0x1b3   : > { %v2566_v44 = vpack.c.bf16 %v2478_v16, %v2477_v63  ;;  %v2997_v7 = vunpack.c.h.bf16 %v8277_v38  ;;  %v1558_v53 = vxor.u32 2147516416, %v1478_v61  ;;  %v2650_v50 = vmul.f32 %v8113_v18, %v7984_v28  ;;  %10690 = vst [vmem:[#allocation34_spill] sm:$0xff] %v8295_v15 }
 0x1b4   : > { %10688 = vst [vmem:[#allocation32_spill] sm:$0xff] %v8284_v13  ;;  %v2598_v47 = vunpack.c.h.bf16 %v2498_v45  ;;  %v2599_v5 = vunpack.c.l.bf16 %v2498_v45  ;;  %v2652_v1 = vmul.f32 %v8119_v14, %v7989_v31  ;;  %6946 = vrcp.f32 %v2934_v57  ;;  %v8319_v57 = vpop.f32.mrf.mxu2 }
 0x1b5   : > { %v3067_v52 = vunpack.c.h.bf16 %v2565_v59  ;;  %v8303_v0 = vpop.eup %6938  ;;  %v8307_v18 = vmul.f32 %v8142_v8, %v7984_v28  ;;  %v2556_v33 = vpack.c.bf16 %v2458_v62, %v2457_v21  ;;  %v3068_v14 = vunpack.c.l.bf16 %v2565_v59 }
 0x1b6   : > { %5875 = vmatmul.msk.bf16.gmra.mxu1 %vm862_vm11, %v7808_v11  ;;  %6948 = vrcp.f32 %v2598_v47  ;;  %v8311_v63 = vpop.eup %6940  ;;  %v2720_v16 = vmul.f32 %v8166_v2, %v7984_v28  ;;  %v2722_v9 = vmul.f32 %v8174_v58, %v7989_v31  ;;  %v3074_v10 = vunpack.c.h.bf16 %v2566_v44 }
 0x1b7   : > { %6950 = vrcp.f32 %v2599_v5  ;;  %v8317_v61 = vpop.eup %6942  ;;  %v3075_v8 = vunpack.c.l.bf16 %v2566_v44  ;;  %v1661_v21 = vunpack.c.l.bf16 %v1558_v53  ;;  %v5811_v62 = vor.u32 %v6612_v46, %v5810_v12  ;;  %v7474_v44 = vld [vmem:[%s10539_s4] sm:$0xff]  ;;  %v1068_v40 = vpop.f32.mrf.mxu3 }
 0x1b8   : > { %6952 = vrcp.f32 %v2997_v7  ;;  %v8321_v59 = vpop.eup %6944  ;;  %v8323_v45 = vpack.c.bf16 %v2650_v50, %v2652_v1  ;;  %v2998_v47 = vunpack.c.l.bf16 %v8277_v38  ;;  %v1662_v2 = vunpack.c.h.bf16 %v1558_v53 }
 0x1b9   : > { %6954 = vrcp.f32 %v3067_v52  ;;  %v2659_v58 = vmul.f32 %v8145_v24, %v7989_v31  ;;  %v3004_v5 = vunpack.c.h.bf16 %v2556_v33  ;;  %v8331_v7 = vperm.slane %v7474_v44, 5  ;;  %1345 = vmatpush.bf16.msra.mxu1 %v5811_v62 }
 0x1ba   : > { %6956 = vrcp.f32 %v3068_v14  ;;  %v8333_v12 = vpop.eup %6946  ;;  %v8335_v50 = vpack.c.bf16 %v2720_v16, %v2722_v9  ;;  %v2790_v38 = vmul.f32 %v8233_v23, %v7984_v28  ;;  %v3005_v53 = vunpack.c.l.bf16 %v2556_v33 }
 0x1bb   : > { %6958 = vrcp.f32 %v3074_v10  ;;  %v2792_v24 = vmul.f32 %v8245_v56, %v7989_v31  ;;  %v8341_v52 = vperm.slane %v7474_v44, 4  ;;  %v1867_v46 = vmul.f32 1.442695, %v1661_v21  ;;  %v8364_v44 = vpop.f32.mrf.mxu1 }
 0x1bc   : > { %v6949_v1 = vpop.eup %6948  ;;  %6960 = vrcp.f32 %v3075_v8  ;;  %v2797_v62 = vmul.f32 %v8254_v30, %v7984_v28  ;;  %v1869_v9 = vmul.f32 1.442695, %v1662_v2  ;;  %v2935_v33 = vunpack.c.l.bf16 %v8256_v39  ;;  %v1097_v2 = vpop.f32.mrf.mxu0 }
 0x1bd   : > { %v6951_v14 = vpop.eup %6950  ;;  %6962 = vrcp.f32 %v2998_v47  ;;  %v2601_v16 = vmul.f32 %v6949_v1, %v7984_v28  ;;  %v8349_v56 = vadd.f32 %v8264_v27, %v8331_v7  ;;  %v2799_v21 = vmul.f32 %v8262_v34, %v7989_v31 }
 0x1be   : > { %v6953_v23 = vpop.eup %6952  ;;  %6964 = vrcp.f32 %v3004_v5  ;;  %v2603_v10 = vmul.f32 %v6951_v14, %v7989_v31  ;;  %v2860_v30 = vmul.f32 %v8272_v20, %v7984_v28  ;;  %v2862_v47 = vmul.f32 %v8275_v55, %v7989_v31 }
 0x1bf   : > { %10691 = vst [vmem:[#allocation35_spill] sm:$0xff] %v8349_v56  ;;  %v6955_v8 = vpop.eup %6954  ;;  %6966 = vrcp.f32 %v3005_v53  ;;  %v8360_v5 = vadd.f32 %v8258_v26, %v8341_v52  ;;  %v8367_v34 = vadd.f32 %v1068_v40, %v8184_v29  ;;  %v8372_v53 = vpack.c.bf16 %v8307_v18, %v2659_v58 }
 0x1c0   : > { %v6957_v39 = vpop.eup %6956  ;;  %v8362_v27 = vpack.c.bf16 %v2601_v16, %v2603_v10  ;;  %6968 = vpow2.f32 %v1867_v46  ;;  %v8377_v46 = vpop.f32.mrf.mxu2  ;;  %v8380_v40 = vadd.f32 %v1097_v2, %v8191_v22  ;;  %v8385_v18 = vmul.f32 %v8181_v17, %v7984_v28 }
 0x1c1   : > { %10692 = vst [vmem:[#allocation36_spill] sm:$0xff] %v8360_v5  ;;  %v6959_v1 = vpop.eup %6958  ;;  %6970 = vpow2.f32 %v1869_v9  ;;  %v1457_v26 = vpack.c.bf16 %v8349_v56, %v8360_v5  ;;  %v8389_v58 = vmul.f32 %v8203_v51, %v7989_v31  ;;  %v8391_v9 = vpack.c.bf16 %v2790_v38, %v2792_v24 }
 0x1c2   : > { %10693 = vst [vmem:[#allocation37_spill] sm:$0xff] %v8362_v27  ;;  %v6961_v14 = vpop.eup %6960  ;;  %6972 = vrcp.f32 %v2935_v33  ;;  %v3143_v16 = vunpack.c.l.bf16 %v8362_v27  ;;  %v8393_v55 = vpack.c.bf16 %v2797_v62, %v2799_v21  ;;  %v8395_v27 = vpack.c.bf16 %v2860_v30, %v2862_v47 }
 0x1c3   : > { %10694 = vst [vmem:[#allocation38_spill] sm:$0xff] %v8367_v34  ;;  %v6963_v10 = vpop.eup %6962  ;;  %v1498_v20 = vpack.c.bf16 %v8380_v40, %v8367_v34  ;;  %v3070_v17 = vmul.f32 %v6955_v8, %v7984_v28  ;;  %v3072_v56 = vmul.f32 %v6957_v39, %v7989_v31  ;;  %v3077_v51 = vmul.f32 %v6959_v1, %v7984_v28  ;;  %v8433_v15 = vpop.f32.mrf.mxu1 }
 0x1c4   : > { %10695 = vst [vmem:[#allocation39_spill] sm:$0xff] %v8380_v40  ;;  %v6965_v33 = vpop.eup %6964  ;;  %v8398_v2 = vmul.f32 %v3143_v16, %v8196_v4  ;;  %v3079_v38 = vmul.f32 %v6961_v14, %v7989_v31  ;;  %v2867_v62 = vmul.f32 %v8303_v0, %v7984_v28  ;;  %v8408_v21 = vxor.u32 2147516416, %v1457_v26 }
 0x1c5   : > { %v6967_v5 = vpop.eup %6966  ;;  %v8412_v4 = vadd.f32 %v8319_v57, %v8331_v7  ;;  %v1578_v30 = vxor.u32 2147516416, %v1498_v20  ;;  %v2869_v8 = vmul.f32 %v8311_v63, %v7989_v31  ;;  %v2930_v39 = vmul.f32 %v8317_v61, %v7984_v28  ;;  %10700 = vst [vmem:[#allocation44_spill] sm:$0xff] %v8433_v15 }
 0x1c6   : > { %10696 = vst [vmem:[#allocation40_spill] sm:$0xff] %v8398_v2  ;;  %v6969_v24 = vpop.eup %6968  ;;  %v2932_v1 = vmul.f32 %v8321_v59, %v7989_v31  ;;  %v8422_v0 = vadd.f32 %v8309_v36, %v8341_v52  ;;  %v3000_v26 = vmul.f32 %v6953_v23, %v7984_v28  ;;  %v3002_v57 = vmul.f32 %v6963_v10, %v7989_v31 }
 0x1c7   : > { %10697 = vst [vmem:[#allocation41_spill] sm:$0xff] %v8412_v4  ;;  %v6971_v47 = vpop.eup %6970  ;;  %v3007_v20 = vmul.f32 %v6965_v33, %v7984_v28  ;;  %v3009_v63 = vmul.f32 %v6967_v5, %v7989_v31  ;;  %v3073_v2 = vpack.c.bf16 %v3070_v17, %v3072_v56  ;;  %v8428_v40 = vpack.c.bf16 %v3077_v51, %v3079_v38 }
 0x1c8   : > { %10698 = vst [vmem:[#allocation42_spill] sm:$0xff] %v8422_v0  ;;  %v6973_v14 = vpop.eup %6972  ;;  %v2118_v16 = vpack.c.bf16 %v6971_v47, %v6969_v24  ;;  %v1701_v61 = vunpack.c.l.bf16 %v1578_v30  ;;  %v1619_v59 = vunpack.c.l.bf16 %v8408_v21  ;;  %v1467_v36 = vpack.c.bf16 %v8412_v4, %v8422_v0  ;;  %v8441_v38 = vpop.f32.mrf.mxu2  ;;  %v5730_v47 = vld [vmem:[%s10538_s3 + $0x40] sm:$0xf] }
 0x1c9   : > { %10699 = vst [vmem:[#allocation43_spill] sm:$0xff] %v8428_v40  ;;  %v8436_v10 = vpack.c.bf16 %v2930_v39, %v2932_v1  ;;  %v2937_v5 = vmul.f32 %v8333_v12, %v7984_v28  ;;  %v2939_v56 = vmul.f32 %v6973_v14, %v7989_v31  ;;  %v3003_v33 = vpack.c.bf16 %v3000_v26, %v3002_v57  ;;  %v6592_v39 = vld [vmem:[%s10538_s3 + $0x8c] sm:$0xf0] }
 0x1ca   : > { %v2221_v11 = vunpack.c.l.bf16 %v2118_v16  ;;  %v2222_v34 = vunpack.c.h.bf16 %v2118_v16  ;;  %v1702_v24 = vunpack.c.h.bf16 %v1578_v30  ;;  %v8449_v1 = vpack.c.bf16 %v3007_v20, %v3009_v63  ;;  %v6582_v30 = vld [vmem:[%s10538_s3 + $0x44] sm:$0xf] }
 0x1cb   : > { %v3278_v16 = vunpack.c.h.bf16 %v3073_v2  ;;  %v3279_v12 = vunpack.c.l.bf16 %v8428_v40  ;;  %v1947_v14 = vmul.f32 1.442695, %v1701_v61  ;;  %v8452_v26 = vpack.c.bf16 %v2867_v62, %v2869_v8  ;;  %v5732_v61 = vld [vmem:[%s10538_s3 + $0x90] sm:$0xf0]  ;;  %v5738_v62 = vld [vmem:[%s10538_s3 + $0x48] sm:$0xf] }
 0x1cc   : > { %v2381_v17 = vadd.f32 1.0, %v2221_v11  ;;  %v2382_v51 = vadd.f32 1.0, %v2222_v34  ;;  %v1783_v11 = vmul.f32 1.442695, %v1619_v59  ;;  %v1547_v34 = vxor.u32 2147516416, %v1467_v36 }
 0x1cd   : > { %v3238_v23 = vunpack.c.h.bf16 %v8436_v10  ;;  %v8458_v0 = vpack.c.bf16 %v2937_v5, %v2939_v56  ;;  %v1620_v20 = vunpack.c.h.bf16 %v8408_v21  ;;  %v5731_v63 = vor.u32 %v6592_v39, %v5730_v47  ;;  %v6593_v8 = vld [vmem:[%s10538_s3 + $0x94] sm:$0xf0] }
 0x1ce   : > { %v2518_v57 = vpack.c.bf16 %v2382_v51, %v2381_v17  ;;  %v3258_v59 = vunpack.c.h.bf16 %v3003_v33  ;;  %v1949_v5 = vmul.f32 1.442695, %v1702_v24  ;;  %v3259_v56 = vunpack.c.l.bf16 %v8449_v1 }
 0x1cf   : > { %v3438_v21 = vmul.f32 %v3278_v16, %v8140_v19  ;;  %v3439_v51 = vmul.f32 %v3279_v12, %v8153_v37  ;;  %6974 = vpow2.f32 %v1947_v14  ;;  %1346 = vmatpush.bf16.msra.mxu1 %v5731_v63  ;;  %v5735_v47 = vor.u32 %v6582_v30, %v5732_v61 }
 0x1d0   : > { %v2738_v36 = vunpack.c.h.bf16 %v2518_v57  ;;  %v2739_v17 = vunpack.c.l.bf16 %v2518_v57  ;;  %v5739_v39 = vor.u32 %v6593_v8, %v5738_v62  ;;  %v3277_v4 = vunpack.c.l.bf16 %v3073_v2  ;;  %v8474_v57 = vpop.f32.mrf.mxu1  ;;  %v8486_v30 = vpop.f32.mrf.mxu2 }
 0x1d1   : > { %v3239_v40 = vunpack.c.l.bf16 %v8458_v0  ;;  %v1785_v54 = vmul.f32 1.442695, %v1620_v20  ;;  %v1639_v13 = vunpack.c.l.bf16 %v1547_v34  ;;  %v1640_v15 = vunpack.c.h.bf16 %v1547_v34  ;;  %1375 = vmatpush.bf16.msra.mxu2 %v5735_v47 }
 0x1d2   : > { %6976 = vrcp.f32 %v2738_v36  ;;  %1404 = vmatpush.bf16.msra.mxu3 %v5739_v39  ;;  %v3437_v19 = vmul.f32 %v3277_v4, %v8150_v49  ;;  %v3257_v37 = vunpack.c.l.bf16 %v3003_v33  ;;  %v8479_v24 = vpack.c.bf16 %v8385_v18, %v8389_v58  ;;  %5888 = vmatmul.msk.bf16.vlgmr.msra.gmra.mxu1 %vm862_vm11, %v7661_v25  ;;  %v10707_v36 = vld [vmem:[#allocation30_spill] sm:$0xff] }
 0x1d3   : > { %6978 = vrcp.f32 %v2739_v17  ;;  %v3418_v2 = vmul.f32 %v3258_v59, %v8134_v43  ;;  %v3419_v16 = vmul.f32 %v3259_v56, %v8159_v60  ;;  %v3237_v12 = vunpack.c.l.bf16 %v8436_v10  ;;  %v10709_v56 = vld [vmem:[#allocation20_spill] sm:$0xff] }
 0x1d4   : > { %6980 = vpow2.f32 %v1949_v5  ;;  %v3198_v14 = vunpack.c.h.bf16 %v8391_v9  ;;  %v3219_v34 = vunpack.c.l.bf16 %v8452_v26  ;;  %3480 = vmatpush.msrb.mxu1 %v3437_v19  ;;  %v3417_v49 = vmul.f32 %v3257_v37, %v8137_v6  ;;  %5892 = vmatmul.msk.bf16.vlgmr.msra.gmra.mxu2 %vm862_vm11, %v7661_v25  ;;  %v10711_v19 = vld [vmem:[#allocation15_spill] sm:$0xff] }
 0x1d5   : > { %3500 = vmatpush.msrb.mxu2 %v3438_v21  ;;  %6982 = vpow2.f32 %v1783_v11  ;;  %v6975_v18 = vpop.eup %6974  ;;  %v3398_v58 = vmul.f32 %v3238_v23, %v8094_v48  ;;  %v3399_v43 = vmul.f32 %v3239_v40, %v8117_v32  ;;  %v1823_v60 = vmul.f32 1.442695, %v1639_v13  ;;  %5896 = vmatmul.msk.bf16.vlgmr.msra.gmra.mxu3 %vm862_vm11, %v7661_v25 }
 0x1d6   : > { %3520 = vmatpush.msrb.mxu3 %v3439_v51  ;;  %6984 = vpow2.f32 %v1785_v54  ;;  %v10701_v10 = vunpack.c.h.bf16 %v8335_v50  ;;  %v3199_v11 = vunpack.c.l.bf16 %v8393_v55  ;;  %v10702_v20 = vunpack.c.h.bf16 %v8395_v27  ;;  %3481 = vmatpush.msrb.mxu1 %v3417_v49  ;;  %v10704_v54 = vld [vmem:[#allocation25_spill] sm:$0xff] }
 0x1d7   : > { %3501 = vmatpush.msrb.mxu2 %v3418_v2  ;;  %v1825_v63 = vmul.f32 1.442695, %v1640_v15  ;;  %v3179_v32 = vunpack.c.l.bf16 %v8479_v24  ;;  %v8503_v13 = vadd.f32 %v8210_v3, %v8184_v29  ;;  %v3397_v40 = vmul.f32 %v3237_v12, %v10704_v54  ;;  %v10705_v15 = vld [vmem:[#allocation23_spill] sm:$0xff]  ;;  %v10706_v3 = vld [vmem:[#allocation18_spill] sm:$0xff]  ;;  %v10718_v54 = vld [vmem:[#allocation32_spill] sm:$0xff] }
 0x1d8   : > { %3521 = vmatpush.msrb.mxu3 %v3419_v16  ;;  %v6977_v4 = vpop.eup %6976  ;;  %v3338_v33 = vmul.f32 %v10701_v10, %v7994_v42  ;;  %v3378_v6 = vmul.f32 %v10702_v20, %v8062_v41  ;;  %v3159_v41 = vunpack.c.l.bf16 %v8372_v53  ;;  %v3379_v61 = vmul.f32 %v3219_v34, %v10705_v15  ;;  %v8540_v49 = vpop.f32.mrf.mxu1 }
 0x1d9   : > { %v6979_v48 = vpop.eup %6978  ;;  %10703 = vst [vmem:[#allocation45_spill] sm:$0xff] %v8503_v13  ;;  %v2741_v42 = vmul.f32 %v6977_v4, %v7984_v28  ;;  %3502 = vmatpush.msrb.mxu2 %v3398_v58  ;;  %v8511_v62 = vadd.f32 %v8377_v46, %v8331_v7  ;;  %v3358_v59 = vmul.f32 %v3198_v14, %v10706_v3  ;;  %6986 = vpow2.f32 %v1823_v60  ;;  %v10712_v58 = vld [vmem:[#allocation9_spill] sm:$0xff]  ;;  %v10720_v3 = vld [vmem:[#allocation22_spill] sm:$0xff] }
 0x1da   : > { %3522 = vmatpush.msrb.mxu3 %v3399_v43  ;;  %v6981_v23 = vpop.eup %6980  ;;  %v2743_v8 = vmul.f32 %v6979_v48, %v7989_v31  ;;  %v8521_v17 = vadd.f32 %v10707_v36, %v8191_v22  ;;  %3482 = vmatpush.msrb.mxu1 %v3397_v40  ;;  %v3359_v21 = vmul.f32 %v3199_v11, %v10709_v56  ;;  %6988 = vpow2.f32 %v1825_v63  ;;  %v10714_v11 = vld [vmem:[#allocation11_spill] sm:$0xff]  ;;  %v10721_v56 = vld [vmem:[#allocation17_spill] sm:$0xff] }
 0x1db   : > { %v2138_v5 = vpack.c.bf16 %v6981_v23, %v6975_v18  ;;  %3503 = vmatpush.msrb.mxu2 %v3378_v6  ;;  %v6983_v46 = vpop.eup %6982  ;;  %v8526_v51 = vadd.f32 %v8364_v44, %v8341_v52  ;;  %v3339_v37 = vmul.f32 %v3179_v32, %v10711_v19  ;;  %v8538_v44 = vadd.f32 %v8441_v38, %v8331_v7  ;;  %v10716_v38 = vld [vmem:[#allocation44_spill] sm:$0xff] }
 0x1dc   : > { %10708 = vst [vmem:[#allocation25_spill] sm:$0xff] %v8521_v17  ;;  %v8528_v47 = vpack.c.bf16 %v2741_v42, %v2743_v8  ;;  %3523 = vmatpush.msrb.mxu3 %v3379_v61  ;;  %v6985_v39 = vpop.eup %6984  ;;  %v1468_v2 = vpack.c.bf16 %v8521_v17, %v8503_v13  ;;  %v3217_v18 = vunpack.c.l.bf16 %v8395_v27  ;;  %v10713_v43 = vunpack.c.h.bf16 %v8323_v45  ;;  %v1041_v27 = vpop.f32.mrf.mxu2  ;;  %v10717_v42 = vld [vmem:[#allocation7_spill] sm:$0xff] }
 0x1dd   : > { %v2261_v16 = vunpack.c.l.bf16 %v2138_v5  ;;  %v2262_v12 = vunpack.c.h.bf16 %v2138_v5  ;;  %3504 = vmatpush.msrb.mxu2 %v3358_v59  ;;  %v1477_v14 = vpack.c.bf16 %v8511_v62, %v8526_v51  ;;  %v3319_v20 = vmul.f32 %v3159_v41, %v10714_v11  ;;  %v10724_v11 = vld [vmem:[#allocation3_spill] sm:$0xff] }
 0x1de   : > { %10710 = vst [vmem:[#allocation23_spill] sm:$0xff] %v8528_v47  ;;  %v3183_v34 = vunpack.c.l.bf16 %v8528_v47  ;;  %3524 = vmatpush.msrb.mxu3 %v3359_v21  ;;  %v3318_v60 = vmul.f32 %v10713_v43, %v10712_v58  ;;  %v8547_v6 = vpack.c.bf16 %v6985_v39, %v6983_v46  ;;  %v8554_v48 = vadd.f32 %v10716_v38, %v8341_v52 }
 0x1df   : > { %v2421_v4 = vadd.f32 1.0, %v2261_v16  ;;  %v2422_v10 = vadd.f32 1.0, %v2262_v12  ;;  %3505 = vmatpush.msrb.mxu2 %v3338_v33  ;;  %v6987_v32 = vpop.eup %6986  ;;  %v10719_v40 = vunpack.c.l.bf16 %v10718_v54  ;;  %v8561_v33 = vadd.f32 %v8486_v30, %v8331_v7  ;;  %v10722_v12 = vld [vmem:[#allocation19_spill] sm:$0xff] }
 0x1e0   : > { %v8550_v63 = vmul.f32 %v3183_v34, %v8270_v35  ;;  %3525 = vmatpush.msrb.mxu3 %v3339_v37  ;;  %v6989_v15 = vpop.eup %6988  ;;  %v8563_v35 = vxor.u32 2147516416, %v1468_v2  ;;  %v1557_v61 = vxor.u32 2147516416, %v1477_v14  ;;  %v1487_v8 = vpack.c.bf16 %v8538_v44, %v8554_v48 }
 0x1e1   : > { %v3299_v23 = vmul.f32 %v10719_v40, %v10717_v42  ;;  %v2538_v41 = vpack.c.bf16 %v2422_v10, %v2421_v4  ;;  %3506 = vmatpush.msrb.mxu2 %v3318_v60  ;;  %v3377_v59 = vmul.f32 %v3217_v18, %v10720_v3  ;;  %v8570_v36 = vadd.f32 %v8474_v57, %v8341_v52  ;;  %v1015_v60 = vpop.f32.mrf.mxu1  ;;  %v10723_v4 = vld [vmem:[#allocation14_spill] sm:$0xff] }
 0x1e2   : > { %10715 = vst [vmem:[#allocation18_spill] sm:$0xff] %v8550_v63  ;;  %3526 = vmatpush.msrb.mxu3 %v3319_v20  ;;  %v3197_v30 = vunpack.c.l.bf16 %v8391_v9  ;;  %v2179_v21 = vunpack.c.l.bf16 %v8547_v6  ;;  %v2107_v39 = vpack.c.bf16 %v6989_v15, %v6987_v32  ;;  %v3177_v37 = vunpack.c.l.bf16 %v8335_v50  ;;  %v10725_v32 = vld [vmem:[#allocation13_spill] sm:$0xff]  ;;  %5889 = vmatmul.msk.bf16.gmra.mxu1 %vm862_vm11, %v10724_v11 }
 0x1e3   : > { %v2878_v5 = vunpack.c.h.bf16 %v2538_v41  ;;  %v2879_v46 = vunpack.c.l.bf16 %v2538_v41  ;;  %3507 = vmatpush.msrb.mxu2 %v10721_v56  ;;  %3483 = vmatpush.msrb.mxu1 %v3377_v59  ;;  %v1497_v19 = vpack.c.bf16 %v8561_v33, %v8570_v36  ;;  %v1659_v2 = vunpack.c.l.bf16 %v1557_v61  ;;  %v5740_v41 = vld [vmem:[%s10538_s3 + $0x98] sm:$0xf0] }
 0x1e4   : > { %3527 = vmatpush.msrb.mxu3 %v3299_v23  ;;  %v1567_v57 = vxor.u32 2147516416, %v1487_v8  ;;  %v1641_v16 = vunpack.c.l.bf16 %v8563_v35  ;;  %v1642_v9 = vunpack.c.h.bf16 %v8563_v35  ;;  %v3357_v14 = vmul.f32 %v3197_v30, %v10722_v12  ;;  %5893 = vmatmul.msk.bf16.gmra.mxu2 %vm862_vm11, %v10724_v11  ;;  %v1044_v15 = vpop.f32.mrf.mxu2 }
 0x1e5   : > { %6990 = vrcp.f32 %v2878_v5  ;;  %v3157_v34 = vunpack.c.l.bf16 %v8323_v45  ;;  %v2180_v18 = vunpack.c.h.bf16 %v8547_v6  ;;  %v2339_v58 = vadd.f32 1.0, %v2179_v21  ;;  %v6583_v6 = vld [vmem:[%s10538_s3 + $0x4c] sm:$0xf]  ;;  %5897 = vmatmul.msk.bf16.gmra.mxu3 %vm862_vm11, %v10724_v11 }
 0x1e6   : > { %6992 = vrcp.f32 %v2879_v46  ;;  %v1660_v43 = vunpack.c.h.bf16 %v1557_v61  ;;  %v3137_v10 = vunpack.c.l.bf16 %v10723_v4  ;;  %v2199_v50 = vunpack.c.l.bf16 %v2107_v39  ;;  %3484 = vmatpush.msrb.mxu1 %v3357_v14  ;;  %v10726_v61 = vld [vmem:[#allocation6_spill] sm:$0xff]  ;;  %v8616_v4 = vpop.f32.mrf.mxu3 }
 0x1e7   : > { %v2200_v20 = vunpack.c.h.bf16 %v2107_v39  ;;  %v1577_v38 = vxor.u32 2147516416, %v1497_v19  ;;  %v3337_v42 = vmul.f32 %v3177_v37, %v10725_v32  ;;  %v1863_v40 = vmul.f32 1.442695, %v1659_v2  ;;  %v10727_v46 = vld [vmem:[#allocation10_spill] sm:$0xff] }
 0x1e8   : > { %v1679_v23 = vunpack.c.l.bf16 %v1567_v57  ;;  %v8588_v45 = vadd.f32 %v1041_v27, %v8331_v7  ;;  %v3297_v8 = vmul.f32 %v3137_v10, %v10726_v61  ;;  %v8601_v27 = vpop.f32.mrf.mxu0  ;;  %v8604_v59 = vadd.f32 %v1015_v60, %v8341_v52 }
 0x1e9   : > { %3485 = vmatpush.msrb.mxu1 %v3337_v42  ;;  %v5743_v5 = vor.u32 %v6583_v6, %v5740_v41  ;;  %v3317_v30 = vmul.f32 %v3157_v34, %v10727_v46  ;;  %v8608_v56 = vadd.f32 %v1044_v15, %v8331_v7  ;;  %v1865_v39 = vmul.f32 1.442695, %v1660_v43  ;;  %v10729_v41 = vld [vmem:[#allocation33_spill] sm:$0xff]  ;;  %v10733_v46 = vld [vmem:[#allocation38_spill] sm:$0xff]  ;;  %v1017_v17 = vpop.f32.mrf.mxu1 }
 0x1ea   : > { %v1680_v19 = vunpack.c.h.bf16 %v1567_v57  ;;  %v8613_v2 = vadd.f32 %v8540_v49, %v8341_v52  ;;  %v2340_v12 = vadd.f32 1.0, %v2180_v18  ;;  %v1699_v14 = vunpack.c.l.bf16 %v1577_v38 }
 0x1eb   : > { %v6991_v3 = vpop.eup %6990  ;;  %1433 = vmatpush.bf16.msrb.mxu0 %v5743_v5  ;;  %3486 = vmatpush.msrb.mxu1 %v3317_v30  ;;  %v1517_v34 = vpack.c.bf16 %v8608_v56, %v8604_v59  ;;  %v2359_v10 = vadd.f32 1.0, %v2199_v50  ;;  %v1827_v43 = vmul.f32 1.442695, %v1641_v16  ;;  %v1700_v57 = vunpack.c.h.bf16 %v1577_v38 }
 0x1ec   : > { %v6993_v21 = vpop.eup %6992  ;;  %v2881_v37 = vmul.f32 %v6991_v3, %v7984_v28  ;;  %v1507_v32 = vpack.c.bf16 %v8588_v45, %v8613_v2  ;;  %v2360_v42 = vadd.f32 1.0, %v2200_v20  ;;  %6994 = vpow2.f32 %v1863_v40  ;;  %v10731_v20 = vld [vmem:[#allocation34_spill] sm:$0xff] }
 0x1ed   : > { %v2883_v60 = vmul.f32 %v6993_v21, %v7989_v31  ;;  %v1903_v49 = vmul.f32 1.442695, %v1679_v23  ;;  %3487 = vmatpush.msrb.mxu1 %v3297_v8  ;;  %6996 = vpow2.f32 %v1865_v39  ;;  %v1905_v6 = vmul.f32 1.442695, %v1680_v19 }
 0x1ee   : > { %v8626_v15 = vadd.f32 %v10729_v41, %v8184_v29  ;;  %v1597_v61 = vxor.u32 2147516416, %v1517_v34  ;;  %5900 = vmatmul.msk.bf16.vlgmr.msrb.gmra.mxu0 %vm862_vm11, %v7661_v25  ;;  %v2497_v16 = vpack.c.bf16 %v2340_v12, %v2339_v58  ;;  %v1943_v50 = vmul.f32 1.442695, %v1699_v14  ;;  %v1073_v34 = vpop.f32.mrf.mxu3 }
 0x1ef   : > { %v8622_v18 = vpack.c.bf16 %v2881_v37, %v2883_v60  ;;  %6998 = vpow2.f32 %v1827_v43  ;;  %v8633_v40 = vadd.f32 %v10731_v20, %v8191_v22  ;;  %v1945_v23 = vmul.f32 1.442695, %v1700_v57 }
 0x1f0   : > { %10730 = vst [vmem:[#allocation20_spill] sm:$0xff] %v8626_v15  ;;  %v1587_v8 = vxor.u32 2147516416, %v1507_v32  ;;  %v8635_v3 = vpack.c.bf16 %v2360_v42, %v2359_v10  ;;  %v1829_v5 = vmul.f32 1.442695, %v1642_v9  ;;  %7000 = vpow2.f32 %v1903_v49  ;;  %v1102_v19 = vpop.f32.mrf.mxu0  ;;  %v10735_v49 = vld [vmem:[#allocation4_spill] sm:$0xff] }
 0x1f1   : > { %10728 = vst [vmem:[#allocation30_spill] sm:$0xff] %v8622_v18  ;;  %v3223_v38 = vunpack.c.l.bf16 %v8622_v18  ;;  %7002 = vpow2.f32 %v1905_v6  ;;  %v1488_v25 = vpack.c.bf16 %v8633_v40, %v8626_v15  ;;  %v1739_v58 = vunpack.c.l.bf16 %v1597_v61 }
 0x1f2   : > { %10732 = vst [vmem:[#allocation15_spill] sm:$0xff] %v8633_v40  ;;  %v6995_v21 = vpop.eup %6994  ;;  %v2591_v39 = vunpack.c.h.bf16 %v2497_v16  ;;  %7004 = vpow2.f32 %v1943_v50  ;;  %v1740_v37 = vunpack.c.h.bf16 %v1597_v61  ;;  %v2592_v14 = vunpack.c.l.bf16 %v2497_v16  ;;  %5890 = vmatmul.msk.bf16.gmra.mxu1 %vm862_vm11, %v10735_v49 }
 0x1f3   : > { %v8640_v30 = vmul.f32 %v3223_v38, %v10733_v46  ;;  %v6997_v12 = vpop.eup %6996  ;;  %7006 = vpow2.f32 %v1945_v23  ;;  %v1719_v60 = vunpack.c.l.bf16 %v1587_v8  ;;  %v2661_v35 = vunpack.c.h.bf16 %v8635_v3 }
 0x1f4   : > { %7008 = vpow2.f32 %v1829_v5  ;;  %v1720_v9 = vunpack.c.h.bf16 %v1587_v8  ;;  %v1568_v43 = vxor.u32 2147516416, %v1488_v25  ;;  %v8646_v57 = vadd.f32 %v1102_v19, %v8191_v22  ;;  %5894 = vmatmul.msk.bf16.gmra.mxu2 %vm862_vm11, %v10735_v49 }
 0x1f5   : > { %10734 = vst [vmem:[#allocation9_spill] sm:$0xff] %v8640_v30  ;;  %v6999_v10 = vpop.eup %6998  ;;  %v2023_v32 = vmul.f32 1.442695, %v1739_v58  ;;  %v8649_v42 = vadd.f32 %v1073_v34, %v8184_v29  ;;  %7010 = vrcp.f32 %v2591_v39  ;;  %v2117_v41 = vpack.c.bf16 %v6997_v12, %v6995_v21  ;;  %5898 = vmatmul.msk.bf16.gmra.mxu3 %vm862_vm11, %v10735_v49 }
 0x1f6   : > { %v7001_v6 = vpop.eup %7000  ;;  %v2025_v61 = vmul.f32 1.442695, %v1740_v37  ;;  %7012 = vrcp.f32 %v2592_v14  ;;  %v1983_v50 = vmul.f32 1.442695, %v1719_v60  ;;  %v1985_v23 = vmul.f32 1.442695, %v1720_v9 }
 0x1f7   : > { %v7003_v16 = vpop.eup %7002  ;;  %v1518_v38 = vpack.c.bf16 %v8646_v57, %v8649_v42  ;;  %7014 = vrcp.f32 %v2661_v35  ;;  %v2662_v5 = vunpack.c.l.bf16 %v8635_v3  ;;  %v1681_v46 = vunpack.c.l.bf16 %v1568_v43 }
 0x1f8   : > { %v7005_v20 = vpop.eup %7004  ;;  %7016 = vpow2.f32 %v2023_v32  ;;  %v2219_v21 = vunpack.c.l.bf16 %v2117_v41  ;;  %v1682_v39 = vunpack.c.h.bf16 %v1568_v43  ;;  %v8662_v19 = vadd.f32 %v8616_v4, %v8184_v29  ;;  %v10737_v4 = vld [vmem:[#allocation43_spill] sm:$0xff] }
 0x1f9   : > { %v7007_v8 = vpop.eup %7006  ;;  %v1598_v25 = vxor.u32 2147516416, %v1518_v38  ;;  %7018 = vpow2.f32 %v2025_v61  ;;  %v2220_v37 = vunpack.c.h.bf16 %v2117_v41  ;;  %v2127_v35 = vpack.c.bf16 %v7003_v16, %v7001_v6 }
 0x1fa   : > { %v7009_v58 = vpop.eup %7008  ;;  %7020 = vpow2.f32 %v1983_v50  ;;  %v2137_v9 = vpack.c.bf16 %v7007_v8, %v7005_v20  ;;  %v8668_v3 = vadd.f32 %v8601_v27, %v8191_v22  ;;  %v3280_v38 = vunpack.c.h.bf16 %v10737_v4 }
 0x1fb   : > { %v1741_v12 = vunpack.c.l.bf16 %v1598_v25  ;;  %v1742_v14 = vunpack.c.h.bf16 %v1598_v25  ;;  %v8664_v60 = vpop.eup %7010  ;;  %7022 = vpow2.f32 %v1985_v23  ;;  %v3260_v41 = vunpack.c.h.bf16 %v8449_v1  ;;  %v10738_v23 = vld [vmem:[#allocation27_spill] sm:$0xff] }
 0x1fc   : > { %10736 = vst [vmem:[#allocation11_spill] sm:$0xff] %v8668_v3  ;;  %v8670_v34 = vpop.eup %7012  ;;  %7024 = vrcp.f32 %v2662_v5  ;;  %v8678_v6 = vpack.c.bf16 %v7009_v58, %v6999_v10  ;;  %v1907_v16 = vmul.f32 1.442695, %v1681_v46  ;;  %v1508_v27 = vpack.c.bf16 %v8668_v3, %v8662_v19  ;;  %v1046_v46 = vpop.f32.mrf.mxu2  ;;  %v10739_v58 = vld [vmem:[#allocation28_spill] sm:$0xff] }
 0x1fd   : > { %v2027_v43 = vmul.f32 1.442695, %v1741_v12  ;;  %v2029_v32 = vmul.f32 1.442695, %v1742_v14  ;;  %v8676_v61 = vpop.eup %7014  ;;  %v1909_v20 = vmul.f32 1.442695, %v1682_v39  ;;  %v3440_v8 = vmul.f32 %v3280_v38, %v10738_v23 }
 0x1fe   : > { %5901 = vmatmul.msk.bf16.gmra.mxu0 %vm862_vm11, %v10724_v11  ;;  %v7017_v50 = vpop.eup %7016  ;;  %v3240_v25 = vunpack.c.h.bf16 %v8458_v0  ;;  %v2379_v12 = vadd.f32 1.0, %v2219_v21  ;;  %v2380_v14 = vadd.f32 1.0, %v2220_v37  ;;  %v2239_v11 = vunpack.c.l.bf16 %v2127_v35 }
 0x1ff   : > { %7026 = vpow2.f32 %v2027_v43  ;;  %v7019_v1 = vpop.eup %7018  ;;  %v2240_v4 = vunpack.c.h.bf16 %v2127_v35  ;;  %v2259_v10 = vunpack.c.l.bf16 %v2137_v9  ;;  %3540 = vmatpush.msra.mxu1 %v3440_v8  ;;  %v3420_v40 = vmul.f32 %v3260_v41, %v10739_v58  ;;  %v10740_v35 = vld [vmem:[#allocation26_spill] sm:$0xff] }
 0x200   : > { %v7021_v5 = vpop.eup %7020  ;;  %7028 = vpow2.f32 %v2029_v32  ;;  %v3220_v39 = vunpack.c.h.bf16 %v8452_v26  ;;  %v2260_v47 = vunpack.c.h.bf16 %v2137_v9  ;;  %v1588_v38 = vxor.u32 2147516416, %v1508_v27 }
 0x201   : > { %v7023_v43 = vpop.eup %7022  ;;  %v8687_v0 = vadd.f32 %v1017_v17, %v8341_v52  ;;  %v8690_v21 = vadd.f32 %v1046_v46, %v8331_v7  ;;  %7030 = vpow2.f32 %v1907_v16  ;;  %v2157_v37 = vpack.c.bf16 %v7019_v1, %v7017_v50  ;;  %3541 = vmatpush.msra.mxu1 %v3420_v40  ;;  %v10741_v16 = vld [vmem:[#allocation24_spill] sm:$0xff]  ;;  %v10742_v50 = vld [vmem:[#allocation5_spill] sm:$0xff] }
 0x202   : > { %v3400_v32 = vmul.f32 %v3240_v25, %v10740_v35  ;;  %v3200_v23 = vunpack.c.h.bf16 %v8393_v55  ;;  %v8694_v8 = vpop.eup %7024  ;;  %v8696_v41 = vpack.c.bf16 %v2380_v14, %v2379_v12  ;;  %v2399_v26 = vadd.f32 1.0, %v2239_v11  ;;  %v10743_v46 = vld [vmem:[#allocation21_spill] sm:$0xff]  ;;  %5891 = vmatmul.msk.bf16.gmra.mxu1 %vm862_vm11, %v10742_v50 }
 0x203   : > { %7032 = vpow2.f32 %v1909_v20  ;;  %v1527_v52 = vpack.c.bf16 %v8690_v21, %v8687_v0  ;;  %v2400_v9 = vadd.f32 1.0, %v2240_v4  ;;  %v2147_v7 = vpack.c.bf16 %v7023_v43, %v7021_v5 }
 0x204   : > { %3542 = vmatpush.msra.mxu1 %v3400_v32  ;;  %v3380_v27 = vmul.f32 %v3220_v39, %v10741_v16  ;;  %v3180_v40 = vunpack.c.h.bf16 %v8479_v24  ;;  %5895 = vmatmul.msk.bf16.gmra.mxu2 %vm862_vm11, %v10742_v50  ;;  %v2419_v55 = vadd.f32 1.0, %v2259_v10  ;;  %v2420_v25 = vadd.f32 1.0, %v2260_v47  ;;  %v10744_v32 = vld [vmem:[#allocation16_spill] sm:$0xff] }
 0x205   : > { %v7027_v17 = vpop.eup %7026  ;;  %v1721_v1 = vunpack.c.l.bf16 %v1588_v38  ;;  %v1607_v12 = vxor.u32 2147516416, %v1527_v52  ;;  %v2299_v20 = vunpack.c.l.bf16 %v2157_v37  ;;  %v2300_v11 = vunpack.c.h.bf16 %v2157_v37 }
 0x206   : > { %v7029_v14 = vpop.eup %7028  ;;  %3543 = vmatpush.msra.mxu1 %v3380_v27  ;;  %v3360_v58 = vmul.f32 %v3200_v23, %v10743_v46  ;;  %v3160_v4 = vunpack.c.h.bf16 %v8372_v53  ;;  %v1722_v5 = vunpack.c.h.bf16 %v1588_v38  ;;  %v2279_v10 = vunpack.c.l.bf16 %v2147_v7 }
 0x207   : > { %v2158_v43 = vpack.c.bf16 %v7029_v14, %v7027_v17  ;;  %v1759_v39 = vunpack.c.l.bf16 %v1607_v12  ;;  %v1760_v35 = vunpack.c.h.bf16 %v1607_v12  ;;  %v7031_v24 = vpop.eup %7030  ;;  %v2280_v47 = vunpack.c.h.bf16 %v2147_v7  ;;  %v10745_v14 = vld [vmem:[#allocation12_spill] sm:$0xff] }
 0x208   : > { %3544 = vmatpush.msra.mxu1 %v3360_v58  ;;  %v3340_v52 = vmul.f32 %v3180_v40, %v10744_v32  ;;  %v3140_v37 = vunpack.c.h.bf16 %v10718_v54  ;;  %v2731_v38 = vunpack.c.h.bf16 %v8696_v41  ;;  %v2459_v17 = vadd.f32 1.0, %v2299_v20  ;;  %v1075_v58 = vpop.f32.mrf.mxu3  ;;  %5899 = vmatmul.msk.bf16.gmra.mxu3 %vm862_vm11, %v10742_v50 }
 0x209   : > { %v7033_v16 = vpop.eup %7032  ;;  %v2301_v27 = vunpack.c.l.bf16 %v2158_v43  ;;  %v2302_v23 = vunpack.c.h.bf16 %v2158_v43  ;;  %v2063_v46 = vmul.f32 1.442695, %v1759_v39  ;;  %v2065_v53 = vmul.f32 1.442695, %v1760_v35  ;;  %v10746_v43 = vld [vmem:[#allocation8_spill] sm:$0xff] }
 0x20a   : > { %v2460_v12 = vadd.f32 1.0, %v2300_v11  ;;  %3545 = vmatpush.msra.mxu1 %v3340_v52  ;;  %v3320_v63 = vmul.f32 %v3160_v4, %v10745_v14  ;;  %v1987_v18 = vmul.f32 1.442695, %v1721_v1  ;;  %v8714_v54 = vpack.c.bf16 %v2400_v9, %v2399_v26 }
 0x20b   : > { %v2461_v13 = vadd.f32 1.0, %v2301_v27  ;;  %v2462_v7 = vadd.f32 1.0, %v2302_v23  ;;  %7034 = vpow2.f32 %v2063_v46  ;;  %v1989_v40 = vmul.f32 1.442695, %v1722_v5  ;;  %v1104_v46 = vpop.f32.mrf.mxu0 }
 0x20c   : > { %7036 = vpow2.f32 %v2065_v53  ;;  %3546 = vmatpush.msra.mxu1 %v3320_v63  ;;  %v3300_v39 = vmul.f32 %v3140_v37, %v10746_v43  ;;  %v2537_v20 = vpack.c.bf16 %v2420_v25, %v2419_v55  ;;  %v2439_v11 = vadd.f32 1.0, %v2279_v10 }
 0x20d   : > { %v2440_v1 = vadd.f32 1.0, %v2280_v47  ;;  %v2558_v4 = vpack.c.bf16 %v2462_v7, %v2461_v13  ;;  %7038 = vrcp.f32 %v2731_v38  ;;  %v2128_v35 = vpack.c.bf16 %v7033_v16, %v7031_v24 }
 0x20e   : > { %5902 = vmatmul.msk.bf16.gmra.mxu0 %vm862_vm11, %v10735_v49  ;;  %v2557_v32 = vpack.c.bf16 %v2460_v12, %v2459_v17  ;;  %3547 = vmatpush.msra.mxu1 %v3300_v39  ;;  %v2732_v52 = vunpack.c.l.bf16 %v8696_v41  ;;  %7040 = vpow2.f32 %v1987_v18  ;;  %v2201_v63 = vunpack.c.l.bf16 %v8678_v6 }
 0x20f   : > { %v3018_v26 = vunpack.c.h.bf16 %v2558_v4  ;;  %v3019_v9 = vunpack.c.l.bf16 %v2558_v4  ;;  %v2801_v5 = vunpack.c.h.bf16 %v8714_v54  ;;  %7042 = vpow2.f32 %v1989_v40 }
 0x210   : > { %v2871_v49 = vunpack.c.h.bf16 %v2537_v20  ;;  %v2547_v55 = vpack.c.bf16 %v2440_v1, %v2439_v11  ;;  %v2241_v13 = vunpack.c.l.bf16 %v2128_v35  ;;  %v2242_v10 = vunpack.c.h.bf16 %v2128_v35 }
 0x211   : > { %v7035_v37 = vpop.eup %7034  ;;  %7044 = vrcp.f32 %v3018_v26  ;;  %v3011_v24 = vunpack.c.h.bf16 %v2557_v32  ;;  %v2202_v47 = vunpack.c.h.bf16 %v8678_v6  ;;  %v3012_v18 = vunpack.c.l.bf16 %v2557_v32 }
 0x212   : > { %v7037_v25 = vpop.eup %7036  ;;  %7046 = vrcp.f32 %v3019_v9  ;;  %v8725_v27 = vadd.f32 1.0, %v2201_v63  ;;  %v2872_v23 = vunpack.c.l.bf16 %v2537_v20  ;;  %v2941_v38 = vunpack.c.h.bf16 %v2547_v55 }
 0x213   : > { %7048 = vrcp.f32 %v2732_v52  ;;  %v2167_v41 = vpack.c.bf16 %v7037_v25, %v7035_v37  ;;  %v8723_v16 = vpop.eup %7038  ;;  %v2401_v7 = vadd.f32 1.0, %v2241_v13  ;;  %v2402_v40 = vadd.f32 1.0, %v2242_v10  ;;  %v617_v52 = vld [vmem:[%s10539_s4 + $0x8] sm:$0xff] }
 0x214   : > { %7050 = vrcp.f32 %v2801_v5  ;;  %v7041_v53 = vpop.eup %7040  ;;  %v2942_v43 = vunpack.c.l.bf16 %v2547_v55  ;;  %v8727_v39 = vadd.f32 1.0, %v2202_v47  ;;  %v2802_v20 = vunpack.c.l.bf16 %v8714_v54 }
 0x215   : > { %7052 = vrcp.f32 %v2871_v49  ;;  %v2319_v17 = vunpack.c.l.bf16 %v2167_v41  ;;  %v2320_v12 = vunpack.c.h.bf16 %v2167_v41  ;;  %v7043_v14 = vpop.eup %7042  ;;  %v8732_v32 = vadd.f32 %v1075_v58, %v8184_v29  ;;  %v1116_v29 = vpop.f32.mrf.mxu1 }
 0x216   : > { %7054 = vrcp.f32 %v3011_v24  ;;  %v8738_v5 = vperm.slane %v617_v52, 1  ;;  %v8740_v49 = vpack.c.bf16 %v2402_v40, %v2401_v7  ;;  %v2148_v54 = vpack.c.bf16 %v7043_v14, %v7041_v53  ;;  %v1145_v58 = vpop.f32.mrf.mxu2 }
 0x217   : > { %v7045_v6 = vpop.eup %7044  ;;  %7056 = vrcp.f32 %v3012_v18  ;;  %v2479_v11 = vadd.f32 1.0, %v2319_v17  ;;  %v2480_v1 = vadd.f32 1.0, %v2320_v12  ;;  %v8743_v55 = vadd.f32 %v1104_v46, %v8191_v22 }
 0x218   : > { %v7047_v4 = vpop.eup %7046  ;;  %7058 = vrcp.f32 %v2872_v23  ;;  %v3021_v35 = vmul.f32 %v7045_v6, %v7984_v28  ;;  %v8747_v47 = vperm.slane %v617_v52, 0  ;;  %v8751_v41 = vmul.f32 %v8664_v60, %v7984_v28  ;;  %v1174_v60 = vpop.f32.mrf.mxu3 }
 0x219   : > { %v7049_v26 = vpop.eup %7048  ;;  %7060 = vrcp.f32 %v2941_v38  ;;  %v3023_v9 = vmul.f32 %v7047_v4, %v7989_v31  ;;  %v2567_v63 = vpack.c.bf16 %v2480_v1, %v2479_v11  ;;  %v1528_v23 = vpack.c.bf16 %v8743_v55, %v8732_v32 }
 0x21a   : > { %v7051_v37 = vpop.eup %7050  ;;  %7062 = vrcp.f32 %v2942_v43  ;;  %v8755_v22 = vperm.slane %v617_v52, 2  ;;  %v8760_v38 = vperm.slane %v617_v52, 3  ;;  %v8763_v17 = vadd.f32 %v1145_v58, %v8738_v5  ;;  %v1203_v43 = vpop.f32.mrf.mxu0 }
 0x21b   : > { %v7053_v25 = vpop.eup %7052  ;;  %v8745_v13 = vpack.c.bf16 %v3021_v35, %v3023_v9  ;;  %v3081_v10 = vunpack.c.h.bf16 %v2567_v63  ;;  %v3082_v24 = vunpack.c.l.bf16 %v2567_v63  ;;  %7064 = vrcp.f32 %v2802_v20 }
 0x21c   : > { %v7055_v18 = vpop.eup %7054  ;;  %10747 = vst [vmem:[#allocation44_spill] sm:$0xff] %v8763_v17  ;;  %v8767_v14 = vmul.f32 %v8670_v34, %v7989_v31  ;;  %v2281_v7 = vunpack.c.l.bf16 %v2148_v54  ;;  %v2282_v40 = vunpack.c.h.bf16 %v2148_v54  ;;  %v2808_v6 = vunpack.c.h.bf16 %v8740_v49 }
 0x21d   : > { %v7057_v46 = vpop.eup %7056  ;;  %v3263_v53 = vunpack.c.l.bf16 %v8745_v13  ;;  %7066 = vrcp.f32 %v3081_v10  ;;  %v8774_v1 = vadd.f32 %v1116_v29, %v8747_v47  ;;  %v8777_v4 = vadd.f32 %v1174_v60, %v8755_v22 }
 0x21e   : > { %5903 = vmatmul.msk.bf16.gmra.mxu0 %vm862_vm11, %v10742_v50  ;;  %v7059_v12 = vpop.eup %7058  ;;  %7068 = vrcp.f32 %v3082_v24  ;;  %v8781_v34 = vmul.f32 %v8676_v61, %v7984_v28  ;;  %v8785_v35 = vmul.f32 %v8694_v8, %v7989_v31  ;;  %v3014_v52 = vmul.f32 %v7055_v18, %v7984_v28 }
 0x21f   : > { %v7061_v50 = vpop.eup %7060  ;;  %v8771_v11 = vmul.f32 %v3263_v53, %v8649_v42  ;;  %10748 = vst [vmem:[#allocation7_spill] sm:$0xff] %v8774_v1  ;;  %v3016_v42 = vmul.f32 %v7057_v46, %v7989_v31  ;;  %v2734_v9 = vmul.f32 %v8723_v16, %v7984_v28  ;;  %v1608_v63 = vxor.u32 2147516416, %v1528_v23 }
 0x220   : > { %10749 = vst [vmem:[#allocation32_spill] sm:$0xff] %v8777_v4  ;;  %v7063_v20 = vpop.eup %7062  ;;  %v8792_v54 = vadd.f32 %v1203_v43, %v8760_v38  ;;  %v1459_v29 = vpack.c.bf16 %v8763_v17, %v8774_v1  ;;  %v2736_v58 = vmul.f32 %v7049_v26, %v7989_v31  ;;  %v2809_v8 = vunpack.c.l.bf16 %v8740_v49  ;;  %v1118_v49 = vpop.f32.mrf.mxu1 }
 0x221   : > { %v7065_v61 = vpop.eup %7064  ;;  %v2441_v10 = vadd.f32 1.0, %v2281_v7  ;;  %v2442_v24 = vadd.f32 1.0, %v2282_v40  ;;  %7070 = vrcp.f32 %v2808_v6  ;;  %v2944_v46 = vmul.f32 %v7061_v50, %v7984_v28 }
 0x222   : > { %10750 = vst [vmem:[#allocation22_spill] sm:$0xff] %v8792_v54  ;;  %v2946_v16 = vmul.f32 %v7063_v20, %v7989_v31  ;;  %v1460_v23 = vpack.c.bf16 %v8792_v54, %v8777_v4  ;;  %v2874_v60 = vmul.f32 %v7053_v25, %v7984_v28  ;;  %v2876_v43 = vmul.f32 %v7059_v12, %v7989_v31  ;;  %v1147_v20 = vpop.f32.mrf.mxu2 }
 0x223   : > { %v7067_v18 = vpop.eup %7066  ;;  %v8804_v1 = vpack.c.bf16 %v3014_v52, %v3016_v42  ;;  %v2804_v7 = vmul.f32 %v7051_v37, %v7984_v28  ;;  %v1761_v50 = vunpack.c.l.bf16 %v1608_v63  ;;  %v1539_v6 = vxor.u32 2147516416, %v1459_v29 }
 0x224   : > { %v7069_v53 = vpop.eup %7068  ;;  %v3084_v26 = vmul.f32 %v7067_v18, %v7984_v28  ;;  %v2806_v17 = vmul.f32 %v7065_v61, %v7989_v31  ;;  %v2548_v54 = vpack.c.bf16 %v2442_v24, %v2441_v10  ;;  %v1762_v4 = vunpack.c.h.bf16 %v1608_v63  ;;  %v1205_v10 = vpop.f32.mrf.mxu0 }
 0x225   : > { %v3086_v40 = vmul.f32 %v7069_v53, %v7989_v31  ;;  %v8811_v25 = vadd.f32 %v1147_v20, %v8738_v5  ;;  %v8813_v12 = vpack.c.bf16 %v2944_v46, %v2946_v16  ;;  %v1540_v42 = vxor.u32 2147516416, %v1460_v23  ;;  %v1176_v63 = vpop.f32.mrf.mxu3 }
 0x226   : > { %v8818_v18 = vadd.f32 %v1118_v49, %v8747_v47  ;;  %v8820_v37 = vpack.c.bf16 %v2734_v9, %v2736_v58  ;;  %7072 = vrcp.f32 %v2809_v8  ;;  %v8822_v29 = vpack.c.bf16 %v2874_v60, %v2876_v43 }
 0x227   : > { %10751 = vst [vmem:[#allocation17_spill] sm:$0xff] %v8811_v25  ;;  %v8815_v52 = vpack.c.bf16 %v3084_v26, %v3086_v40  ;;  %v3262_v61 = vunpack.c.h.bf16 %v8804_v1  ;;  %v8825_v24 = vpop.eup %7070  ;;  %v2067_v16 = vmul.f32 1.442695, %v1761_v50  ;;  %v1623_v53 = vunpack.c.l.bf16 %v1539_v6 }
 0x228   : > { %10752 = vst [vmem:[#allocation19_spill] sm:$0xff] %v8818_v18  ;;  %v1469_v23 = vpack.c.bf16 %v8811_v25, %v8818_v18  ;;  %v8830_v26 = vpack.c.bf16 %v2804_v7, %v2806_v17  ;;  %v2948_v9 = vunpack.c.h.bf16 %v2548_v54  ;;  %v2069_v58 = vmul.f32 1.442695, %v1762_v4 }
 0x229   : > { %v3282_v46 = vunpack.c.h.bf16 %v8815_v52  ;;  %v1624_v8 = vunpack.c.h.bf16 %v1539_v6  ;;  %v3242_v60 = vunpack.c.h.bf16 %v8813_v12  ;;  %v1625_v49 = vunpack.c.l.bf16 %v1540_v42 }
 0x22a   : > { %v8835_v40 = vadd.f32 %v1176_v63, %v8755_v22  ;;  %v3222_v20 = vunpack.c.h.bf16 %v8822_v29  ;;  %v2949_v50 = vunpack.c.l.bf16 %v2548_v54  ;;  %v3422_v3 = vmul.f32 %v3262_v61, %v8608_v56 }
 0x22b   : > { %v3442_v43 = vmul.f32 %v3282_v46, %v8690_v21  ;;  %v1626_v30 = vunpack.c.h.bf16 %v1540_v42  ;;  %7074 = vpow2.f32 %v2067_v16  ;;  %v1791_v17 = vmul.f32 1.442695, %v1623_v53  ;;  %v1121_v53 = vpop.f32.mrf.mxu1 }
 0x22c   : > { %10753 = vst [vmem:[#allocation14_spill] sm:$0xff] %v8835_v40  ;;  %v8840_v7 = vadd.f32 %v1205_v10, %v8760_v38  ;;  %v1549_v4 = vxor.u32 2147516416, %v1469_v23  ;;  %v8842_v6 = vpop.eup %7072  ;;  %v8846_v21 = vpack.c.bf16 %v8781_v34, %v8785_v35  ;;  %v3202_v63 = vunpack.c.h.bf16 %v8830_v26 }
 0x22d   : > { %3580 = vmatpush.msra.mxu3 %v3442_v43  ;;  %7076 = vpow2.f32 %v2069_v58  ;;  %v1793_v54 = vmul.f32 1.442695, %v1624_v8  ;;  %v3402_v56 = vmul.f32 %v3242_v60, %v8588_v45  ;;  %v1795_v42 = vmul.f32 1.442695, %v1625_v49  ;;  %v1179_v8 = vpop.f32.mrf.mxu3 }
 0x22e   : > { %10754 = vst [vmem:[#allocation3_spill] sm:$0xff] %v8840_v7  ;;  %7078 = vrcp.f32 %v2948_v9  ;;  %v1470_v61 = vpack.c.bf16 %v8840_v7, %v8835_v40  ;;  %v8854_v10 = vpack.c.bf16 %v8751_v41, %v8767_v14  ;;  %v3182_v46 = vunpack.c.h.bf16 %v8820_v37  ;;  %v1208_v9 = vpop.f32.mrf.mxu0 }
 0x22f   : > { %3581 = vmatpush.msra.mxu3 %v3422_v3  ;;  %7080 = vrcp.f32 %v2949_v50  ;;  %v1797_v34 = vmul.f32 1.442695, %v1626_v30  ;;  %v3382_v35 = vmul.f32 %v3222_v20, %v8561_v33  ;;  %v1643_v16 = vunpack.c.l.bf16 %v1549_v4  ;;  %v1150_v30 = vpop.f32.mrf.mxu2 }
 0x230   : > { %7082 = vpow2.f32 %v1791_v17  ;;  %v3162_v45 = vunpack.c.h.bf16 %v8846_v21  ;;  %v2508_v23 = vpack.c.bf16 %v8727_v39, %v8725_v27  ;;  %v1644_v3 = vunpack.c.h.bf16 %v1549_v4  ;;  %v10759_v4 = vld [vmem:[#allocation41_spill] sm:$0xff] }
 0x231   : > { %3582 = vmatpush.msra.mxu3 %v3402_v56  ;;  %7084 = vpow2.f32 %v1793_v54  ;;  %v7075_v41 = vpop.eup %7074  ;;  %v3362_v14 = vmul.f32 %v3202_v63, %v8538_v44  ;;  %v1550_v58 = vxor.u32 2147516416, %v1470_v61  ;;  %v3142_v60 = vunpack.c.h.bf16 %v8854_v10 }
 0x232   : > { %7086 = vpow2.f32 %v1795_v42  ;;  %v3342_v43 = vmul.f32 %v3182_v46, %v8511_v62  ;;  %v8865_v49 = vadd.f32 %v1121_v53, %v8747_v47  ;;  %v1831_v39 = vmul.f32 1.442695, %v1643_v16 }
 0x233   : > { %3583 = vmatpush.msra.mxu3 %v3382_v35  ;;  %v7077_v33 = vpop.eup %7076  ;;  %7088 = vpow2.f32 %v1797_v34  ;;  %v8868_v20 = vadd.f32 %v1208_v9, %v8760_v38  ;;  %v8871_v44 = vadd.f32 %v1150_v30, %v8738_v5  ;;  %v8874_v50 = vadd.f32 %v1179_v8, %v8755_v22 }
 0x234   : > { %10755 = vst [vmem:[#allocation13_spill] sm:$0xff] %v8865_v49  ;;  %v7079_v27 = vpop.eup %7078  ;;  %v3322_v63 = vmul.f32 %v3162_v45, %v10759_v4  ;;  %v2668_v62 = vunpack.c.h.bf16 %v2508_v23  ;;  %v1833_v54 = vmul.f32 1.442695, %v1644_v3  ;;  %v2168_v42 = vpack.c.bf16 %v7077_v33, %v7075_v41  ;;  %v1123_v4 = vpop.f32.mrf.mxu1 }
 0x235   : > { %10756 = vst [vmem:[#allocation6_spill] sm:$0xff] %v8868_v20  ;;  %3584 = vmatpush.msra.mxu3 %v3362_v14  ;;  %v7081_v17 = vpop.eup %7080  ;;  %v1645_v61 = vunpack.c.l.bf16 %v1550_v58  ;;  %v1479_v46 = vpack.c.bf16 %v8871_v44, %v8865_v49  ;;  %v1480_v34 = vpack.c.bf16 %v8868_v20, %v8874_v50  ;;  %v2669_v16 = vunpack.c.l.bf16 %v2508_v23  ;;  %v10760_v14 = vld [vmem:[#allocation35_spill] sm:$0xff] }
 0x236   : > { %10757 = vst [vmem:[#allocation10_spill] sm:$0xff] %v8871_v44  ;;  %v7083_v56 = vpop.eup %7082  ;;  %v1646_v53 = vunpack.c.h.bf16 %v1550_v58  ;;  %v3302_v30 = vmul.f32 %v3142_v60, %v10760_v14  ;;  %7090 = vpow2.f32 %v1831_v39  ;;  %v2321_v41 = vunpack.c.l.bf16 %v2168_v42 }
 0x237   : > { %10758 = vst [vmem:[#allocation33_spill] sm:$0xff] %v8874_v50  ;;  %3585 = vmatpush.msra.mxu3 %v3342_v43  ;;  %v7085_v35 = vpop.eup %7084  ;;  %v1559_v45 = vxor.u32 2147516416, %v1479_v46  ;;  %7092 = vpow2.f32 %v1833_v54  ;;  %v1835_v8 = vmul.f32 1.442695, %v1645_v61  ;;  %v1560_v33 = vxor.u32 2147516416, %v1480_v34  ;;  %v1152_v7 = vpop.f32.mrf.mxu2 }
 0x238   : > { %v7087_v9 = vpop.eup %7086  ;;  %7094 = vrcp.f32 %v2668_v62  ;;  %v2322_v43 = vunpack.c.h.bf16 %v2168_v42  ;;  %v1837_v20 = vmul.f32 1.442695, %v1646_v53  ;;  %v8884_v23 = vmul.f32 %v8825_v24, %v7984_v28  ;;  %v1210_v24 = vpop.f32.mrf.mxu0 }
 0x239   : > { %3586 = vmatpush.msra.mxu3 %v3322_v63  ;;  %v7089_v3 = vpop.eup %7088  ;;  %7096 = vrcp.f32 %v2669_v16  ;;  %v2099_v58 = vpack.c.bf16 %v7085_v35, %v7083_v56  ;;  %v1663_v39 = vunpack.c.l.bf16 %v1559_v45  ;;  %v8888_v63 = vmul.f32 %v8842_v6, %v7989_v31  ;;  %v1181_v35 = vpop.f32.mrf.mxu3 }
 0x23a   : > { %v2100_v60 = vpack.c.bf16 %v7089_v3, %v7087_v9  ;;  %v8891_v62 = vmul.f32 %v7079_v27, %v7984_v28  ;;  %v8894_v54 = vmul.f32 %v7081_v17, %v7989_v31  ;;  %v1664_v61 = vunpack.c.h.bf16 %v1559_v45 }
 0x23b   : > { %3587 = vmatpush.msra.mxu3 %v3302_v30  ;;  %v2481_v46 = vadd.f32 1.0, %v2321_v41  ;;  %7098 = vpow2.f32 %v1835_v8  ;;  %v1665_v34 = vunpack.c.l.bf16 %v1560_v33  ;;  %v8897_v56 = vadd.f32 %v1152_v7, %v8738_v5 }
 0x23c   : > { %v7091_v42 = vpop.eup %7090  ;;  %v2482_v53 = vadd.f32 1.0, %v2322_v43  ;;  %7100 = vpow2.f32 %v1837_v20  ;;  %v1666_v6 = vunpack.c.h.bf16 %v1560_v33  ;;  %v8900_v27 = vadd.f32 %v1123_v4, %v8747_v47 }
 0x23d   : > { %10761 = vst [vmem:[#allocation34_spill] sm:$0xff] %v8897_v56  ;;  %v7093_v16 = vpop.eup %7092  ;;  %v2183_v17 = vunpack.c.l.bf16 %v2099_v58  ;;  %v2184_v14 = vunpack.c.h.bf16 %v2099_v58  ;;  %v2185_v30 = vunpack.c.l.bf16 %v2100_v60  ;;  %v1871_v45 = vmul.f32 1.442695, %v1663_v39 }
 0x23e   : > { %10762 = vst [vmem:[#allocation38_spill] sm:$0xff] %v8900_v27  ;;  %v8902_v9 = vpop.eup %7094  ;;  %v1873_v41 = vmul.f32 1.442695, %v1664_v61  ;;  %v8907_v7 = vadd.f32 %v1210_v24, %v8760_v38  ;;  %v1489_v8 = vpack.c.bf16 %v8897_v56, %v8900_v27  ;;  %v8912_v20 = vadd.f32 %v1181_v35, %v8755_v22  ;;  %v1126_v35 = vpop.f32.mrf.mxu1 }
 0x23f   : > { %v8904_v3 = vpop.eup %7096  ;;  %v2186_v33 = vunpack.c.h.bf16 %v2100_v60  ;;  %v2109_v4 = vpack.c.bf16 %v7093_v16, %v7091_v42  ;;  %v1875_v43 = vmul.f32 1.442695, %v1665_v34  ;;  %v1155_v49 = vpop.f32.mrf.mxu2  ;;  %v3141_v58 = vunpack.c.l.bf16 %v8854_v10 }
 0x240   : > { %10763 = vst [vmem:[#allocation4_spill] sm:$0xff] %v8907_v7  ;;  %v1877_v18 = vmul.f32 1.442695, %v1666_v6  ;;  %v1569_v39 = vxor.u32 2147516416, %v1489_v8  ;;  %v1490_v61 = vpack.c.bf16 %v8907_v7, %v8912_v20  ;;  %v3161_v24 = vunpack.c.l.bf16 %v8846_v21 }
 0x241   : > { %10764 = vst [vmem:[#allocation43_spill] sm:$0xff] %v8912_v20  ;;  %v7099_v40 = vpop.eup %7098  ;;  %v2568_v50 = vpack.c.bf16 %v2482_v53, %v2481_v46  ;;  %v2343_v25 = vadd.f32 1.0, %v2183_v17  ;;  %v2344_v27 = vadd.f32 1.0, %v2184_v14  ;;  %7102 = vpow2.f32 %v1871_v45  ;;  %v1184_v45 = vpop.f32.mrf.mxu3 }
 0x242   : > { %v7101_v44 = vpop.eup %7100  ;;  %v2345_v60 = vadd.f32 1.0, %v2185_v30  ;;  %7104 = vpow2.f32 %v1873_v41  ;;  %v1570_v42 = vxor.u32 2147516416, %v1490_v61  ;;  %v8919_v34 = vadd.f32 %v1155_v49, %v8738_v5  ;;  %v10767_v30 = vld [vmem:[#allocation36_spill] sm:$0xff]  ;;  %v1213_v20 = vpop.f32.mrf.mxu0 }
 0x243   : > { %v2346_v10 = vadd.f32 1.0, %v2186_v33  ;;  %v2203_v16 = vunpack.c.l.bf16 %v2109_v4  ;;  %7106 = vpow2.f32 %v1875_v43  ;;  %v1683_v6 = vunpack.c.l.bf16 %v1569_v39  ;;  %v10768_v43 = vld [vmem:[#allocation42_spill] sm:$0xff] }
 0x244   : > { %10765 = vst [vmem:[#allocation27_spill] sm:$0xff] %v8919_v34  ;;  %v2204_v8 = vunpack.c.h.bf16 %v2109_v4  ;;  %7108 = vpow2.f32 %v1877_v18  ;;  %v1684_v21 = vunpack.c.h.bf16 %v1569_v39  ;;  %v8922_v46 = vadd.f32 %v1126_v35, %v8747_v47 }
 0x245   : > { %v3088_v53 = vunpack.c.h.bf16 %v2568_v50  ;;  %v2110_v17 = vpack.c.bf16 %v7101_v44, %v7099_v40  ;;  %v1685_v14 = vunpack.c.l.bf16 %v1570_v42  ;;  %v8925_v41 = vmul.f32 %v3141_v58, %v10767_v30 }
 0x246   : > { %10766 = vst [vmem:[#allocation28_spill] sm:$0xff] %v8922_v46  ;;  %v3089_v61 = vunpack.c.l.bf16 %v2568_v50  ;;  %v1686_v49 = vunpack.c.h.bf16 %v1570_v42  ;;  %v1499_v33 = vpack.c.bf16 %v8919_v34, %v8922_v46  ;;  %v8930_v7 = vmul.f32 %v3161_v24, %v10768_v43 }
 0x247   : > { %v7103_v18 = vpop.eup %7102  ;;  %v2499_v4 = vpack.c.bf16 %v2344_v27, %v2343_v25  ;;  %v2500_v39 = vpack.c.bf16 %v2346_v10, %v2345_v60  ;;  %v1911_v35 = vmul.f32 1.442695, %v1683_v6  ;;  %v2363_v56 = vadd.f32 1.0, %v2203_v16 }
 0x248   : > { %v7105_v44 = vpop.eup %7104  ;;  %v2364_v15 = vadd.f32 1.0, %v2204_v8  ;;  %v1913_v58 = vmul.f32 1.442695, %v1684_v21  ;;  %v8934_v50 = vadd.f32 %v1184_v45, %v8755_v22  ;;  %7110 = vrcp.f32 %v3088_v53 }
 0x249   : > { %v7107_v42 = vpop.eup %7106  ;;  %v2205_v30 = vunpack.c.l.bf16 %v2110_v17  ;;  %v2206_v46 = vunpack.c.h.bf16 %v2110_v17  ;;  %v1915_v24 = vmul.f32 1.442695, %v1685_v14  ;;  %7112 = vrcp.f32 %v3089_v61 }
 0x24a   : > { %10769 = vst [vmem:[#allocation26_spill] sm:$0xff] %v8934_v50  ;;  %v7109_v43 = vpop.eup %7108  ;;  %v1917_v25 = vmul.f32 1.442695, %v1686_v49  ;;  %v8937_v27 = vadd.f32 %v1213_v20, %v8760_v38  ;;  %v1579_v60 = vxor.u32 2147516416, %v1499_v33  ;;  %v2605_v10 = vunpack.c.h.bf16 %v2499_v4 }
 0x24b   : > { %v2606_v6 = vunpack.c.l.bf16 %v2499_v4  ;;  %v2119_v16 = vpack.c.bf16 %v7105_v44, %v7103_v18  ;;  %7114 = vpow2.f32 %v1911_v35  ;;  %v2612_v8 = vunpack.c.h.bf16 %v2500_v39 }
 0x24c   : > { %10770 = vst [vmem:[#allocation24_spill] sm:$0xff] %v8937_v27  ;;  %v8939_v21 = vpack.c.bf16 %v2364_v15, %v2363_v56  ;;  %7116 = vpow2.f32 %v1913_v58  ;;  %v1500_v53 = vpack.c.bf16 %v8937_v27, %v8934_v50  ;;  %v2365_v17 = vadd.f32 1.0, %v2205_v30 }
 0x24d   : > { %v2366_v14 = vadd.f32 1.0, %v2206_v46  ;;  %v2120_v45 = vpack.c.bf16 %v7109_v43, %v7107_v42  ;;  %7118 = vpow2.f32 %v1915_v24  ;;  %v2613_v61 = vunpack.c.l.bf16 %v2500_v39  ;;  %v1157_v24 = vpop.f32.mrf.mxu2 }
 0x24e   : > { %7120 = vpow2.f32 %v1917_v25  ;;  %v1703_v20 = vunpack.c.l.bf16 %v1579_v60  ;;  %v3241_v49 = vunpack.c.l.bf16 %v8813_v12  ;;  %v8944_v33 = vpop.eup %7110  ;;  %v2223_v18 = vunpack.c.l.bf16 %v2119_v16  ;;  %v1128_v12 = vpop.f32.mrf.mxu1 }
 0x24f   : > { %7122 = vrcp.f32 %v2605_v10  ;;  %v2224_v4 = vunpack.c.h.bf16 %v2119_v16  ;;  %v1704_v15 = vunpack.c.h.bf16 %v1579_v60  ;;  %v8946_v56 = vpop.eup %7112  ;;  %v2675_v35 = vunpack.c.h.bf16 %v8939_v21 }
 0x250   : > { %7124 = vrcp.f32 %v2606_v6  ;;  %v1580_v44 = vxor.u32 2147516416, %v1500_v53  ;;  %v2510_v39 = vpack.c.bf16 %v2366_v14, %v2365_v17  ;;  %v2225_v42 = vunpack.c.l.bf16 %v2120_v45 }
 0x251   : > { %v7115_v58 = vpop.eup %7114  ;;  %7126 = vrcp.f32 %v2612_v8  ;;  %v2226_v30 = vunpack.c.h.bf16 %v2120_v45  ;;  %v1951_v25 = vmul.f32 1.442695, %v1703_v20  ;;  %v3401_v60 = vmul.f32 %v3241_v49, %v8613_v2  ;;  %v1186_v45 = vpop.f32.mrf.mxu3 }
 0x252   : > { %v7117_v43 = vpop.eup %7116  ;;  %7128 = vrcp.f32 %v2613_v61  ;;  %v3221_v10 = vunpack.c.l.bf16 %v8822_v29  ;;  %v2383_v16 = vadd.f32 1.0, %v2223_v18  ;;  %v2384_v40 = vadd.f32 1.0, %v2224_v4 }
 0x253   : > { %v7119_v6 = vpop.eup %7118  ;;  %v1953_v53 = vmul.f32 1.442695, %v1704_v15  ;;  %v3281_v46 = vunpack.c.l.bf16 %v8815_v52  ;;  %v2676_v8 = vunpack.c.l.bf16 %v8939_v21  ;;  %7130 = vrcp.f32 %v2675_v35  ;;  %v1215_v52 = vpop.f32.mrf.mxu0 }
 0x254   : > { %v7121_v27 = vpop.eup %7120  ;;  %v1705_v17 = vunpack.c.l.bf16 %v1580_v44  ;;  %v3261_v14 = vunpack.c.l.bf16 %v8804_v1  ;;  %v2682_v20 = vunpack.c.h.bf16 %v2510_v39  ;;  %v2385_v2 = vadd.f32 1.0, %v2225_v42 }
 0x255   : > { %v8955_v61 = vpop.eup %7122  ;;  %v2386_v49 = vadd.f32 1.0, %v2226_v30  ;;  %v1706_v29 = vunpack.c.h.bf16 %v1580_v44  ;;  %v2683_v18 = vunpack.c.l.bf16 %v2510_v39  ;;  %v2129_v4 = vpack.c.bf16 %v7117_v43, %v7115_v58 }
 0x256   : > { %10771 = vst [vmem:[#allocation5_spill] sm:$0xff] %v8955_v61  ;;  %v8957_v50 = vpop.eup %7124  ;;  %7132 = vpow2.f32 %v1951_v25  ;;  %v3441_v15 = vmul.f32 %v3281_v46, %v8687_v0  ;;  %v2519_v35 = vpack.c.bf16 %v2384_v40, %v2383_v16  ;;  %v2130_v34 = vpack.c.bf16 %v7121_v27, %v7119_v6  ;;  %v1131_v6 = vpop.f32.mrf.mxu1 }
 0x257   : > { %v8960_v21 = vpop.eup %7126  ;;  %7134 = vpow2.f32 %v1953_v53  ;;  %v8963_v1 = vadd.f32 %v1157_v24, %v8738_v5  ;;  %v1955_v42 = vmul.f32 1.442695, %v1705_v17  ;;  %v8968_v44 = vadd.f32 %v1128_v12, %v8747_v47  ;;  %v1160_v16 = vpop.f32.mrf.mxu2 }
 0x258   : > { %v8965_v61 = vpop.eup %7128  ;;  %3560 = vmatpush.msra.mxu2 %v3441_v15  ;;  %v3421_v58 = vmul.f32 %v3261_v14, %v8604_v59  ;;  %v8972_v39 = vadd.f32 %v1186_v45, %v8755_v22  ;;  %7136 = vrcp.f32 %v2676_v8  ;;  %v2520_v0 = vpack.c.bf16 %v2386_v49, %v2385_v2 }
 0x259   : > { %10772 = vst [vmem:[#allocation21_spill] sm:$0xff] %v8968_v44  ;;  %v1957_v40 = vmul.f32 1.442695, %v1706_v29  ;;  %v8975_v27 = vadd.f32 %v1215_v52, %v8760_v38  ;;  %v8977_v46 = vpop.eup %7130  ;;  %7138 = vrcp.f32 %v2682_v20  ;;  %v2243_v30 = vunpack.c.l.bf16 %v2129_v4  ;;  %v1189_v15 = vpop.f32.mrf.mxu3 }
 0x25a   : > { %v2244_v24 = vunpack.c.h.bf16 %v2129_v4  ;;  %3561 = vmatpush.msra.mxu2 %v3421_v58  ;;  %v1509_v12 = vpack.c.bf16 %v8963_v1, %v8968_v44  ;;  %7140 = vrcp.f32 %v2683_v18  ;;  %v2245_v59 = vunpack.c.l.bf16 %v2130_v34 }
 0x25b   : > { %10773 = vst [vmem:[#allocation16_spill] sm:$0xff] %v8975_v27  ;;  %v2246_v43 = vunpack.c.h.bf16 %v2130_v34  ;;  %v1510_v25 = vpack.c.bf16 %v8975_v27, %v8972_v39  ;;  %v2745_v8 = vunpack.c.h.bf16 %v2519_v35  ;;  %7142 = vpow2.f32 %v1955_v42 }
 0x25c   : > { %v7133_v53 = vpop.eup %7132  ;;  %3562 = vmatpush.msra.mxu2 %v3401_v60  ;;  %v3381_v17 = vmul.f32 %v3221_v10, %v8570_v36  ;;  %v10774_v14 = vunpack.c.l.bf16 %v8830_v26  ;;  %v2746_v2 = vunpack.c.l.bf16 %v2519_v35  ;;  %v2752_v49 = vunpack.c.h.bf16 %v2520_v0  ;;  %v1218_v35 = vpop.f32.mrf.mxu0 }
 0x25d   : > { %v7135_v20 = vpop.eup %7134  ;;  %7144 = vpow2.f32 %v1957_v40  ;;  %v1589_v34 = vxor.u32 2147516416, %v1509_v12  ;;  %v2753_v29 = vunpack.c.l.bf16 %v2520_v0  ;;  %v2403_v18 = vadd.f32 1.0, %v2243_v30 }
 0x25e   : > { %v3361_v45 = vmul.f32 %v10774_v14, %v8554_v48  ;;  %v2404_v4 = vadd.f32 1.0, %v2244_v24  ;;  %v1590_v52 = vxor.u32 2147516416, %v1510_v25  ;;  %3563 = vmatpush.msra.mxu2 %v3381_v17  ;;  %v8987_v58 = vpop.eup %7136  ;;  %v2405_v60 = vadd.f32 1.0, %v2245_v59 }
 0x25f   : > { %v2406_v42 = vadd.f32 1.0, %v2246_v43  ;;  %v1723_v36 = vunpack.c.l.bf16 %v1589_v34  ;;  %v1724_v10 = vunpack.c.h.bf16 %v1589_v34  ;;  %v8989_v27 = vpop.eup %7138  ;;  %v3091_v48 = vmul.f32 %v8944_v33, %v7984_v28  ;;  %v1162_v34 = vpop.f32.mrf.mxu2 }
 0x260   : > { %v3093_v26 = vmul.f32 %v8946_v56, %v7989_v31  ;;  %7146 = vrcp.f32 %v2745_v8  ;;  %3564 = vmatpush.msra.mxu2 %v3361_v45  ;;  %v10775_v0 = vunpack.c.l.bf16 %v8820_v37  ;;  %v8998_v30 = vpop.eup %7140  ;;  %v2139_v24 = vpack.c.bf16 %v7135_v20, %v7133_v53 }
 0x261   : > { %7148 = vrcp.f32 %v2746_v2  ;;  %v1991_v12 = vmul.f32 1.442695, %v1723_v36  ;;  %v1993_v59 = vmul.f32 1.442695, %v1724_v10  ;;  %v7143_v43 = vpop.eup %7142  ;;  %v2529_v25 = vpack.c.bf16 %v2404_v4, %v2403_v18 }
 0x262   : > { %v3341_v40 = vmul.f32 %v10775_v0, %v8526_v51  ;;  %7150 = vrcp.f32 %v2752_v49  ;;  %v1725_v33 = vunpack.c.l.bf16 %v1590_v52  ;;  %v1726_v17 = vunpack.c.h.bf16 %v1590_v52  ;;  %v1191_v0 = vpop.f32.mrf.mxu3 }
 0x263   : > { %v7145_v56 = vpop.eup %7144  ;;  %7152 = vrcp.f32 %v2753_v29  ;;  %v2530_v8 = vpack.c.bf16 %v2406_v42, %v2405_v60  ;;  %v9001_v14 = vadd.f32 %v1160_v16, %v8738_v5  ;;  %v9004_v51 = vadd.f32 %v1189_v15, %v8755_v22  ;;  %v1133_v16 = vpop.f32.mrf.mxu1 }
 0x264   : > { %3565 = vmatpush.msra.mxu2 %v3341_v40  ;;  %v9006_v37 = vpack.c.bf16 %v3091_v48, %v3093_v26  ;;  %7154 = vpow2.f32 %v1991_v12  ;;  %v1995_v53 = vmul.f32 1.442695, %v1725_v33  ;;  %v9009_v45 = vadd.f32 %v1131_v6, %v8747_v47 }
 0x265   : > { %v2263_v20 = vunpack.c.l.bf16 %v2139_v24  ;;  %v2264_v2 = vunpack.c.h.bf16 %v2139_v24  ;;  %7156 = vpow2.f32 %v1993_v59  ;;  %v9013_v49 = vadd.f32 %v1218_v35, %v8760_v38 }
 0x266   : > { %3566 = vmatpush.msra.mxu2 %v8930_v7  ;;  %v9015_v29 = vpop.eup %7146  ;;  %v2815_v18 = vunpack.c.h.bf16 %v2529_v25  ;;  %v2140_v4 = vpack.c.bf16 %v7145_v56, %v7143_v43  ;;  %v1997_v52 = vmul.f32 1.442695, %v1726_v17  ;;  %v1519_v15 = vpack.c.bf16 %v9001_v14, %v9009_v45  ;;  %v1220_v17 = vpop.f32.mrf.mxu0 }
 0x267   : > { %10776 = vst [vmem:[#allocation12_spill] sm:$0xff] %v9013_v49  ;;  %v9020_v6 = vpop.eup %7148  ;;  %v2816_v7 = vunpack.c.l.bf16 %v2529_v25  ;;  %v2822_v60 = vunpack.c.h.bf16 %v2530_v8  ;;  %v2823_v42 = vunpack.c.l.bf16 %v2530_v8  ;;  %v1520_v36 = vpack.c.bf16 %v9013_v49, %v9004_v51 }
 0x268   : > { %3567 = vmatpush.msra.mxu2 %v8925_v41  ;;  %v9024_v10 = vpop.eup %7150  ;;  %7158 = vpow2.f32 %v1995_v53  ;;  %v1599_v48 = vxor.u32 2147516416, %v1519_v15  ;;  %v9027_v26 = vadd.f32 %v1133_v16, %v8747_v47  ;;  %v9030_v35 = vadd.f32 %v1162_v34, %v8738_v5 }
 0x269   : > { %v9032_v41 = vpop.eup %7152  ;;  %v2423_v40 = vadd.f32 1.0, %v2263_v20  ;;  %v2424_v24 = vadd.f32 1.0, %v2264_v2  ;;  %7160 = vpow2.f32 %v1997_v52  ;;  %v1600_v12 = vxor.u32 2147516416, %v1520_v36 }
 0x26a   : > { %v7155_v59 = vpop.eup %7154  ;;  %v2265_v43 = vunpack.c.l.bf16 %v2140_v4  ;;  %v1743_v25 = vunpack.c.l.bf16 %v1599_v48  ;;  %v1744_v33 = vunpack.c.h.bf16 %v1599_v48  ;;  %v1529_v56 = vpack.c.bf16 %v9030_v35, %v9027_v26 }
 0x26b   : > { %v7157_v47 = vpop.eup %7156  ;;  %7162 = vrcp.f32 %v2815_v18  ;;  %v1745_v8 = vunpack.c.l.bf16 %v1600_v12  ;;  %v1746_v5 = vunpack.c.h.bf16 %v1600_v12  ;;  %v9037_v53 = vadd.f32 %v1191_v0, %v8755_v22 }
 0x26c   : > { %7164 = vrcp.f32 %v2816_v7  ;;  %v2266_v20 = vunpack.c.h.bf16 %v2140_v4  ;;  %v2149_v2 = vpack.c.bf16 %v7157_v47, %v7155_v59  ;;  %v2031_v16 = vmul.f32 1.442695, %v1743_v25 }
 0x26d   : > { %7166 = vrcp.f32 %v2822_v60  ;;  %v2033_v34 = vmul.f32 1.442695, %v1744_v33  ;;  %v9040_v52 = vadd.f32 %v1220_v17, %v8760_v38  ;;  %v1609_v15 = vxor.u32 2147516416, %v1529_v56 }
 0x26e   : > { %v7159_v36 = vpop.eup %7158  ;;  %7168 = vrcp.f32 %v2823_v42  ;;  %v9042_v48 = vpack.c.bf16 %v2424_v24, %v2423_v40  ;;  %v2425_v18 = vadd.f32 1.0, %v2265_v43  ;;  %v2035_v49 = vmul.f32 1.442695, %v1745_v8 }
 0x26f   : > { %10777 = vst [vmem:[#allocation8_spill] sm:$0xff] %v9040_v52  ;;  %v7161_v12 = vpop.eup %7160  ;;  %7170 = vpow2.f32 %v2031_v16  ;;  %v2037_v22 = vmul.f32 1.442695, %v1746_v5  ;;  %v1763_v0 = vunpack.c.l.bf16 %v1609_v15  ;;  %v1530_v4 = vpack.c.bf16 %v9040_v52, %v9037_v53 }
 0x270   : > { %v2426_v7 = vadd.f32 1.0, %v2266_v20  ;;  %v2283_v60 = vunpack.c.l.bf16 %v2149_v2  ;;  %v2284_v59 = vunpack.c.h.bf16 %v2149_v2  ;;  %v1764_v25 = vunpack.c.h.bf16 %v1609_v15 }
 0x271   : > { %v9046_v38 = vpop.eup %7162  ;;  %v2671_v42 = vmul.f32 %v8902_v9, %v7984_v28  ;;  %v2673_v40 = vmul.f32 %v8904_v3, %v7989_v31  ;;  %v2150_v24 = vpack.c.bf16 %v7161_v12, %v7159_v36  ;;  %7172 = vpow2.f32 %v2033_v34 }
 0x272   : > { %v9052_v43 = vpop.eup %7164  ;;  %v9056_v33 = vpack.c.bf16 %v8884_v23, %v8888_v63  ;;  %v9060_v17 = vpack.c.bf16 %v8891_v62, %v8894_v54  ;;  %7174 = vpow2.f32 %v2035_v49  ;;  %v2071_v56 = vmul.f32 1.442695, %v1763_v0 }
 0x273   : > { %v9062_v47 = vpop.eup %7166  ;;  %v3283_v9 = vunpack.c.l.bf16 %v9006_v37  ;;  %v2885_v3 = vunpack.c.h.bf16 %v9042_v48  ;;  %7176 = vpow2.f32 %v2037_v22  ;;  %v1610_v8 = vxor.u32 2147516416, %v1530_v4 }
 0x274   : > { %v9066_v5 = vpop.eup %7168  ;;  %v9068_v20 = vpack.c.bf16 %v2426_v7, %v2425_v18  ;;  %v2443_v23 = vadd.f32 1.0, %v2283_v60  ;;  %v2444_v63 = vadd.f32 1.0, %v2284_v59  ;;  %v2073_v2 = vmul.f32 1.442695, %v1764_v25 }
 0x275   : > { %v7171_v16 = vpop.eup %7170  ;;  %v2285_v62 = vunpack.c.l.bf16 %v2150_v24  ;;  %v2286_v54 = vunpack.c.h.bf16 %v2150_v24  ;;  %v1765_v49 = vunpack.c.l.bf16 %v1610_v8  ;;  %v1766_v34 = vunpack.c.h.bf16 %v1610_v8 }
 0x276   : > { %v9070_v15 = vpack.c.bf16 %v2671_v42, %v2673_v40  ;;  %v3243_v12 = vunpack.c.l.bf16 %v9060_v17  ;;  %7178 = vpow2.f32 %v2071_v56  ;;  %v3443_v0 = vmul.f32 %v3283_v9, %v8732_v32 }
 0x277   : > { %v7173_v22 = vpop.eup %7172  ;;  %v2886_v18 = vunpack.c.l.bf16 %v9042_v48  ;;  %7180 = vrcp.f32 %v2885_v3  ;;  %v2075_v4 = vmul.f32 1.442695, %v1765_v49  ;;  %v2892_v60 = vunpack.c.h.bf16 %v9068_v20 }
 0x278   : > { %v7175_v7 = vpop.eup %7174  ;;  %v9077_v59 = vpack.c.bf16 %v2444_v63, %v2443_v23  ;;  %v2159_v25 = vpack.c.bf16 %v7173_v22, %v7171_v16  ;;  %7182 = vpow2.f32 %v2073_v2  ;;  %v2445_v40 = vadd.f32 1.0, %v2285_v62 }
 0x279   : > { %v7177_v42 = vpop.eup %7176  ;;  %v2446_v24 = vadd.f32 1.0, %v2286_v54  ;;  %v2077_v8 = vmul.f32 1.442695, %v1766_v34  ;;  %v10615_v36 = vlaneseq  ;;  %7184 = vpow2.f32 %v2075_v4 }
 0x27a   : > { %v2303_v56 = vunpack.c.l.bf16 %v2159_v25  ;;  %v2304_v52 = vunpack.c.h.bf16 %v2159_v25  ;;  %v2160_v44 = vpack.c.bf16 %v7177_v42, %v7175_v7  ;;  %v3284_v48 = vunpack.c.h.bf16 %v9006_v37 }
 0x27b   : > { %v3459_v32 = vand.u32 127, %v10615_v36  ;;  %v3264_v9 = vunpack.c.h.bf16 %v8745_v13  ;;  %v2955_v62 = vunpack.c.h.bf16 %v9077_v59  ;;  %7186 = vpow2.f32 %v2077_v8 }
 0x27c   : > { %v7179_v3 = vpop.eup %7178  ;;  %v2463_v23 = vadd.f32 1.0, %v2303_v56  ;;  %v2464_v63 = vadd.f32 1.0, %v2304_v52  ;;  %v2305_v16 = vunpack.c.l.bf16 %v2160_v44  ;;  %v2306_v2 = vunpack.c.h.bf16 %v2160_v44 }
 0x27d   : > { %v9082_v49 = vpop.eup %7180  ;;  %vm3462_vm11 = vcmp.lt.s32.totalorder %v3459_v32, 64  ;;  %v9085_v34 = vpack.c.bf16 %v2446_v24, %v2445_v40  ;;  %v10614_v13 = vmov 0.0   ;;  %v3444_v44 = vmul.f32 %v3284_v48, %v8743_v55 }
 0x27e   : > { %v7183_v54 = vpop.eup %7182  ;;  %v2559_v22 = vpack.c.bf16 %v2464_v63, %v2463_v23  ;;  %v2465_v4 = vadd.f32 1.0, %v2305_v16  ;;  %v2466_v37 = vadd.f32 1.0, %v2306_v2  ;;  %v9088_v25 = vsel %vm3462_vm11, 1.0, %v10614_v13 }
 0x27f   : > { %v2169_v7 = vpack.c.bf16 %v7183_v54, %v7179_v3  ;;  %10778 = vst [vmem:[#allocation41_spill] sm:$0xff] %v9088_v25  ;;  %v3424_v52 = vmul.f32 %v3264_v9, %v8646_v57  ;;  %7188 = vrcp.f32 %v2886_v18  ;;  %5905 = vmatmul.msk.f32.vlgmr.msrb.gmra.mxu1 %vm3468_vm5, %v9088_v25  ;;  %5906 = vmatmul.msk.f32.vlgmr.msrb.gmra.mxu2 %vm3468_vm5, %v9088_v25  ;;  %v7185_v40 = vpop.eup %7184  ;;  %v2956_v24 = vunpack.c.l.bf16 %v9077_v59 }
 0x280   : > { %v3025_v42 = vunpack.c.h.bf16 %v2559_v22  ;;  %v3026_v8 = vunpack.c.l.bf16 %v2559_v22  ;;  %v2560_v56 = vpack.c.bf16 %v2466_v37, %v2465_v4  ;;  %7190 = vrcp.f32 %v2892_v60  ;;  %3600 = vmatpush.msrb.mxu1 %v3443_v0  ;;  %3620 = vmatpush.msrb.mxu2 %v3444_v44 }
 0x281   : > { %v2323_v32 = vunpack.c.l.bf16 %v2169_v7  ;;  %v2324_v3 = vunpack.c.h.bf16 %v2169_v7  ;;  %v3403_v57 = vmul.f32 %v3243_v12, %v8662_v19  ;;  %7192 = vrcp.f32 %v2955_v62  ;;  %5907 = vmatmul.msk.f32.vlgmr.msrb.gmra.mxu3 %vm3468_vm5, %v9088_v25  ;;  %v7187_v18 = vpop.eup %7186  ;;  %v10779_v19 = vld [vmem:[#allocation20_spill] sm:$0xff] }
 0x282   : > { %v2962_v55 = vunpack.c.h.bf16 %v9085_v34  ;;  %7194 = vrcp.f32 %v3025_v42  ;;  %v3032_v48 = vunpack.c.h.bf16 %v2560_v56  ;;  %3601 = vmatpush.msrb.mxu1 %v8771_v11  ;;  %3621 = vmatpush.msrb.mxu2 %v3424_v52  ;;  %v3163_v60 = vunpack.c.l.bf16 %v9070_v15  ;;  %v10781_v52 = vld [vmem:[#allocation9_spill] sm:$0xff] }
 0x283   : > { %v2483_v9 = vadd.f32 1.0, %v2323_v32  ;;  %v2484_v23 = vadd.f32 1.0, %v2324_v3  ;;  %7196 = vrcp.f32 %v3026_v8  ;;  %v3033_v0 = vunpack.c.l.bf16 %v2560_v56  ;;  %v10782_v56 = vld [vmem:[#allocation11_spill] sm:$0xff]  ;;  %v10783_v3 = vld [vmem:[#allocation45_spill] sm:$0xff] }
 0x284   : > { %v2170_v59 = vpack.c.bf16 %v7187_v18, %v7185_v40  ;;  %v10780_v12 = vunpack.c.l.bf16 %v9056_v33  ;;  %v2893_v16 = vunpack.c.l.bf16 %v9068_v20  ;;  %7198 = vrcp.f32 %v2956_v24  ;;  %3602 = vmatpush.msrb.mxu1 %v3403_v57 }
 0x285   : > { %v2569_v2 = vpack.c.bf16 %v2484_v23, %v2483_v9  ;;  %v7189_v62 = vpop.eup %7188  ;;  %7200 = vrcp.f32 %v2962_v55  ;;  %v3244_v11 = vunpack.c.h.bf16 %v9060_v17  ;;  %v2963_v37 = vunpack.c.l.bf16 %v9085_v34  ;;  %v10784_v55 = vld [vmem:[#allocation30_spill] sm:$0xff]  ;;  %v10786_v23 = vld [vmem:[#allocation5_spill] sm:$0xff] }
 0x286   : > { %v3363_v63 = vmul.f32 %v10780_v12, %v10779_v19  ;;  %v2325_v54 = vunpack.c.l.bf16 %v2170_v59  ;;  %v2326_v22 = vunpack.c.h.bf16 %v2170_v59  ;;  %v9108_v4 = vpop.eup %7190  ;;  %7202 = vrcp.f32 %v3032_v48  ;;  %3603 = vmatpush.msrb.mxu1 %v10781_v52  ;;  %v10785_v48 = vld [vmem:[#allocation18_spill] sm:$0xff] }
 0x287   : > { %v3095_v7 = vunpack.c.h.bf16 %v2569_v2  ;;  %v3096_v44 = vunpack.c.l.bf16 %v2569_v2  ;;  %v7193_v42 = vpop.eup %7192  ;;  %7204 = vrcp.f32 %v3033_v0  ;;  %v3404_v40 = vmul.f32 %v3244_v11, %v10782_v56  ;;  %5908 = vmatmul.msk.f32.vlgmr.msra.gmra.mxu1 %vm3468_vm5, %v9088_v25  ;;  %5909 = vmatmul.msk.f32.vlgmr.msra.gmra.mxu2 %vm3468_vm5, %v9088_v25 }
 0x288   : > { %v2485_v20 = vadd.f32 1.0, %v2325_v54  ;;  %v2486_v8 = vadd.f32 1.0, %v2326_v22  ;;  %v7195_v17 = vpop.eup %7194  ;;  %3604 = vmatpush.msrb.mxu1 %v3363_v63  ;;  %v3323_v57 = vmul.f32 %v3163_v60, %v10783_v3  ;;  %v3224_v18 = vunpack.c.h.bf16 %v10784_v55  ;;  %v10787_v54 = vld [vmem:[#allocation39_spill] sm:$0xff] }
 0x289   : > { %7206 = vrcp.f32 %v3095_v7  ;;  %v7197_v34 = vpop.eup %7196  ;;  %3622 = vmatpush.msrb.mxu2 %v3404_v40  ;;  %5910 = vmatmul.msk.f32.vlgmr.msra.gmra.mxu3 %vm3468_vm5, %v9088_v25  ;;  %v9124_v0 = vmul.f32 %v10786_v23, %v7984_v28  ;;  %v3028_v63 = vmul.f32 %v7195_v17, %v7984_v28  ;;  %v3204_v22 = vunpack.c.h.bf16 %v9056_v33  ;;  %v10788_v7 = vld [vmem:[#allocation23_spill] sm:$0xff]  ;;  %v10790_v40 = vld [vmem:[#allocation40_spill] sm:$0xff]  ;;  %v10792_v23 = vld [vmem:[#allocation37_spill] sm:$0xff] }
 0x28a   : > { %7208 = vrcp.f32 %v3096_v44  ;;  %v2570_v24 = vpack.c.bf16 %v2486_v8, %v2485_v20  ;;  %v7199_v32 = vpop.eup %7198  ;;  %3605 = vmatpush.msrb.mxu1 %v10785_v48  ;;  %v3030_v2 = vmul.f32 %v7197_v34, %v7989_v31  ;;  %v3384_v60 = vmul.f32 %v3224_v18, %v10787_v54  ;;  %v10789_v33 = vld [vmem:[#allocation15_spill] sm:$0xff] }
 0x28b   : > { %7210 = vrcp.f32 %v2963_v37  ;;  %v7201_v9 = vpop.eup %7200  ;;  %v9132_v37 = vmul.f32 %v8957_v50, %v7989_v31  ;;  %v3184_v44 = vunpack.c.h.bf16 %v10788_v7  ;;  %v2958_v20 = vmul.f32 %v7193_v42, %v7984_v28 }
 0x28c   : > { %7212 = vrcp.f32 %v2893_v16  ;;  %v3102_v59 = vunpack.c.h.bf16 %v2570_v24  ;;  %v3103_v19 = vunpack.c.l.bf16 %v2570_v24  ;;  %v7203_v12 = vpop.eup %7202  ;;  %3606 = vmatpush.msrb.mxu1 %v3323_v57  ;;  %v9136_v16 = vmul.f32 %v8977_v46, %v7984_v28  ;;  %3623 = vmatpush.msrb.mxu2 %v3384_v60 }
 0x28d   : > { %v7205_v11 = vpop.eup %7204  ;;  %v2960_v8 = vmul.f32 %v7199_v32, %v7989_v31  ;;  %v3364_v56 = vmul.f32 %v3204_v22, %v10789_v33  ;;  %v2748_v17 = vmul.f32 %v9015_v29, %v7984_v28  ;;  %v2888_v46 = vmul.f32 %v9082_v49, %v7984_v28  ;;  %v10791_v29 = vld [vmem:[#allocation31_spill] sm:$0xff]  ;;  %v10793_v22 = vld [vmem:[#allocation25_spill] sm:$0xff] }
 0x28e   : > { %7214 = vrcp.f32 %v3102_v59  ;;  %3607 = vmatpush.msrb.mxu1 %v10790_v40  ;;  %v2890_v34 = vmul.f32 %v7189_v62, %v7989_v31  ;;  %v2750_v32 = vmul.f32 %v9020_v6, %v7989_v31  ;;  %v9153_v3 = vpack.c.bf16 %v3028_v63, %v3030_v2 }
 0x28f   : > { %v7207_v52 = vpop.eup %7206  ;;  %7216 = vrcp.f32 %v3103_v19  ;;  %5911 = vmatmul.msk.f32.vlgmr.msrb.gmra.mxu1 %vm3468_vm5, %v9088_v25  ;;  %3624 = vmatpush.msrb.mxu2 %v3364_v56  ;;  %v3344_v55 = vmul.f32 %v3184_v44, %v10791_v29  ;;  %v3035_v49 = vmul.f32 %v7203_v12, %v7984_v28  ;;  %v3037_v62 = vmul.f32 %v7205_v11, %v7989_v31 }
 0x290   : > { %v7209_v50 = vpop.eup %7208  ;;  %v3098_v24 = vmul.f32 %v7207_v52, %v7984_v28  ;;  %v3164_v48 = vunpack.c.h.bf16 %v9070_v15  ;;  %v3144_v59 = vunpack.c.h.bf16 %v10792_v23  ;;  %v2818_v19 = vmul.f32 %v9046_v38, %v7984_v28  ;;  %v10794_v52 = vld [vmem:[#allocation29_spill] sm:$0xff] }
 0x291   : > { %v7211_v42 = vpop.eup %7210  ;;  %v3100_v57 = vmul.f32 %v7209_v50, %v7989_v31  ;;  %v2820_v6 = vmul.f32 %v9052_v43, %v7989_v31  ;;  %v9165_v63 = vpack.c.bf16 %v2958_v20, %v2960_v8  ;;  %3625 = vmatpush.msrb.mxu2 %v3344_v55  ;;  %v9169_v60 = vpack.c.bf16 %v2888_v46, %v2890_v34 }
 0x292   : > { %v7213_v18 = vpop.eup %7212  ;;  %v2965_v12 = vmul.f32 %v7201_v9, %v7984_v28  ;;  %v2967_v15 = vmul.f32 %v7211_v42, %v7989_v31  ;;  %v3324_v11 = vmul.f32 %v3164_v48, %v10793_v22  ;;  %v3266_v38 = vunpack.c.h.bf16 %v9153_v3 }
 0x293   : > { %v9167_v2 = vpack.c.bf16 %v3098_v24, %v3100_v57  ;;  %v3304_v20 = vmul.f32 %v3144_v59, %v10794_v52  ;;  %v2895_v8 = vmul.f32 %v9108_v4, %v7984_v28  ;;  %v2897_v33 = vmul.f32 %v7213_v18, %v7989_v31  ;;  %v10799_v52 = vld [vmem:[#allocation17_spill] sm:$0xff] }
 0x294   : > { %v7215_v54 = vpop.eup %7214  ;;  %v9181_v56 = vpack.c.bf16 %v3035_v49, %v3037_v62  ;;  %3626 = vmatpush.msrb.mxu2 %v3324_v11  ;;  %v2680_v40 = vmul.f32 %v8987_v58, %v7989_v31  ;;  %v9186_v50 = vpack.c.bf16 %v2818_v19, %v2820_v6  ;;  %v3246_v46 = vunpack.c.h.bf16 %v9165_v63  ;;  %v10797_v11 = vld [vmem:[#allocation10_spill] sm:$0xff] }
 0x295   : > { %v7217_v7 = vpop.eup %7216  ;;  %v3286_v44 = vunpack.c.h.bf16 %v9167_v2  ;;  %v3105_v43 = vmul.f32 %v7215_v54, %v7984_v28  ;;  %v2825_v24 = vmul.f32 %v9062_v47, %v7984_v28  ;;  %v2827_v4 = vmul.f32 %v9066_v5, %v7989_v31 }
 0x296   : > { %v3107_v9 = vmul.f32 %v7217_v7, %v7989_v31  ;;  %v9194_v42 = vpack.c.bf16 %v2965_v12, %v2967_v15  ;;  %3627 = vmatpush.msrb.mxu2 %v3304_v20  ;;  %v9198_v29 = vpack.c.bf16 %v2748_v17, %v2750_v32  ;;  %v2755_v58 = vmul.f32 %v9024_v10, %v7984_v28 }
 0x297   : > { %v3446_v34 = vmul.f32 %v3286_v44, %v9030_v35  ;;  %v3226_v55 = vunpack.c.h.bf16 %v9169_v60  ;;  %v3426_v35 = vmul.f32 %v3266_v38, %v9001_v14  ;;  %5912 = vmatmul.msk.f32.vlgmr.msrb.gmra.mxu2 %vm3468_vm5, %v9088_v25  ;;  %v2757_v47 = vmul.f32 %v9032_v41, %v7989_v31  ;;  %v10798_v44 = vld [vmem:[#allocation26_spill] sm:$0xff] }
 0x298   : > { %v9196_v57 = vpack.c.bf16 %v3105_v43, %v3107_v9  ;;  %v9208_v5 = vpack.c.bf16 %v2895_v8, %v2897_v33  ;;  %v3267_v18 = vunpack.c.l.bf16 %v9181_v56  ;;  %v9213_v32 = vpack.c.bf16 %v9136_v16, %v2680_v40  ;;  %v10800_v33 = vld [vmem:[#allocation43_spill] sm:$0xff]  ;;  %v10801_v9 = vld [vmem:[#allocation44_spill] sm:$0xff] }
 0x299   : > { %3660 = vmatpush.msra.mxu1 %v3446_v34  ;;  %v2685_v10 = vmul.f32 %v8989_v27, %v7984_v28  ;;  %v3206_v14 = vunpack.c.h.bf16 %v9186_v50  ;;  %v3406_v49 = vmul.f32 %v3246_v46, %v8963_v1  ;;  %v2687_v41 = vmul.f32 %v8998_v30, %v7989_v31  ;;  %v10795_v1 = vld [vmem:[#allocation27_spill] sm:$0xff]  ;;  %v1261_v46 = vpop.f32.mrf.mxu2 }
 0x29a   : > { %v3287_v17 = vunpack.c.l.bf16 %v9196_v57  ;;  %v9221_v62 = vpack.c.bf16 %v2825_v24, %v2827_v4  ;;  %v3247_v48 = vunpack.c.l.bf16 %v9194_v42  ;;  %v9227_v16 = vpack.c.bf16 %v9124_v0, %v9132_v37  ;;  %v10796_v37 = vld [vmem:[#allocation34_spill] sm:$0xff]  ;;  %v10802_v24 = vld [vmem:[#allocation33_spill] sm:$0xff] }
 0x29b   : > { %3661 = vmatpush.msra.mxu1 %v3426_v35  ;;  %v2615_v27 = vmul.f32 %v8960_v21, %v7984_v28  ;;  %v3186_v59 = vunpack.c.h.bf16 %v9198_v29  ;;  %v3386_v19 = vmul.f32 %v3226_v55, %v10795_v1  ;;  %v2617_v30 = vmul.f32 %v8965_v61, %v7989_v31  ;;  %v10803_v55 = vld [vmem:[#allocation14_spill] sm:$0xff] }
 0x29c   : > { %v3447_v23 = vmul.f32 %v3287_v17, %v9037_v53  ;;  %v9235_v6 = vpack.c.bf16 %v2755_v58, %v2757_v47  ;;  %v3227_v54 = vunpack.c.l.bf16 %v9208_v5  ;;  %v3427_v53 = vmul.f32 %v3267_v18, %v9004_v51  ;;  %v1232_v58 = vpop.f32.mrf.mxu1  ;;  %v7475_v47 = vld [vmem:[%s10539_s4 + $0x8] sm:$0xff]  ;;  %v10804_v17 = vld [vmem:[#allocation32_spill] sm:$0xff] }
 0x29d   : > { %3662 = vmatpush.msra.mxu1 %v3406_v49  ;;  %v3166_v0 = vunpack.c.h.bf16 %v9213_v32  ;;  %v3366_v12 = vmul.f32 %v3206_v14, %v10796_v37  ;;  %v9241_v21 = vpack.c.bf16 %v2685_v10, %v2687_v41  ;;  %v3207_v15 = vunpack.c.l.bf16 %v9221_v62  ;;  %v1290_v41 = vpop.f32.mrf.mxu3 }
 0x29e   : > { %3680 = vmatpush.msra.mxu2 %v3447_v23  ;;  %v3407_v22 = vmul.f32 %v3247_v48, %v8972_v39  ;;  %v3146_v61 = vunpack.c.h.bf16 %v9227_v16  ;;  %v3346_v7 = vmul.f32 %v3186_v59, %v10797_v11  ;;  %v9247_v38 = vpack.c.bf16 %v2615_v27, %v2617_v30  ;;  %v1319_v23 = vpop.f32.mrf.mxu0 }
 0x29f   : > { %3663 = vmatpush.msra.mxu1 %v3386_v19  ;;  %v3187_v51 = vunpack.c.l.bf16 %v9235_v6  ;;  %v3387_v43 = vmul.f32 %v3227_v54, %v10798_v44  ;;  %v3326_v20 = vmul.f32 %v3166_v0, %v10799_v52  ;;  %v3167_v8 = vunpack.c.l.bf16 %v9241_v21 }
 0x2a0   : > { %3681 = vmatpush.msra.mxu2 %v3427_v53  ;;  %v3367_v39 = vmul.f32 %v3207_v15, %v10800_v33  ;;  %v3306_v40 = vmul.f32 %v3146_v61, %v10801_v9  ;;  %v3147_v34 = vunpack.c.l.bf16 %v9247_v38  ;;  %v9261_v18 = vperm.slane %v7475_v47, 5 }
 0x2a1   : > { %3664 = vmatpush.msra.mxu1 %v3366_v12  ;;  %v3347_v4 = vmul.f32 %v3187_v51, %v10802_v24  ;;  %v3327_v35 = vmul.f32 %v3167_v8, %v10803_v55  ;;  %v9266_v14 = vperm.slane %v7475_v47, 4  ;;  %v9268_v49 = vperm.slane %v7475_v47, 6  ;;  %v1263_v19 = vpop.f32.mrf.mxu2 }
 0x2a2   : > { %3682 = vmatpush.msra.mxu2 %v3407_v22  ;;  %v3307_v10 = vmul.f32 %v3147_v34, %v10804_v17  ;;  %v9270_v48 = vperm.slane %v7475_v47, 7  ;;  %v9273_v27 = vadd.f32 %v1261_v46, %v9261_v18  ;;  %v9291_v37 = vadd.f32 %v1263_v19, %v9261_v18 }
 0x2a3   : > { %3665 = vmatpush.msra.mxu1 %v3346_v7  ;;  %v9278_v59 = vadd.f32 %v1232_v58, %v9266_v14  ;;  %v9281_v1 = vadd.f32 %v1290_v41, %v9268_v49 }
 0x2a4   : > { %3683 = vmatpush.msra.mxu2 %v3387_v43  ;;  %v9284_v30 = vadd.f32 %v1319_v23, %v9270_v48  ;;  %v1234_v53 = vpop.f32.mrf.mxu1 }
 0x2a5   : > { %3666 = vmatpush.msra.mxu1 %v3326_v20  ;;  %10805 = vst [vmem:[#allocation35_spill] sm:$0xff] %v9278_v59  ;;  %v1461_v54 = vpack.c.bf16 %v9273_v27, %v9278_v59  ;;  %v1292_v15 = vpop.f32.mrf.mxu3  ;;  %v9294_v22 = vadd.f32 %v1234_v53, %v9266_v14 }
 0x2a6   : > { %3684 = vmatpush.msra.mxu2 %v3367_v39  ;;  %10806 = vst [vmem:[#allocation36_spill] sm:$0xff] %v9281_v1  ;;  %v1462_v0 = vpack.c.bf16 %v9284_v30, %v9281_v1  ;;  %v1321_v11 = vpop.f32.mrf.mxu0  ;;  %v9299_v44 = vadd.f32 %v1292_v15, %v9268_v49 }
 0x2a7   : > { %3667 = vmatpush.msra.mxu1 %v3306_v40  ;;  %10807 = vst [vmem:[#allocation42_spill] sm:$0xff] %v9284_v30  ;;  %v1541_v12 = vxor.u32 2147516416, %v1461_v54  ;;  %v1471_v7 = vpack.c.bf16 %v9291_v37, %v9294_v22  ;;  %v9302_v8 = vadd.f32 %v1321_v11, %v9270_v48 }
 0x2a8   : > { %3685 = vmatpush.msra.mxu2 %v3347_v4  ;;  %5914 = vmatmul.msk.f32.vlgmr.msra.gmra.mxu1 %vm3468_vm5, %v9088_v25  ;;  %10808 = vst [vmem:[#allocation20_spill] sm:$0xff] %v9294_v22  ;;  %v1542_v61 = vxor.u32 2147516416, %v1462_v0 }
 0x2a9   : > { %v1627_v51 = vunpack.c.l.bf16 %v1541_v12  ;;  %v1628_v43 = vunpack.c.h.bf16 %v1541_v12  ;;  %v1266_v52 = vpop.f32.mrf.mxu2  ;;  %10809 = vst [vmem:[#allocation9_spill] sm:$0xff] %v9302_v8  ;;  %v1551_v39 = vxor.u32 2147516416, %v1471_v7  ;;  %v1472_v46 = vpack.c.bf16 %v9302_v8, %v9299_v44 }
 0x2aa   : > { %3686 = vmatpush.msra.mxu2 %v3327_v35  ;;  %v1629_v20 = vunpack.c.l.bf16 %v1542_v61  ;;  %v1630_v33 = vunpack.c.h.bf16 %v1542_v61  ;;  %v9307_v34 = vadd.f32 %v1266_v52, %v9261_v18 }
 0x2ab   : > { %v1799_v40 = vmul.f32 1.442695, %v1627_v51  ;;  %v1801_v24 = vmul.f32 1.442695, %v1628_v43  ;;  %v1647_v47 = vunpack.c.l.bf16 %v1551_v39  ;;  %v1648_v17 = vunpack.c.h.bf16 %v1551_v39 }
 0x2ac   : > { %3687 = vmatpush.msra.mxu2 %v3307_v10  ;;  %v1237_v9 = vpop.f32.mrf.mxu1  ;;  %v1803_v4 = vmul.f32 1.442695, %v1629_v20  ;;  %v1805_v35 = vmul.f32 1.442695, %v1630_v33  ;;  %v1552_v10 = vxor.u32 2147516416, %v1472_v46 }
 0x2ad   : > { %5915 = vmatmul.msk.f32.vlgmr.msra.gmra.mxu2 %vm3468_vm5, %v9088_v25  ;;  %v9310_v58 = vadd.f32 %v1237_v9, %v9266_v14  ;;  %v1295_v55 = vpop.f32.mrf.mxu3  ;;  %7218 = vpow2.f32 %v1799_v40  ;;  %v1839_v54 = vmul.f32 1.442695, %v1647_v47  ;;  %v1841_v0 = vmul.f32 1.442695, %v1648_v17 }
 0x2ae   : > { %v1324_v41 = vpop.f32.mrf.mxu0  ;;  %7220 = vpow2.f32 %v1801_v24  ;;  %v9315_v19 = vadd.f32 %v1295_v55, %v9268_v49  ;;  %v1649_v12 = vunpack.c.l.bf16 %v1552_v10  ;;  %v1650_v61 = vunpack.c.h.bf16 %v1552_v10 }
 0x2af   : > { %10810 = vst [vmem:[#allocation11_spill] sm:$0xff] %v9310_v58  ;;  %v1481_v23 = vpack.c.bf16 %v9307_v34, %v9310_v58  ;;  %7222 = vpow2.f32 %v1803_v4  ;;  %v9318_v53 = vadd.f32 %v1324_v41, %v9270_v48 }
 0x2b0   : > { %7224 = vpow2.f32 %v1805_v35  ;;  %v1843_v20 = vmul.f32 1.442695, %v1649_v12  ;;  %v1845_v9 = vmul.f32 1.442695, %v1650_v61 }
 0x2b1   : > { %10811 = vst [vmem:[#allocation45_spill] sm:$0xff] %v9318_v53  ;;  %v1561_v15 = vxor.u32 2147516416, %v1481_v23  ;;  %v1482_v11 = vpack.c.bf16 %v9318_v53, %v9315_v19  ;;  %7226 = vpow2.f32 %v1839_v54  ;;  %v1268_v43 = vpop.f32.mrf.mxu2 }
 0x2b2   : > { %7228 = vpow2.f32 %v1841_v0  ;;  %v9323_v4 = vadd.f32 %v1268_v43, %v9261_v18 }
 0x2b3   : > { %v7219_v7 = vpop.eup %7218  ;;  %v1667_v33 = vunpack.c.l.bf16 %v1561_v15  ;;  %v1668_v40 = vunpack.c.h.bf16 %v1561_v15  ;;  %v1562_v46 = vxor.u32 2147516416, %v1482_v11  ;;  %7230 = vpow2.f32 %v1843_v20 }
 0x2b4   : > { %v7221_v51 = vpop.eup %7220  ;;  %v1239_v24 = vpop.f32.mrf.mxu1  ;;  %7232 = vpow2.f32 %v1845_v9 }
 0x2b5   : > { %v7223_v52 = vpop.eup %7222  ;;  %v2101_v55 = vpack.c.bf16 %v7221_v51, %v7219_v7  ;;  %v1879_v47 = vmul.f32 1.442695, %v1667_v33  ;;  %v9326_v17 = vadd.f32 %v1239_v24, %v9266_v14  ;;  %v1881_v41 = vmul.f32 1.442695, %v1668_v40  ;;  %v1297_v51 = vpop.f32.mrf.mxu3 }
 0x2b6   : > { %v7225_v39 = vpop.eup %7224  ;;  %v1669_v23 = vunpack.c.l.bf16 %v1562_v46  ;;  %v1670_v0 = vunpack.c.h.bf16 %v1562_v46  ;;  %v1326_v61 = vpop.f32.mrf.mxu0  ;;  %v9331_v33 = vadd.f32 %v1297_v51, %v9268_v49 }
 0x2b7   : > { %v2102_v35 = vpack.c.bf16 %v7225_v39, %v7223_v52  ;;  %10812 = vst [vmem:[#allocation30_spill] sm:$0xff] %v9326_v17  ;;  %v7227_v10 = vpop.eup %7226  ;;  %v1491_v12 = vpack.c.bf16 %v9323_v4, %v9326_v17  ;;  %v2187_v15 = vunpack.c.l.bf16 %v2101_v55  ;;  %v2188_v11 = vunpack.c.h.bf16 %v2101_v55 }
 0x2b8   : > { %v7229_v54 = vpop.eup %7228  ;;  %7234 = vpow2.f32 %v1879_v47  ;;  %v1883_v20 = vmul.f32 1.442695, %v1669_v23  ;;  %v1885_v9 = vmul.f32 1.442695, %v1670_v0  ;;  %v9334_v40 = vadd.f32 %v1326_v61, %v9270_v48 }
 0x2b9   : > { %v2189_v43 = vunpack.c.l.bf16 %v2102_v35  ;;  %v2190_v7 = vunpack.c.h.bf16 %v2102_v35  ;;  %v2111_v52 = vpack.c.bf16 %v7229_v54, %v7227_v10  ;;  %7236 = vpow2.f32 %v1881_v41  ;;  %v7231_v39 = vpop.eup %7230 }
 0x2ba   : > { %10813 = vst [vmem:[#allocation18_spill] sm:$0xff] %v9334_v40  ;;  %v1571_v46 = vxor.u32 2147516416, %v1491_v12  ;;  %v7233_v24 = vpop.eup %7232  ;;  %v2347_v13 = vadd.f32 1.0, %v2187_v15  ;;  %v2348_v36 = vadd.f32 1.0, %v2188_v11  ;;  %v1492_v35 = vpack.c.bf16 %v9334_v40, %v9331_v33 }
 0x2bb   : > { %v2349_v55 = vadd.f32 1.0, %v2189_v43  ;;  %v2350_v30 = vadd.f32 1.0, %v2190_v7  ;;  %v2207_v47 = vunpack.c.l.bf16 %v2111_v52  ;;  %v2208_v10 = vunpack.c.h.bf16 %v2111_v52 }
 0x2bc   : > { %7238 = vpow2.f32 %v1883_v20  ;;  %v2112_v23 = vpack.c.bf16 %v7233_v24, %v7231_v39  ;;  %v1687_v54 = vunpack.c.l.bf16 %v1571_v46  ;;  %v1688_v51 = vunpack.c.h.bf16 %v1571_v46  ;;  %v1242_v40 = vpop.f32.mrf.mxu1  ;;  %v1271_v24 = vpop.f32.mrf.mxu2 }
 0x2bd   : > { %7240 = vpow2.f32 %v1885_v9  ;;  %v2501_v61 = vpack.c.bf16 %v2348_v36, %v2347_v13  ;;  %v2502_v59 = vpack.c.bf16 %v2350_v30, %v2349_v55  ;;  %v1572_v12 = vxor.u32 2147516416, %v1492_v35 }
 0x2be   : > { %v7235_v41 = vpop.eup %7234  ;;  %v2367_v8 = vadd.f32 1.0, %v2207_v47  ;;  %v2368_v15 = vadd.f32 1.0, %v2208_v10  ;;  %v2209_v11 = vunpack.c.l.bf16 %v2112_v23  ;;  %v2210_v43 = vunpack.c.h.bf16 %v2112_v23 }
 0x2bf   : > { %v7237_v0 = vpop.eup %7236  ;;  %v1919_v22 = vmul.f32 1.442695, %v1687_v54  ;;  %v1921_v58 = vmul.f32 1.442695, %v1688_v51  ;;  %v2619_v20 = vunpack.c.h.bf16 %v2501_v61  ;;  %v2620_v17 = vunpack.c.l.bf16 %v2501_v61 }
 0x2c0   : > { %v2121_v7 = vpack.c.bf16 %v7237_v0, %v7235_v41  ;;  %v2626_v39 = vunpack.c.h.bf16 %v2502_v59  ;;  %v1689_v9 = vunpack.c.l.bf16 %v1572_v12  ;;  %v2511_v1 = vpack.c.bf16 %v2368_v15, %v2367_v8 }
 0x2c1   : > { %v1690_v46 = vunpack.c.h.bf16 %v1572_v12  ;;  %v9339_v36 = vadd.f32 %v1242_v40, %v9266_v14  ;;  %v9342_v13 = vadd.f32 %v1271_v24, %v9261_v18  ;;  %v2369_v30 = vadd.f32 1.0, %v2209_v11 }
 0x2c2   : > { %v7239_v53 = vpop.eup %7238  ;;  %v2370_v55 = vadd.f32 1.0, %v2210_v43  ;;  %v2227_v35 = vunpack.c.l.bf16 %v2121_v7  ;;  %7242 = vpow2.f32 %v1919_v22  ;;  %v2228_v47 = vunpack.c.h.bf16 %v2121_v7  ;;  %v1329_v43 = vpop.f32.mrf.mxu0 }
 0x2c3   : > { %v7241_v52 = vpop.eup %7240  ;;  %10814 = vst [vmem:[#allocation5_spill] sm:$0xff] %v9339_v36  ;;  %7244 = vpow2.f32 %v1921_v58  ;;  %v1501_v41 = vpack.c.bf16 %v9342_v13, %v9339_v36  ;;  %v1923_v23 = vmul.f32 1.442695, %v1689_v9  ;;  %v1925_v8 = vmul.f32 1.442695, %v1690_v46 }
 0x2c4   : > { %v2122_v10 = vpack.c.bf16 %v7241_v52, %v7239_v53  ;;  %7246 = vrcp.f32 %v2619_v20  ;;  %v2627_v40 = vunpack.c.l.bf16 %v2502_v59  ;;  %v2689_v0 = vunpack.c.h.bf16 %v2511_v1 }
 0x2c5   : > { %7248 = vrcp.f32 %v2620_v17  ;;  %v1581_v54 = vxor.u32 2147516416, %v1501_v41  ;;  %v2512_v51 = vpack.c.bf16 %v2370_v55, %v2369_v30  ;;  %v2387_v61 = vadd.f32 1.0, %v2227_v35  ;;  %v1300_v30 = vpop.f32.mrf.mxu3 }
 0x2c6   : > { %7250 = vrcp.f32 %v2626_v39  ;;  %v2388_v12 = vadd.f32 1.0, %v2228_v47  ;;  %v2229_v15 = vunpack.c.l.bf16 %v2122_v10  ;;  %v2230_v22 = vunpack.c.h.bf16 %v2122_v10 }
 0x2c7   : > { %7252 = vpow2.f32 %v1923_v23  ;;  %v2690_v58 = vunpack.c.l.bf16 %v2511_v1  ;;  %v1707_v7 = vunpack.c.l.bf16 %v1581_v54  ;;  %v3145_v52 = vunpack.c.l.bf16 %v9227_v16  ;;  %v10816_v23 = vld [vmem:[#allocation7_spill] sm:$0xff] }
 0x2c8   : > { %v7243_v11 = vpop.eup %7242  ;;  %7254 = vpow2.f32 %v1925_v8  ;;  %v1708_v59 = vunpack.c.h.bf16 %v1581_v54  ;;  %v2696_v9 = vunpack.c.h.bf16 %v2512_v51  ;;  %v2521_v24 = vpack.c.bf16 %v2388_v12, %v2387_v61 }
 0x2c9   : > { %v7245_v53 = vpop.eup %7244  ;;  %7256 = vrcp.f32 %v2627_v40  ;;  %v2389_v46 = vadd.f32 1.0, %v2229_v15  ;;  %v2390_v1 = vadd.f32 1.0, %v2230_v22  ;;  %v9355_v47 = vadd.f32 %v1329_v43, %v9270_v48 }
 0x2ca   : > { %v9347_v17 = vpop.eup %7246  ;;  %7258 = vrcp.f32 %v2689_v0  ;;  %v2131_v35 = vpack.c.bf16 %v7245_v53, %v7243_v11  ;;  %v9358_v16 = vadd.f32 %v1300_v30, %v9268_v49  ;;  %v1959_v10 = vmul.f32 1.442695, %v1707_v7 }
 0x2cb   : > { %v9350_v39 = vpop.eup %7248  ;;  %10815 = vst [vmem:[#allocation39_spill] sm:$0xff] %v9355_v47  ;;  %7260 = vrcp.f32 %v2690_v58  ;;  %v3165_v41 = vunpack.c.l.bf16 %v9213_v32  ;;  %v9362_v8 = vmul.f32 %v3145_v52, %v10816_v23  ;;  %v2697_v40 = vunpack.c.l.bf16 %v2512_v51 }
 0x2cc   : > { %v9352_v55 = vpop.eup %7250  ;;  %v1961_v0 = vmul.f32 1.442695, %v1708_v59  ;;  %v1502_v61 = vpack.c.bf16 %v9355_v47, %v9358_v16  ;;  %7262 = vrcp.f32 %v2696_v9  ;;  %v2759_v11 = vunpack.c.h.bf16 %v2521_v24 }
 0x2cd   : > { %v7253_v54 = vpop.eup %7252  ;;  %v3285_v22 = vunpack.c.l.bf16 %v9167_v2  ;;  %v3265_v53 = vunpack.c.l.bf16 %v9153_v3  ;;  %v2760_v32 = vunpack.c.l.bf16 %v2521_v24  ;;  %v9371_v43 = vpack.c.bf16 %v2390_v1, %v2389_v46  ;;  %v1244_v3 = vpop.f32.mrf.mxu1 }
 0x2ce   : > { %v7255_v15 = vpop.eup %7254  ;;  %v2247_v7 = vunpack.c.l.bf16 %v2131_v35  ;;  %v1582_v51 = vxor.u32 2147516416, %v1502_v61  ;;  %v2248_v59 = vunpack.c.h.bf16 %v2131_v35  ;;  %7264 = vpow2.f32 %v1959_v10  ;;  %v1331_v24 = vpop.f32.mrf.mxu0  ;;  %v10817_v35 = vld [vmem:[#allocation19_spill] sm:$0xff] }
 0x2cf   : > { %v9369_v58 = vpop.eup %7256  ;;  %v3445_v30 = vmul.f32 %v3285_v22, %v9027_v26  ;;  %v3245_v9 = vunpack.c.l.bf16 %v9165_v63  ;;  %v2132_v23 = vpack.c.bf16 %v7255_v15, %v7253_v54  ;;  %7266 = vpow2.f32 %v1961_v0  ;;  %v10818_v22 = vld [vmem:[#allocation21_spill] sm:$0xff] }
 0x2d0   : > { %v9373_v52 = vpop.eup %7258  ;;  %v1709_v2 = vunpack.c.l.bf16 %v1582_v51  ;;  %v1710_v20 = vunpack.c.h.bf16 %v1582_v51  ;;  %7268 = vrcp.f32 %v2697_v40  ;;  %v3425_v46 = vmul.f32 %v3265_v53, %v9009_v45  ;;  %v1273_v53 = vpop.f32.mrf.mxu2 }
 0x2d1   : > { %v9377_v12 = vpop.eup %7260  ;;  %3640 = vmatpush.msrb.mxu3 %v3445_v30  ;;  %v3225_v1 = vunpack.c.l.bf16 %v9169_v60  ;;  %v9382_v10 = vmul.f32 %v3165_v41, %v10817_v35  ;;  %v3205_v63 = vunpack.c.l.bf16 %v9186_v50  ;;  %v3185_v54 = vunpack.c.l.bf16 %v9198_v29 }
 0x2d2   : > { %v1963_v26 = vmul.f32 1.442695, %v1709_v2  ;;  %v1965_v61 = vmul.f32 1.442695, %v1710_v20  ;;  %v9386_v0 = vpop.eup %7262  ;;  %7270 = vrcp.f32 %v2759_v11  ;;  %v2407_v15 = vadd.f32 1.0, %v2247_v7  ;;  %v10820_v20 = vld [vmem:[#allocation28_spill] sm:$0xff] }
 0x2d3   : > { %v2408_v40 = vadd.f32 1.0, %v2248_v59  ;;  %3641 = vmatpush.msrb.mxu3 %v3425_v46  ;;  %v3405_v51 = vmul.f32 %v3245_v9, %v10818_v22  ;;  %7272 = vrcp.f32 %v2760_v32  ;;  %v2766_v45 = vunpack.c.h.bf16 %v9371_v43  ;;  %v1302_v32 = vpop.f32.mrf.mxu3  ;;  %v10821_v9 = vld [vmem:[#allocation38_spill] sm:$0xff] }
 0x2d4   : > { %v2249_v60 = vunpack.c.l.bf16 %v2132_v23  ;;  %v2250_v41 = vunpack.c.h.bf16 %v2132_v23  ;;  %v7265_v30 = vpop.eup %7264  ;;  %7274 = vpow2.f32 %v1963_v26  ;;  %v9391_v50 = vadd.f32 %v1244_v3, %v9266_v14 }
 0x2d5   : > { %3642 = vmatpush.msrb.mxu3 %v3405_v51  ;;  %v9394_v29 = vadd.f32 %v1273_v53, %v9261_v18  ;;  %v3385_v11 = vmul.f32 %v3225_v1, %v10820_v20  ;;  %v7267_v7 = vpop.eup %7266  ;;  %v2767_v59 = vunpack.c.l.bf16 %v9371_v43  ;;  %7276 = vpow2.f32 %v1965_v61  ;;  %v10823_v53 = vld [vmem:[#allocation13_spill] sm:$0xff] }
 0x2d6   : > { %10819 = vst [vmem:[#allocation23_spill] sm:$0xff] %v9391_v50  ;;  %v3365_v2 = vmul.f32 %v3205_v63, %v10821_v9  ;;  %v9400_v46 = vpop.eup %7268  ;;  %v9402_v35 = vpack.c.bf16 %v2408_v40, %v2407_v15  ;;  %v9407_v26 = vadd.f32 %v1302_v32, %v9268_v49  ;;  %v3248_v1 = vunpack.c.h.bf16 %v9194_v42  ;;  %v10824_v9 = vld [vmem:[#allocation16_spill] sm:$0xff] }
 0x2d7   : > { %v1511_v3 = vpack.c.bf16 %v9394_v29, %v9391_v50  ;;  %3643 = vmatpush.msrb.mxu3 %v3385_v11  ;;  %v2409_v43 = vadd.f32 1.0, %v2249_v60  ;;  %v2410_v61 = vadd.f32 1.0, %v2250_v41  ;;  %v9411_v22 = vadd.f32 %v1331_v24, %v9270_v48  ;;  %v1247_v60 = vpop.f32.mrf.mxu1 }
 0x2d8   : > { %v3288_v63 = vunpack.c.h.bf16 %v9196_v57  ;;  %v9414_v51 = vpop.eup %7270  ;;  %7278 = vrcp.f32 %v2766_v45  ;;  %v2141_v15 = vpack.c.bf16 %v7267_v7, %v7265_v30  ;;  %v3345_v20 = vmul.f32 %v3185_v54, %v10823_v53  ;;  %v1334_v7 = vpop.f32.mrf.mxu0  ;;  %v10825_v53 = vld [vmem:[#allocation8_spill] sm:$0xff] }
 0x2d9   : > { %10822 = vst [vmem:[#allocation15_spill] sm:$0xff] %v9411_v22  ;;  %v1591_v40 = vxor.u32 2147516416, %v1511_v3  ;;  %3644 = vmatpush.msrb.mxu3 %v3365_v2  ;;  %v9417_v32 = vpop.eup %7272  ;;  %7280 = vrcp.f32 %v2767_v59  ;;  %v1512_v42 = vpack.c.bf16 %v9411_v22, %v9407_v26  ;;  %v3228_v24 = vunpack.c.h.bf16 %v9208_v5 }
 0x2da   : > { %v7275_v57 = vpop.eup %7274  ;;  %v2829_v11 = vunpack.c.h.bf16 %v9402_v35  ;;  %v3408_v54 = vmul.f32 %v3248_v1, %v10824_v9  ;;  %v9425_v3 = vpack.c.bf16 %v2410_v61, %v2409_v43  ;;  %v3448_v23 = vmul.f32 %v3288_v63, %v10825_v53  ;;  %v1276_v43 = vpop.f32.mrf.mxu2  ;;  %v10830_v53 = vld [vmem:[#allocation6_spill] sm:$0xff] }
 0x2db   : > { %v1727_v45 = vunpack.c.l.bf16 %v1591_v40  ;;  %v1728_v30 = vunpack.c.h.bf16 %v1591_v40  ;;  %3645 = vmatpush.msrb.mxu3 %v3345_v20  ;;  %v7277_v2 = vpop.eup %7276  ;;  %v1592_v59 = vxor.u32 2147516416, %v1512_v42  ;;  %v3268_v47 = vunpack.c.h.bf16 %v9181_v56  ;;  %v1305_v61 = vpop.f32.mrf.mxu3 }
 0x2dc   : > { %v2267_v5 = vunpack.c.l.bf16 %v2141_v15  ;;  %v2268_v36 = vunpack.c.h.bf16 %v2141_v15  ;;  %v9431_v20 = vadd.f32 %v1247_v60, %v9266_v14  ;;  %v9434_v1 = vadd.f32 %v1334_v7, %v9270_v48 }
 0x2dd   : > { %v1999_v41 = vmul.f32 1.442695, %v1727_v45  ;;  %v2001_v22 = vmul.f32 1.442695, %v1728_v30  ;;  %3646 = vmatpush.msrb.mxu3 %v9382_v10  ;;  %v1729_v50 = vunpack.c.l.bf16 %v1592_v59  ;;  %v1730_v40 = vunpack.c.h.bf16 %v1592_v59  ;;  %v10828_v30 = vld [vmem:[#allocation12_spill] sm:$0xff] }
 0x2de   : > { %10826 = vst [vmem:[#allocation40_spill] sm:$0xff] %v9431_v20  ;;  %v9436_v42 = vpop.eup %7278  ;;  %v2142_v63 = vpack.c.bf16 %v7277_v2, %v7275_v57  ;;  %v9439_v56 = vadd.f32 %v1276_v43, %v9261_v18  ;;  %v9442_v15 = vadd.f32 %v1305_v61, %v9268_v49  ;;  %v2830_v60 = vunpack.c.l.bf16 %v9402_v35  ;;  %v10832_v61 = vld [vmem:[#allocation3_spill] sm:$0xff] }
 0x2df   : > { %10827 = vst [vmem:[#allocation31_spill] sm:$0xff] %v9434_v1  ;;  %7282 = vpow2.f32 %v1999_v41  ;;  %3647 = vmatpush.msrb.mxu3 %v9362_v8  ;;  %v9445_v10 = vpop.eup %7280  ;;  %v2003_v45 = vmul.f32 1.442695, %v1729_v50  ;;  %v3428_v7 = vmul.f32 %v3268_v47, %v10828_v30  ;;  %v2005_v57 = vmul.f32 1.442695, %v1730_v40 }
 0x2e0   : > { %7284 = vpow2.f32 %v2001_v22  ;;  %v1521_v41 = vpack.c.bf16 %v9439_v56, %v9431_v20  ;;  %v1522_v9 = vpack.c.bf16 %v9434_v1, %v9442_v15  ;;  %5913 = vmatmul.msk.f32.vlgmr.msrb.gmra.mxu3 %vm3468_vm5, %v9088_v25  ;;  %v2836_v8 = vunpack.c.h.bf16 %v9425_v3  ;;  %v1249_v22 = vpop.f32.mrf.mxu1 }
 0x2e1   : > { %3700 = vmatpush.msra.mxu3 %v3448_v23  ;;  %7286 = vrcp.f32 %v2829_v11  ;;  %v2427_v2 = vadd.f32 1.0, %v2267_v5  ;;  %v2428_v35 = vadd.f32 1.0, %v2268_v36  ;;  %v2269_v50 = vunpack.c.l.bf16 %v2142_v63  ;;  %v10829_v11 = vld [vmem:[#allocation24_spill] sm:$0xff] }
 0x2e2   : > { %7288 = vpow2.f32 %v2003_v45  ;;  %v1601_v47 = vxor.u32 2147516416, %v1521_v41  ;;  %v1602_v23 = vxor.u32 2147516416, %v1522_v9  ;;  %v3388_v59 = vmul.f32 %v3228_v24, %v10829_v11  ;;  %v10834_v24 = vld [vmem:[#allocation4_spill] sm:$0xff] }
 0x2e3   : > { %3701 = vmatpush.msra.mxu3 %v3428_v7  ;;  %7290 = vpow2.f32 %v2005_v57  ;;  %v10831_v40 = vunpack.c.h.bf16 %v9235_v6  ;;  %v10833_v30 = vunpack.c.h.bf16 %v9241_v21  ;;  %v2270_v45 = vunpack.c.h.bf16 %v2142_v63 }
 0x2e4   : > { %7292 = vrcp.f32 %v2830_v60  ;;  %v1747_v7 = vunpack.c.l.bf16 %v1601_v47  ;;  %v1748_v1 = vunpack.c.h.bf16 %v1601_v47  ;;  %v1749_v57 = vunpack.c.l.bf16 %v1602_v23  ;;  %v1307_v47 = vpop.f32.mrf.mxu3 }
 0x2e5   : > { %3702 = vmatpush.msra.mxu3 %v3408_v54  ;;  %v3348_v43 = vmul.f32 %v10831_v40, %v10830_v53  ;;  %v3328_v5 = vmul.f32 %v10833_v30, %v10832_v61  ;;  %v7283_v36 = vpop.eup %7282  ;;  %7294 = vrcp.f32 %v2836_v8  ;;  %v2541_v60 = vpack.c.bf16 %v2428_v35, %v2427_v2  ;;  %v1278_v54 = vpop.f32.mrf.mxu2 }
 0x2e6   : > { %v7285_v41 = vpop.eup %7284  ;;  %v1750_v9 = vunpack.c.h.bf16 %v1602_v23  ;;  %v10835_v11 = vunpack.c.h.bf16 %v9221_v62  ;;  %v2429_v40 = vadd.f32 1.0, %v2269_v50  ;;  %v2039_v61 = vmul.f32 1.442695, %v1747_v7  ;;  %v1336_v35 = vpop.f32.mrf.mxu0 }
 0x2e7   : > { %3703 = vmatpush.msra.mxu3 %v3388_v59  ;;  %v9466_v53 = vpop.eup %7286  ;;  %v2151_v21 = vpack.c.bf16 %v7285_v41, %v7283_v36  ;;  %v9469_v63 = vadd.f32 %v1249_v22, %v9266_v14  ;;  %v2041_v20 = vmul.f32 1.442695, %v1748_v1  ;;  %v2043_v8 = vmul.f32 1.442695, %v1749_v57 }
 0x2e8   : > { %v3368_v6 = vmul.f32 %v10835_v11, %v10834_v24  ;;  %v7289_v30 = vpop.eup %7288  ;;  %v2045_v2 = vmul.f32 1.442695, %v1750_v9  ;;  %v9472_v23 = vadd.f32 %v1278_v54, %v9261_v18  ;;  %v2430_v59 = vadd.f32 1.0, %v2270_v45 }
 0x2e9   : > { %10836 = vst [vmem:[#allocation37_spill] sm:$0xff] %v9469_v63  ;;  %v7291_v62 = vpop.eup %7290  ;;  %v2287_v24 = vunpack.c.l.bf16 %v2151_v21  ;;  %v2288_v11 = vunpack.c.h.bf16 %v2151_v21  ;;  %7296 = vpow2.f32 %v2039_v61  ;;  %v9479_v1 = vadd.f32 %v1307_v47, %v9268_v49 }
 0x2ea   : > { %3704 = vmatpush.msra.mxu3 %v3368_v6  ;;  %v9474_v50 = vpop.eup %7292  ;;  %v2152_v36 = vpack.c.bf16 %v7291_v62, %v7289_v30  ;;  %7298 = vpow2.f32 %v2041_v20  ;;  %v1531_v14 = vpack.c.bf16 %v9472_v23, %v9469_v63  ;;  %v2837_v18 = vunpack.c.l.bf16 %v9425_v3  ;;  %v10838_v20 = vld [vmem:[#allocation22_spill] sm:$0xff] }
 0x2eb   : > { %7300 = vpow2.f32 %v2043_v8  ;;  %v9483_v22 = vadd.f32 %v1336_v35, %v9270_v48  ;;  %v9485_v45 = vpop.eup %7294  ;;  %v2899_v7 = vunpack.c.h.bf16 %v2541_v60  ;;  %v10839_v41 = vunpack.c.h.bf16 %v9247_v38 }
 0x2ec   : > { %3705 = vmatpush.msra.mxu3 %v3348_v43  ;;  %7302 = vpow2.f32 %v2045_v2  ;;  %v1611_v57 = vxor.u32 2147516416, %v1531_v14  ;;  %v2900_v54 = vunpack.c.l.bf16 %v2541_v60  ;;  %v2447_v49 = vadd.f32 1.0, %v2287_v24 }
 0x2ed   : > { %10837 = vst [vmem:[#allocation25_spill] sm:$0xff] %v9483_v22  ;;  %v3308_v9 = vmul.f32 %v10839_v41, %v10838_v20  ;;  %v2448_v6 = vadd.f32 1.0, %v2288_v11  ;;  %v1532_v3 = vpack.c.bf16 %v9483_v22, %v9479_v1  ;;  %v2542_v43 = vpack.c.bf16 %v2430_v59, %v2429_v40  ;;  %v618_v40 = vld [vmem:[%s10539_s4 + $0x10] sm:$0xf] }
 0x2ee   : > { %3706 = vmatpush.msra.mxu3 %v3328_v5  ;;  %v2289_v21 = vunpack.c.l.bf16 %v2152_v36  ;;  %v2290_v48 = vunpack.c.h.bf16 %v2152_v36  ;;  %v1767_v61 = vunpack.c.l.bf16 %v1611_v57  ;;  %7304 = vrcp.f32 %v2837_v18  ;;  %v1435_v22 = vpop.f32.mrf.mxu0 }
 0x2ef   : > { %v7297_v47 = vpop.eup %7296  ;;  %v1768_v30 = vunpack.c.h.bf16 %v1611_v57  ;;  %v1612_v8 = vxor.u32 2147516416, %v1532_v3  ;;  %7306 = vrcp.f32 %v2899_v7  ;;  %v2551_v2 = vpack.c.bf16 %v2448_v6, %v2447_v49 }
 0x2f0   : > { %3707 = vmatpush.msra.mxu3 %v3308_v9  ;;  %v7299_v38 = vpop.eup %7298  ;;  %v2079_v5 = vmul.f32 1.442695, %v1767_v61  ;;  %7308 = vrcp.f32 %v2900_v54  ;;  %v2906_v24 = vunpack.c.h.bf16 %v2542_v43  ;;  %v2449_v11 = vadd.f32 1.0, %v2289_v21 }
 0x2f1   : > { %5916 = vmatmul.msk.f32.vlgmr.msra.gmra.mxu3 %vm3468_vm5, %v9088_v25  ;;  %v7301_v60 = vpop.eup %7300  ;;  %v2161_v35 = vpack.c.bf16 %v7299_v38, %v7297_v47  ;;  %v1769_v62 = vunpack.c.l.bf16 %v1612_v8  ;;  %v2450_v36 = vadd.f32 1.0, %v2290_v48  ;;  %v2081_v14 = vmul.f32 1.442695, %v1768_v30  ;;  %v1348_v30 = vpop.f32.mrf.mxu1 }
 0x2f2   : > { %v7303_v59 = vpop.eup %7302  ;;  %v2907_v18 = vunpack.c.l.bf16 %v2542_v43  ;;  %7310 = vpow2.f32 %v2079_v5  ;;  %v1770_v7 = vunpack.c.h.bf16 %v1612_v8  ;;  %v9497_v54 = vperm.slane %v618_v40, 0 }
 0x2f3   : > { %v2307_v57 = vunpack.c.l.bf16 %v2161_v35  ;;  %v2308_v20 = vunpack.c.h.bf16 %v2161_v35  ;;  %v2162_v41 = vpack.c.bf16 %v7303_v59, %v7301_v60  ;;  %v2083_v9 = vmul.f32 1.442695, %v1769_v62  ;;  %v1377_v35 = vpop.f32.mrf.mxu2  ;;  %v1406_v59 = vpop.f32.mrf.mxu3 }
 0x2f4   : > { %10840 = vst [vmem:[#allocation29_spill] sm:$0xff] %v9497_v54  ;;  %v9499_v49 = vpop.eup %7304  ;;  %v2969_v6 = vunpack.c.h.bf16 %v2551_v2  ;;  %v2552_v21 = vpack.c.bf16 %v2450_v36, %v2449_v11  ;;  %7312 = vpow2.f32 %v2081_v14  ;;  %v2085_v43 = vmul.f32 1.442695, %v1770_v7 }
 0x2f5   : > { %v2467_v3 = vadd.f32 1.0, %v2307_v57  ;;  %v2468_v61 = vadd.f32 1.0, %v2308_v20  ;;  %v2309_v47 = vunpack.c.l.bf16 %v2162_v41  ;;  %v9501_v38 = vpop.eup %7306  ;;  %v2310_v48 = vunpack.c.h.bf16 %v2162_v41 }
 0x2f6   : > { %v9503_v60 = vpop.eup %7308  ;;  %7314 = vpow2.f32 %v2083_v9  ;;  %v9505_v5 = vperm.slane %v618_v40, 3  ;;  %v9507_v62 = vperm.slane %v618_v40, 1  ;;  %v9509_v63 = vperm.slane %v618_v40, 2 }
 0x2f7   : > { %v2469_v8 = vadd.f32 1.0, %v2309_v47  ;;  %v2561_v57 = vpack.c.bf16 %v2468_v61, %v2467_v3  ;;  %v2470_v20 = vadd.f32 1.0, %v2310_v48  ;;  %7316 = vpow2.f32 %v2085_v43 }
 0x2f8   : > { %10841 = vst [vmem:[#allocation27_spill] sm:$0xff] %v9505_v5  ;;  %7318 = vrcp.f32 %v2906_v24  ;;  %v2970_v11 = vunpack.c.l.bf16 %v2551_v2  ;;  %v9512_v36 = vadd.f32 %v1348_v30, %v9497_v54  ;;  %v9515_v14 = vadd.f32 %v1377_v35, %v9507_v62  ;;  %v7311_v41 = vpop.eup %7310 }
 0x2f9   : > { %10842 = vst [vmem:[#allocation34_spill] sm:$0xff] %v9509_v63  ;;  %7320 = vrcp.f32 %v2907_v18  ;;  %v2976_v7 = vunpack.c.h.bf16 %v2552_v21  ;;  %v9518_v9 = vadd.f32 %v1406_v59, %v9509_v63  ;;  %v2977_v3 = vunpack.c.l.bf16 %v2552_v21 }
 0x2fa   : > { %10843 = vst [vmem:[#allocation10_spill] sm:$0xff] %v9512_v36  ;;  %v2562_v61 = vpack.c.bf16 %v2470_v20, %v2469_v8  ;;  %v9521_v47 = vadd.f32 %v1435_v22, %v9505_v5  ;;  %v1463_v2 = vpack.c.bf16 %v9515_v14, %v9512_v36  ;;  %v7313_v40 = vpop.eup %7312  ;;  %7322 = vrcp.f32 %v2969_v6 }
 0x2fb   : > { %10844 = vst [vmem:[#allocation26_spill] sm:$0xff] %v9515_v14  ;;  %v3039_v24 = vunpack.c.h.bf16 %v2561_v57  ;;  %7324 = vrcp.f32 %v2970_v11  ;;  %v2171_v43 = vpack.c.bf16 %v7313_v40, %v7311_v41  ;;  %v2622_v21 = vmul.f32 %v9347_v17, %v7984_v28 }
 0x2fc   : > { %10845 = vst [vmem:[#allocation17_spill] sm:$0xff] %v9518_v9  ;;  %v7315_v48 = vpop.eup %7314  ;;  %v1543_v30 = vxor.u32 2147516416, %v1463_v2  ;;  %v1464_v18 = vpack.c.bf16 %v9521_v47, %v9518_v9  ;;  %v2624_v22 = vmul.f32 %v9350_v39, %v7989_v31  ;;  %7326 = vrcp.f32 %v2976_v7 }
 0x2fd   : > { %10846 = vst [vmem:[#allocation43_spill] sm:$0xff] %v9521_v47  ;;  %v7317_v35 = vpop.eup %7316  ;;  %v3040_v8 = vunpack.c.l.bf16 %v2561_v57  ;;  %7328 = vrcp.f32 %v2977_v3  ;;  %v3046_v6 = vunpack.c.h.bf16 %v2562_v61  ;;  %v2327_v20 = vunpack.c.l.bf16 %v2171_v43 }
 0x2fe   : > { %v9531_v59 = vpop.eup %7318  ;;  %v2328_v11 = vunpack.c.h.bf16 %v2171_v43  ;;  %7330 = vrcp.f32 %v3039_v24  ;;  %v3047_v2 = vunpack.c.l.bf16 %v2562_v61  ;;  %v2172_v40 = vpack.c.bf16 %v7317_v35, %v7315_v48 }
 0x2ff   : > { %v9533_v41 = vpop.eup %7320  ;;  %v1631_v47 = vunpack.c.l.bf16 %v1543_v30  ;;  %v2487_v36 = vadd.f32 1.0, %v2327_v20  ;;  %v1632_v17 = vunpack.c.h.bf16 %v1543_v30  ;;  %v1544_v63 = vxor.u32 2147516416, %v1464_v18 }
 0x300   : > { %v2488_v5 = vadd.f32 1.0, %v2328_v11  ;;  %v7323_v9 = vpop.eup %7322  ;;  %7332 = vrcp.f32 %v3040_v8  ;;  %v2329_v39 = vunpack.c.l.bf16 %v2172_v40  ;;  %v2330_v57 = vunpack.c.h.bf16 %v2172_v40 }
 0x301   : > { %v7325_v7 = vpop.eup %7324  ;;  %v9535_v54 = vpack.c.bf16 %v2622_v21, %v2624_v22  ;;  %7334 = vrcp.f32 %v3046_v6  ;;  %v1807_v43 = vmul.f32 1.442695, %v1631_v47  ;;  %v1633_v48 = vunpack.c.l.bf16 %v1544_v63 }
 0x302   : > { %v2571_v3 = vpack.c.bf16 %v2488_v5, %v2487_v36  ;;  %v7327_v14 = vpop.eup %7326  ;;  %7336 = vrcp.f32 %v3047_v2  ;;  %v2489_v24 = vadd.f32 1.0, %v2329_v39  ;;  %v2490_v61 = vadd.f32 1.0, %v2330_v57 }
 0x303   : > { %v7329_v35 = vpop.eup %7328  ;;  %v1809_v30 = vmul.f32 1.442695, %v1632_v17  ;;  %v1634_v18 = vunpack.c.h.bf16 %v1544_v63  ;;  %v9539_v8 = vmul.f32 %v9352_v55, %v7984_v28  ;;  %v9543_v21 = vmul.f32 %v9369_v58, %v7989_v31 }
 0x304   : > { %v3109_v20 = vunpack.c.h.bf16 %v2571_v3  ;;  %v3110_v11 = vunpack.c.l.bf16 %v2571_v3  ;;  %v7331_v25 = vpop.eup %7330  ;;  %v2572_v5 = vpack.c.bf16 %v2490_v61, %v2489_v24  ;;  %7338 = vpow2.f32 %v1807_v43 }
 0x305   : > { %v9547_v36 = vmul.f32 %v9373_v52, %v7984_v28  ;;  %v2762_v47 = vmul.f32 %v9414_v51, %v7984_v28  ;;  %v2764_v63 = vmul.f32 %v9417_v32, %v7989_v31  ;;  %v1811_v2 = vmul.f32 1.442695, %v1633_v48 }
 0x306   : > { %7340 = vrcp.f32 %v3109_v20  ;;  %v7333_v22 = vpop.eup %7332  ;;  %v3116_v55 = vunpack.c.h.bf16 %v2572_v5  ;;  %v3117_v6 = vunpack.c.l.bf16 %v2572_v5  ;;  %v9555_v40 = vmul.f32 %v9377_v12, %v7989_v31 }
 0x307   : > { %7342 = vrcp.f32 %v3110_v11  ;;  %v7335_v58 = vpop.eup %7334  ;;  %v9559_v52 = vmul.f32 %v9386_v0, %v7984_v28  ;;  %v1813_v51 = vmul.f32 1.442695, %v1634_v18  ;;  %v9563_v32 = vmul.f32 %v9400_v46, %v7989_v31 }
 0x308   : > { %7344 = vpow2.f32 %v1809_v30  ;;  %v7337_v17 = vpop.eup %7336  ;;  %v2832_v39 = vmul.f32 %v9466_v53, %v7984_v28  ;;  %v2834_v57 = vmul.f32 %v9474_v50, %v7989_v31  ;;  %v9569_v12 = vpack.c.bf16 %v2762_v47, %v2764_v63 }
 0x309   : > { %7346 = vrcp.f32 %v3116_v55  ;;  %v3042_v3 = vmul.f32 %v7331_v25, %v7984_v28  ;;  %v3044_v0 = vmul.f32 %v7333_v22, %v7989_v31  ;;  %v9575_v24 = vmul.f32 %v9436_v42, %v7984_v28 }
 0x30a   : > { %7348 = vrcp.f32 %v3117_v6  ;;  %v7339_v43 = vpop.eup %7338  ;;  %v9579_v46 = vmul.f32 %v9445_v10, %v7989_v31  ;;  %v2972_v53 = vmul.f32 %v7323_v9, %v7984_v28  ;;  %v2974_v61 = vmul.f32 %v7325_v7, %v7989_v31 }
 0x30b   : > { %7350 = vpow2.f32 %v1811_v2  ;;  %v3049_v25 = vmul.f32 %v7335_v58, %v7984_v28  ;;  %v3051_v48 = vmul.f32 %v7337_v17, %v7989_v31  ;;  %v9585_v11 = vpack.c.bf16 %v2832_v39, %v2834_v57 }
 0x30c   : > { %v7341_v50 = vpop.eup %7340  ;;  %7352 = vpow2.f32 %v1813_v51  ;;  %v2902_v42 = vmul.f32 %v9501_v38, %v7984_v28  ;;  %v2904_v10 = vmul.f32 %v9503_v60, %v7989_v31  ;;  %v2979_v18 = vmul.f32 %v7327_v14, %v7984_v28 }
 0x30d   : > { %v7343_v20 = vpop.eup %7342  ;;  %v3112_v9 = vmul.f32 %v7341_v50, %v7984_v28  ;;  %v2981_v7 = vmul.f32 %v7329_v35, %v7989_v31  ;;  %v9594_v5 = vpack.c.bf16 %v3042_v3, %v3044_v0  ;;  %v2839_v22 = vmul.f32 %v9485_v45, %v7984_v28 }
 0x30e   : > { %v7345_v30 = vpop.eup %7344  ;;  %v3114_v47 = vmul.f32 %v7343_v20, %v7989_v31  ;;  %v2909_v38 = vmul.f32 %v9531_v59, %v7984_v28  ;;  %v2911_v60 = vmul.f32 %v9533_v41, %v7989_v31  ;;  %v9603_v2 = vpack.c.bf16 %v2972_v53, %v2974_v61 }
 0x30f   : > { %v7347_v63 = vpop.eup %7346  ;;  %v2103_v55 = vpack.c.bf16 %v7345_v30, %v7339_v43  ;;  %v9605_v14 = vpack.c.bf16 %v3049_v25, %v3051_v48  ;;  %v2841_v45 = vmul.f32 %v9499_v49, %v7989_v31  ;;  %v9613_v41 = vpack.c.bf16 %v2902_v42, %v2904_v10 }
 0x310   : > { %v7349_v6 = vpop.eup %7348  ;;  %v9607_v35 = vpack.c.bf16 %v3112_v9, %v3114_v47  ;;  %v3119_v58 = vmul.f32 %v7347_v63, %v7984_v28  ;;  %v9615_v3 = vpack.c.bf16 %v2979_v18, %v2981_v7  ;;  %v3270_v0 = vunpack.c.h.bf16 %v9594_v5 }
 0x311   : > { %v7351_v51 = vpop.eup %7350  ;;  %v3121_v17 = vmul.f32 %v7349_v6, %v7989_v31  ;;  %v2191_v59 = vunpack.c.l.bf16 %v2103_v55  ;;  %v2192_v39 = vunpack.c.h.bf16 %v2103_v55  ;;  %v9621_v48 = vpack.c.bf16 %v2909_v38, %v2911_v60 }
 0x312   : > { %v7353_v57 = vpop.eup %7352  ;;  %v3290_v43 = vunpack.c.h.bf16 %v9607_v35  ;;  %v3250_v49 = vunpack.c.h.bf16 %v9603_v2  ;;  %v3271_v20 = vunpack.c.l.bf16 %v9605_v14  ;;  %v9627_v7 = vpack.c.bf16 %v2839_v22, %v2841_v45 }
 0x313   : > { %v9619_v53 = vpack.c.bf16 %v3119_v58, %v3121_v17  ;;  %v2351_v50 = vadd.f32 1.0, %v2191_v59  ;;  %v2352_v61 = vadd.f32 1.0, %v2192_v39  ;;  %v2104_v25 = vpack.c.bf16 %v7353_v57, %v7351_v51  ;;  %v1350_v39 = vpop.f32.mrf.mxu1 }
 0x314   : > { %v3450_v42 = vmul.f32 %v3290_v43, %v9472_v23  ;;  %v3230_v47 = vunpack.c.h.bf16 %v9613_v41  ;;  %v3251_v63 = vunpack.c.l.bf16 %v9615_v3  ;;  %v3430_v38 = vmul.f32 %v3270_v0, %v9439_v56 }
 0x315   : > { %v3291_v10 = vunpack.c.l.bf16 %v9619_v53  ;;  %v2503_v9 = vpack.c.bf16 %v2352_v61, %v2351_v50  ;;  %v2193_v30 = vunpack.c.l.bf16 %v2104_v25  ;;  %v2194_v18 = vunpack.c.h.bf16 %v2104_v25  ;;  %v1379_v50 = vpop.f32.mrf.mxu2 }
 0x316   : > { %3740 = vmatpush.msrb.mxu1 %v3450_v42  ;;  %v9635_v23 = vpack.c.bf16 %v9547_v36, %v9555_v40  ;;  %v3210_v51 = vunpack.c.h.bf16 %v9585_v11  ;;  %v3410_v22 = vmul.f32 %v3250_v49, %v9394_v29  ;;  %v9641_v17 = vpack.c.bf16 %v9575_v24, %v9579_v46 }
 0x317   : > { %v3451_v60 = vmul.f32 %v3291_v10, %v9479_v1  ;;  %v2633_v55 = vunpack.c.h.bf16 %v2503_v9  ;;  %v2634_v6 = vunpack.c.l.bf16 %v2503_v9  ;;  %v2353_v58 = vadd.f32 1.0, %v2193_v30 }
 0x318   : > { %v2354_v45 = vadd.f32 1.0, %v2194_v18  ;;  %3741 = vmatpush.msrb.mxu1 %v3430_v38  ;;  %v3231_v56 = vunpack.c.l.bf16 %v9621_v48  ;;  %v3431_v1 = vmul.f32 %v3271_v20, %v9442_v15  ;;  %v3190_v59 = vunpack.c.h.bf16 %v9569_v12  ;;  %v10847_v18 = vld [vmem:[#allocation36_spill] sm:$0xff] }
 0x319   : > { %7354 = vrcp.f32 %v2633_v55  ;;  %3760 = vmatpush.msrb.mxu2 %v3451_v60  ;;  %v3390_v36 = vmul.f32 %v3230_v47, %v9342_v13  ;;  %v9649_v29 = vpack.c.bf16 %v9559_v52, %v9563_v32  ;;  %v3211_v24 = vunpack.c.l.bf16 %v9627_v7  ;;  %v10849_v55 = vld [vmem:[#allocation26_spill] sm:$0xff] }
 0x31a   : > { %7356 = vrcp.f32 %v2634_v6  ;;  %v2504_v40 = vpack.c.bf16 %v2354_v45, %v2353_v58  ;;  %3742 = vmatpush.msrb.mxu1 %v3410_v22  ;;  %v3411_v46 = vmul.f32 %v3251_v63, %v9407_v26  ;;  %v3170_v15 = vunpack.c.h.bf16 %v9635_v23  ;;  %v10851_v58 = vld [vmem:[#allocation29_spill] sm:$0xff] }
 0x31b   : > { %3761 = vmatpush.msrb.mxu2 %v3431_v1  ;;  %v3370_v57 = vmul.f32 %v3210_v51, %v9323_v4  ;;  %v9657_v13 = vpack.c.bf16 %v9539_v8, %v9543_v21  ;;  %v3191_v52 = vunpack.c.l.bf16 %v9641_v17  ;;  %v3391_v32 = vmul.f32 %v3231_v56, %v9358_v16  ;;  %v1353_v60 = vpop.f32.mrf.mxu1  ;;  %v1437_v56 = vpop.f32.mrf.mxu0 }
 0x31c   : > { %v2640_v0 = vunpack.c.h.bf16 %v2504_v40  ;;  %v2641_v43 = vunpack.c.l.bf16 %v2504_v40  ;;  %3743 = vmatpush.msrb.mxu1 %v3390_v36  ;;  %v3150_v26 = vunpack.c.h.bf16 %v9535_v54  ;;  %v3350_v61 = vmul.f32 %v3190_v59, %v9307_v34  ;;  %v1408_v36 = vpop.f32.mrf.mxu3  ;;  %v10852_v40 = vld [vmem:[#allocation17_spill] sm:$0xff] }
 0x31d   : > { %3762 = vmatpush.msrb.mxu2 %v3411_v46  ;;  %v3171_v25 = vunpack.c.l.bf16 %v9649_v29  ;;  %v3371_v49 = vmul.f32 %v3211_v24, %v9331_v33  ;;  %v3330_v21 = vmul.f32 %v3170_v15, %v9291_v37  ;;  %v3151_v20 = vunpack.c.l.bf16 %v9657_v13  ;;  %v1382_v22 = vpop.f32.mrf.mxu2  ;;  %v10854_v15 = vld [vmem:[#allocation34_spill] sm:$0xff] }
 0x31e   : > { %7358 = vrcp.f32 %v2640_v0  ;;  %3744 = vmatpush.msrb.mxu1 %v3370_v57  ;;  %v3351_v42 = vmul.f32 %v3191_v52, %v9315_v19  ;;  %v3310_v10 = vmul.f32 %v3150_v26, %v9273_v27  ;;  %v9678_v38 = vadd.f32 %v1379_v50, %v9507_v62  ;;  %v10848_v27 = vld [vmem:[#allocation41_spill] sm:$0xff] }
 0x31f   : > { %v7355_v4 = vpop.eup %7354  ;;  %7360 = vrcp.f32 %v2641_v43  ;;  %3763 = vmatpush.msrb.mxu2 %v3391_v32  ;;  %v3331_v33 = vmul.f32 %v3171_v25, %v9299_v44  ;;  %v3311_v47 = vmul.f32 %v3151_v20, %v10847_v18  ;;  %v9687_v51 = vadd.f32 %v1350_v39, %v10851_v58  ;;  %v10856_v32 = vld [vmem:[#allocation27_spill] sm:$0xff]  ;;  %v10858_v25 = vld [vmem:[#allocation37_spill] sm:$0xff]  ;;  %v10860_v18 = vld [vmem:[#allocation40_spill] sm:$0xff] }
 0x320   : > { %v7357_v8 = vpop.eup %7356  ;;  %v2636_v16 = vmul.f32 %v7355_v4, %v7984_v28  ;;  %3745 = vmatpush.msrb.mxu1 %v3350_v61  ;;  %v9700_v57 = vadd.f32 %v1408_v36, %v10854_v15  ;;  %v3289_v0 = vunpack.c.l.bf16 %v9607_v35  ;;  %v9704_v50 = vadd.f32 %v1437_v56, %v10856_v32 }
 0x321   : > { %v2638_v34 = vmul.f32 %v7357_v8, %v7989_v31  ;;  %3764 = vmatpush.msrb.mxu2 %v3371_v49  ;;  %v1473_v1 = vpack.c.bf16 %v9678_v38, %v9687_v51  ;;  %v9707_v4 = vadd.f32 %v1382_v22, %v9507_v62  ;;  %v3292_v8 = vunpack.c.h.bf16 %v9619_v53 }
 0x322   : > { %3746 = vmatpush.msrb.mxu1 %v3330_v21  ;;  %10855 = vst [vmem:[#allocation14_spill] sm:$0xff] %v9700_v57  ;;  %v3449_v49 = vmul.f32 %v3289_v0, %v10858_v25  ;;  %v1474_v21 = vpack.c.bf16 %v9704_v50, %v9700_v57  ;;  %v9714_v35 = vadd.f32 %v1353_v60, %v10851_v58 }
 0x323   : > { %v9672_v9 = vpack.c.bf16 %v2636_v16, %v2638_v34  ;;  %3765 = vmatpush.msrb.mxu2 %v3351_v42  ;;  %v1553_v46 = vxor.u32 2147516416, %v1473_v1  ;;  %v1355_v39 = vpop.f32.mrf.mxu1  ;;  %10857 = vst [vmem:[#allocation32_spill] sm:$0xff] %v9704_v50  ;;  %v1440_v61 = vpop.f32.mrf.mxu0  ;;  %v3269_v42 = vunpack.c.l.bf16 %v9594_v5 }
 0x324   : > { %v7359_v30 = vpop.eup %7358  ;;  %3747 = vmatpush.msrb.mxu1 %v3310_v10  ;;  %v1411_v16 = vpop.f32.mrf.mxu3  ;;  %3720 = vmatpush.msra.mxu0 %v3449_v49  ;;  %v1483_v10 = vpack.c.bf16 %v9707_v4, %v9714_v35  ;;  %v9728_v56 = vadd.f32 %v1440_v61, %v10856_v32 }
 0x325   : > { %v7361_v37 = vpop.eup %7360  ;;  %v3154_v63 = vunpack.c.h.bf16 %v9672_v9  ;;  %v2643_v19 = vmul.f32 %v7359_v30, %v7984_v28  ;;  %3766 = vmatpush.msrb.mxu2 %v3331_v33  ;;  %5918 = vmatmul.msk.f32.vlgmr.msrb.gmra.mxu1 %vm3468_vm5, %v10848_v27  ;;  %v1651_v43 = vunpack.c.l.bf16 %v1553_v46  ;;  %v1384_v52 = vpop.f32.mrf.mxu2  ;;  %v1652_v26 = vunpack.c.h.bf16 %v1553_v46  ;;  %v10859_v33 = vld [vmem:[#allocation25_spill] sm:$0xff]  ;;  %v10864_v46 = vld [vmem:[#allocation23_spill] sm:$0xff] }
 0x326   : > { %v2645_v44 = vmul.f32 %v7361_v37, %v7989_v31  ;;  %v3452_v30 = vmul.f32 %v3292_v8, %v10859_v33  ;;  %v1554_v37 = vxor.u32 2147516416, %v1474_v21  ;;  %v1563_v60 = vxor.u32 2147516416, %v1483_v10  ;;  %10862 = vst [vmem:[#allocation19_spill] sm:$0xff] %v9728_v56  ;;  %v10866_v8 = vld [vmem:[#allocation5_spill] sm:$0xff] }
 0x327   : > { %v9684_v6 = vmul.f32 %v3154_v63, %v10849_v55  ;;  %3767 = vmatpush.msrb.mxu2 %v3311_v47  ;;  %v1847_v20 = vmul.f32 1.442695, %v1651_v43  ;;  %v1849_v34 = vmul.f32 1.442695, %v1652_v26  ;;  %v3429_v47 = vmul.f32 %v3269_v42, %v10860_v18 }
 0x328   : > { %v9689_v45 = vpack.c.bf16 %v2643_v19, %v2645_v44  ;;  %5919 = vmatmul.msk.f32.vlgmr.msrb.gmra.mxu2 %vm3468_vm5, %v10848_v27  ;;  %3780 = vmatpush.msrb.mxu3 %v3452_v30  ;;  %v9722_v63 = vadd.f32 %v1411_v16, %v10854_v15  ;;  %v3272_v19 = vunpack.c.h.bf16 %v9605_v14  ;;  %v3249_v44 = vunpack.c.l.bf16 %v9603_v2 }
 0x329   : > { %10850 = vst [vmem:[#allocation44_spill] sm:$0xff] %v9684_v6  ;;  %7362 = vpow2.f32 %v1847_v20  ;;  %3721 = vmatpush.msra.mxu0 %v3429_v47  ;;  %v3252_v55 = vunpack.c.h.bf16 %v9615_v3  ;;  %v1653_v22 = vunpack.c.l.bf16 %v1554_v37  ;;  %v3229_v43 = vunpack.c.l.bf16 %v9613_v41  ;;  %v10865_v3 = vld [vmem:[#allocation15_spill] sm:$0xff] }
 0x32a   : > { %v3155_v59 = vunpack.c.l.bf16 %v9689_v45  ;;  %7364 = vpow2.f32 %v1849_v34  ;;  %10861 = vst [vmem:[#allocation7_spill] sm:$0xff] %v9722_v63  ;;  %v3409_v0 = vmul.f32 %v3249_v44, %v10864_v46  ;;  %v3232_v14 = vunpack.c.h.bf16 %v9621_v48  ;;  %v10867_v48 = vld [vmem:[#allocation39_spill] sm:$0xff] }
 0x32b   : > { %v1358_v53 = vpop.f32.mrf.mxu1  ;;  %v1442_v1 = vpop.f32.mrf.mxu0  ;;  %v1484_v26 = vpack.c.bf16 %v9728_v56, %v9722_v63  ;;  %v3412_v25 = vmul.f32 %v3252_v55, %v10865_v3  ;;  %v1671_v49 = vunpack.c.l.bf16 %v1563_v60  ;;  %v3389_v21 = vmul.f32 %v3229_v43, %v10866_v8 }
 0x32c   : > { %v9697_v24 = vmul.f32 %v3155_v59, %v10852_v40  ;;  %v10863_v59 = vld [vmem:[#allocation31_spill] sm:$0xff]  ;;  %v1654_v40 = vunpack.c.h.bf16 %v1554_v37  ;;  %v9736_v2 = vpop.f32.mrf.mxu3  ;;  %3722 = vmatpush.msra.mxu0 %v3409_v0  ;;  %v1851_v20 = vmul.f32 1.442695, %v1653_v22  ;;  %v1672_v42 = vunpack.c.h.bf16 %v1563_v60 }
 0x32d   : > { %v1387_v5 = vpop.f32.mrf.mxu2  ;;  %v3432_v36 = vmul.f32 %v3272_v19, %v10863_v59  ;;  %v9741_v41 = vadd.f32 %v1384_v52, %v9507_v62  ;;  %v3392_v34 = vmul.f32 %v3232_v14, %v10867_v48  ;;  %v1564_v33 = vxor.u32 2147516416, %v1484_v26 }
 0x32e   : > { %10853 = vst [vmem:[#allocation33_spill] sm:$0xff] %v9697_v24  ;;  %v1853_v10 = vmul.f32 1.442695, %v1654_v40  ;;  %3723 = vmatpush.msra.mxu0 %v3389_v21  ;;  %v9745_v30 = vadd.f32 %v1355_v39, %v10851_v58  ;;  %v1887_v18 = vmul.f32 1.442695, %v1671_v49  ;;  %v3209_v19 = vunpack.c.l.bf16 %v9585_v11 }
 0x32f   : > { %3781 = vmatpush.msrb.mxu3 %v3432_v36  ;;  %v7363_v61 = vpop.eup %7362  ;;  %7366 = vpow2.f32 %v1851_v20  ;;  %v1889_v60 = vmul.f32 1.442695, %v1672_v42  ;;  %v1673_v55 = vunpack.c.l.bf16 %v1564_v33  ;;  %v9753_v39 = vadd.f32 %v1387_v5, %v9507_v62  ;;  %v10868_v36 = vld [vmem:[#allocation30_spill] sm:$0xff]  ;;  %v10871_v42 = vld [vmem:[#allocation11_spill] sm:$0xff] }
 0x330   : > { %v7365_v16 = vpop.eup %7364  ;;  %v1493_v52 = vpack.c.bf16 %v9741_v41, %v9745_v30  ;;  %7368 = vpow2.f32 %v1853_v10  ;;  %v3369_v40 = vmul.f32 %v3209_v19, %v10868_v36  ;;  %v9759_v43 = vadd.f32 %v1358_v53, %v10851_v58  ;;  %v10870_v53 = vld [vmem:[#allocation18_spill] sm:$0xff] }
 0x331   : > { %3782 = vmatpush.msrb.mxu3 %v3412_v25  ;;  %v2113_v37 = vpack.c.bf16 %v7365_v16, %v7363_v61  ;;  %7370 = vpow2.f32 %v1887_v18  ;;  %v3212_v14 = vunpack.c.h.bf16 %v9627_v7  ;;  %v3189_v26 = vunpack.c.l.bf16 %v9569_v12 }
 0x332   : > { %7372 = vpow2.f32 %v1889_v60  ;;  %v1573_v11 = vxor.u32 2147516416, %v1493_v52  ;;  %3724 = vmatpush.msra.mxu0 %v3369_v40  ;;  %v3192_v3 = vunpack.c.h.bf16 %v9641_v17  ;;  %v1674_v5 = vunpack.c.h.bf16 %v1564_v33 }
 0x333   : > { %3783 = vmatpush.msrb.mxu3 %v3392_v34  ;;  %v1360_v47 = vpop.f32.mrf.mxu1  ;;  %v9750_v22 = vpop.f32.mrf.mxu0  ;;  %v2211_v59 = vunpack.c.l.bf16 %v2113_v37  ;;  %v2212_v46 = vunpack.c.h.bf16 %v2113_v37  ;;  %v1891_v61 = vmul.f32 1.442695, %v1673_v55  ;;  %v9765_v49 = vadd.f32 %v1442_v1, %v10856_v32  ;;  %v10872_v37 = vld [vmem:[#allocation45_spill] sm:$0xff] }
 0x334   : > { %v9756_v0 = vpop.f32.mrf.mxu3  ;;  %v1503_v16 = vpack.c.bf16 %v9753_v39, %v9759_v43  ;;  %v3372_v20 = vmul.f32 %v3212_v14, %v10870_v53  ;;  %v3349_v48 = vmul.f32 %v3189_v26, %v10871_v42  ;;  %v1691_v34 = vunpack.c.l.bf16 %v1573_v11  ;;  %v10875_v14 = vld [vmem:[#allocation9_spill] sm:$0xff]  ;;  %v10877_v53 = vld [vmem:[#allocation42_spill] sm:$0xff] }
 0x335   : > { %v1389_v44 = vpop.f32.mrf.mxu2  ;;  %v7367_v25 = vpop.eup %7366  ;;  %10869 = vst [vmem:[#allocation21_spill] sm:$0xff] %v9765_v49  ;;  %v2371_v21 = vadd.f32 1.0, %v2211_v59  ;;  %v2372_v7 = vadd.f32 1.0, %v2212_v46  ;;  %v3169_v12 = vunpack.c.l.bf16 %v9635_v23  ;;  %v3172_v17 = vunpack.c.h.bf16 %v9649_v29  ;;  %v10874_v29 = vld [vmem:[#allocation20_spill] sm:$0xff] }
 0x336   : > { %v7369_v8 = vpop.eup %7368  ;;  %v9774_v33 = vadd.f32 %v1389_v44, %v9507_v62  ;;  %3784 = vmatpush.msrb.mxu3 %v3372_v20  ;;  %3725 = vmatpush.msra.mxu0 %v3349_v48  ;;  %v3352_v18 = vmul.f32 %v3192_v3, %v10872_v37  ;;  %v3149_v19 = vunpack.c.l.bf16 %v9535_v54  ;;  %v3152_v60 = vunpack.c.h.bf16 %v9657_v13 }
 0x337   : > { %v7371_v10 = vpop.eup %7370  ;;  %v2114_v55 = vpack.c.bf16 %v7369_v8, %v7367_v25  ;;  %v1692_v59 = vunpack.c.h.bf16 %v1573_v11  ;;  %v9781_v23 = vadd.f32 %v9736_v2, %v10854_v15  ;;  %v3329_v36 = vmul.f32 %v3169_v12, %v10874_v29  ;;  %v10876_v25 = vld [vmem:[#allocation35_spill] sm:$0xff] }
 0x338   : > { %v7373_v52 = vpop.eup %7372  ;;  %v1893_v44 = vmul.f32 1.442695, %v1674_v5  ;;  %v1583_v40 = vxor.u32 2147516416, %v1503_v16  ;;  %v9785_v46 = vadd.f32 %v1360_v47, %v10851_v58  ;;  %3785 = vmatpush.msrb.mxu3 %v3352_v18  ;;  %v3332_v26 = vmul.f32 %v3172_v17, %v10875_v14 }
 0x339   : > { %10873 = vst [vmem:[#allocation28_spill] sm:$0xff] %v9781_v23  ;;  %v9788_v3 = vpack.c.bf16 %v2372_v7, %v2371_v21  ;;  %3726 = vmatpush.msra.mxu0 %v3329_v36  ;;  %v3309_v5 = vmul.f32 %v3149_v19, %v10876_v25  ;;  %v2123_v8 = vpack.c.bf16 %v7373_v52, %v7371_v10  ;;  %v1927_v16 = vmul.f32 1.442695, %v1691_v34 }
 0x33a   : > { %v1513_v47 = vpack.c.bf16 %v9774_v33, %v9785_v46  ;;  %3786 = vmatpush.msrb.mxu3 %v3332_v26  ;;  %v3312_v20 = vmul.f32 %v3152_v60, %v10877_v53  ;;  %v1929_v21 = vmul.f32 1.442695, %v1692_v59  ;;  %v1494_v42 = vpack.c.bf16 %v9765_v49, %v9781_v23 }
 0x33b   : > { %v1363_v1 = vpop.f32.mrf.mxu1  ;;  %v1447_v13 = vpop.f32.mrf.mxu0  ;;  %3727 = vmatpush.msra.mxu0 %v3309_v5  ;;  %v2213_v12 = vunpack.c.l.bf16 %v2114_v55  ;;  %v2214_v17 = vunpack.c.h.bf16 %v2114_v55  ;;  %7374 = vpow2.f32 %v1891_v61  ;;  %v1711_v10 = vunpack.c.l.bf16 %v1583_v40 }
 0x33c   : > { %v9791_v11 = vadd.f32 %v1363_v1, %v10851_v58  ;;  %v1418_v48 = vpop.f32.mrf.mxu3  ;;  %3787 = vmatpush.msrb.mxu3 %v3312_v20  ;;  %5917 = vmatmul.msk.f32.vlgmr.msra.gmra.mxu0 %vm3468_vm5, %v10848_v27  ;;  %v2703_v34 = vunpack.c.h.bf16 %v9788_v3  ;;  %7376 = vpow2.f32 %v1893_v44  ;;  %v1712_v1 = vunpack.c.h.bf16 %v1583_v40 }
 0x33d   : > { %v1392_v54 = vpop.f32.mrf.mxu2  ;;  %v9809_v37 = vadd.f32 %v9756_v0, %v10854_v15  ;;  %5920 = vmatmul.msk.f32.vlgmr.msrb.gmra.mxu3 %vm3468_vm5, %v10848_v27  ;;  %v2231_v18 = vunpack.c.l.bf16 %v2123_v8  ;;  %7378 = vpow2.f32 %v1927_v16  ;;  %v1593_v19 = vxor.u32 2147516416, %v1513_v47 }
 0x33e   : > { %v9794_v2 = vadd.f32 %v1392_v54, %v9507_v62  ;;  %v2232_v60 = vunpack.c.h.bf16 %v2123_v8  ;;  %7380 = vpow2.f32 %v1929_v21  ;;  %v1574_v52 = vxor.u32 2147516416, %v1494_v42 }
 0x33f   : > { %v9815_v55 = vadd.f32 %v9750_v22, %v10856_v32  ;;  %v1967_v59 = vmul.f32 1.442695, %v1711_v10  ;;  %v9818_v29 = vadd.f32 %v1418_v48, %v10854_v15  ;;  %v2373_v44 = vadd.f32 1.0, %v2213_v12 }
 0x340   : > { %v1523_v7 = vpack.c.bf16 %v9794_v2, %v9791_v11  ;;  %v2374_v40 = vadd.f32 1.0, %v2214_v17  ;;  %v1969_v14 = vmul.f32 1.442695, %v1712_v1  ;;  %7382 = vrcp.f32 %v2703_v34 }
 0x341   : > { %10878 = vst [vmem:[#allocation38_spill] sm:$0xff] %v9815_v55  ;;  %v1504_v26 = vpack.c.bf16 %v9815_v55, %v9809_v37  ;;  %v7375_v54 = vpop.eup %7374  ;;  %v2391_v25 = vadd.f32 1.0, %v2231_v18  ;;  %v9823_v5 = vadd.f32 %v1447_v13, %v10856_v32  ;;  %v1731_v22 = vunpack.c.l.bf16 %v1593_v19 }
 0x342   : > { %v1603_v61 = vxor.u32 2147516416, %v1523_v7  ;;  %v7377_v8 = vpop.eup %7376  ;;  %v2392_v16 = vadd.f32 1.0, %v2232_v60  ;;  %v1693_v47 = vunpack.c.l.bf16 %v1574_v52  ;;  %v1732_v53 = vunpack.c.h.bf16 %v1593_v19 }
 0x343   : > { %v1450_v20 = vpop.f32.mrf.mxu0  ;;  %v7379_v42 = vpop.eup %7378  ;;  %v2704_v48 = vunpack.c.l.bf16 %v9788_v3  ;;  %7384 = vpow2.f32 %v1967_v59  ;;  %v1514_v7 = vpack.c.bf16 %v9823_v5, %v9818_v29  ;;  %v2514_v10 = vpack.c.bf16 %v2374_v40, %v2373_v44 }
 0x344   : > { %v1751_v0 = vunpack.c.l.bf16 %v1603_v61  ;;  %v1752_v36 = vunpack.c.h.bf16 %v1603_v61  ;;  %v7381_v17 = vpop.eup %7380  ;;  %v1694_v34 = vunpack.c.h.bf16 %v1574_v52  ;;  %7386 = vpow2.f32 %v1969_v14  ;;  %v1421_v1 = vpop.f32.mrf.mxu3 }
 0x345   : > { %v1584_v13 = vxor.u32 2147516416, %v1504_v26  ;;  %v2124_v18 = vpack.c.bf16 %v7377_v8, %v7375_v54  ;;  %v2007_v61 = vmul.f32 1.442695, %v1731_v22  ;;  %v9829_v19 = vadd.f32 %v1450_v20, %v10856_v32  ;;  %v1365_v63 = vpop.f32.mrf.mxu1 }
 0x346   : > { %v2047_v21 = vmul.f32 1.442695, %v1751_v0  ;;  %v2049_v12 = vmul.f32 1.442695, %v1752_v36  ;;  %v9832_v60 = vadd.f32 %v1421_v1, %v10854_v15  ;;  %v9834_v3 = vpack.c.bf16 %v2392_v16, %v2391_v25  ;;  %v9836_v36 = vpop.eup %7382 }
 0x347   : > { %v1931_v59 = vmul.f32 1.442695, %v1693_v47  ;;  %v2009_v0 = vmul.f32 1.442695, %v1732_v53  ;;  %v2133_v44 = vpack.c.bf16 %v7381_v17, %v7379_v42  ;;  %v1594_v52 = vxor.u32 2147516416, %v1514_v7 }
 0x348   : > { %7388 = vpow2.f32 %v2047_v21  ;;  %v1524_v40 = vpack.c.bf16 %v9829_v19, %v9832_v60  ;;  %v2710_v14 = vunpack.c.h.bf16 %v2514_v10  ;;  %v1933_v26 = vmul.f32 1.442695, %v1694_v34 }
 0x349   : > { %7390 = vpow2.f32 %v2049_v12  ;;  %v1713_v54 = vunpack.c.l.bf16 %v1584_v13  ;;  %v7385_v22 = vpop.eup %7384  ;;  %v2711_v8 = vunpack.c.l.bf16 %v2514_v10  ;;  %v1714_v20 = vunpack.c.h.bf16 %v1584_v13 }
 0x34a   : > { %7392 = vrcp.f32 %v2704_v48  ;;  %v1604_v25 = vxor.u32 2147516416, %v1524_v40  ;;  %v7387_v16 = vpop.eup %7386  ;;  %v2773_v47 = vunpack.c.h.bf16 %v9834_v3  ;;  %v2233_v53 = vunpack.c.l.bf16 %v2124_v18 }
 0x34b   : > { %7394 = vpow2.f32 %v2007_v61  ;;  %v2234_v21 = vunpack.c.h.bf16 %v2124_v18  ;;  %v2251_v42 = vunpack.c.l.bf16 %v2133_v44  ;;  %v2252_v7 = vunpack.c.h.bf16 %v2133_v44 }
 0x34c   : > { %7396 = vpow2.f32 %v2009_v0  ;;  %v1733_v12 = vunpack.c.l.bf16 %v1594_v52  ;;  %v1971_v48 = vmul.f32 1.442695, %v1713_v54  ;;  %v1753_v34 = vunpack.c.l.bf16 %v1604_v25 }
 0x34d   : > { %7398 = vpow2.f32 %v1931_v59  ;;  %v2143_v10 = vpack.c.bf16 %v7387_v16, %v7385_v22  ;;  %v1973_v13 = vmul.f32 1.442695, %v1714_v20  ;;  %v1754_v61 = vunpack.c.h.bf16 %v1604_v25 }
 0x34e   : > { %v7389_v17 = vpop.eup %7388  ;;  %7400 = vpow2.f32 %v1933_v26  ;;  %v2393_v24 = vadd.f32 1.0, %v2233_v53  ;;  %v2394_v50 = vadd.f32 1.0, %v2234_v21  ;;  %v1734_v18 = vunpack.c.h.bf16 %v1594_v52 }
 0x34f   : > { %v7391_v1 = vpop.eup %7390  ;;  %7402 = vrcp.f32 %v2710_v14  ;;  %v2411_v44 = vadd.f32 1.0, %v2251_v42  ;;  %v2412_v59 = vadd.f32 1.0, %v2252_v7  ;;  %v2011_v57 = vmul.f32 1.442695, %v1733_v12 }
 0x350   : > { %v9841_v40 = vpop.eup %7392  ;;  %7404 = vrcp.f32 %v2711_v8  ;;  %v2163_v26 = vpack.c.bf16 %v7391_v1, %v7389_v17  ;;  %v2051_v54 = vmul.f32 1.442695, %v1753_v34  ;;  %v2774_v22 = vunpack.c.l.bf16 %v9834_v3  ;;  %v1394_v8 = vpop.f32.mrf.mxu2 }
 0x351   : > { %v7395_v0 = vpop.eup %7394  ;;  %7406 = vrcp.f32 %v2773_v47  ;;  %v2271_v20 = vunpack.c.l.bf16 %v2143_v10  ;;  %v2053_v25 = vmul.f32 1.442695, %v1754_v61  ;;  %v2272_v53 = vunpack.c.h.bf16 %v2143_v10 }
 0x352   : > { %v7397_v56 = vpop.eup %7396  ;;  %7408 = vpow2.f32 %v1971_v48  ;;  %v2013_v52 = vmul.f32 1.442695, %v1734_v18  ;;  %v9845_v47 = vadd.f32 %v1365_v63, %v10851_v58  ;;  %v9848_v21 = vadd.f32 %v1394_v8, %v9507_v62 }
 0x353   : > { %v7399_v14 = vpop.eup %7398  ;;  %7410 = vpow2.f32 %v1973_v13  ;;  %v9852_v7 = vpack.c.bf16 %v2394_v50, %v2393_v24  ;;  %v2533_v12 = vpack.c.bf16 %v2412_v59, %v2411_v44  ;;  %v2153_v17 = vpack.c.bf16 %v7397_v56, %v7395_v0  ;;  %v10879_v0 = vld [vmem:[#allocation10_spill] sm:$0xff]  ;;  %v10881_v59 = vld [vmem:[#allocation43_spill] sm:$0xff] }
 0x354   : > { %v7401_v16 = vpop.eup %7400  ;;  %7412 = vpow2.f32 %v2011_v57  ;;  %v2311_v48 = vunpack.c.l.bf16 %v2163_v26  ;;  %v2312_v34 = vunpack.c.h.bf16 %v2163_v26  ;;  %v1533_v1 = vpack.c.bf16 %v9848_v21, %v9845_v47 }
 0x355   : > { %v9850_v42 = vpop.eup %7402  ;;  %7414 = vpow2.f32 %v2051_v54  ;;  %v2134_v63 = vpack.c.bf16 %v7401_v16, %v7399_v14  ;;  %v3153_v62 = vunpack.c.l.bf16 %v9672_v9  ;;  %v3156_v24 = vunpack.c.h.bf16 %v9689_v45 }
 0x356   : > { %v9854_v3 = vpop.eup %7404  ;;  %7416 = vpow2.f32 %v2053_v25  ;;  %v2431_v10 = vadd.f32 1.0, %v2271_v20  ;;  %v2432_v56 = vadd.f32 1.0, %v2272_v53  ;;  %v1613_v57 = vxor.u32 2147516416, %v1533_v1  ;;  %v1452_v53 = vpop.f32.mrf.mxu0 }
 0x357   : > { %v9858_v58 = vpop.eup %7406  ;;  %7418 = vpow2.f32 %v2013_v52  ;;  %v2291_v61 = vunpack.c.l.bf16 %v2153_v17  ;;  %v2292_v18 = vunpack.c.h.bf16 %v2153_v17  ;;  %v9863_v44 = vmul.f32 %v3153_v62, %v10879_v0 }
 0x358   : > { %v7409_v50 = vpop.eup %7408  ;;  %v9866_v26 = vmul.f32 %v3156_v24, %v10881_v59  ;;  %v2471_v54 = vadd.f32 1.0, %v2311_v48  ;;  %v2472_v14 = vadd.f32 1.0, %v2312_v34  ;;  %v1771_v25 = vunpack.c.l.bf16 %v1613_v57 }
 0x359   : > { %v7411_v13 = vpop.eup %7410  ;;  %10880 = vst [vmem:[#allocation13_spill] sm:$0xff] %v9863_v44  ;;  %v1772_v9 = vunpack.c.h.bf16 %v1613_v57  ;;  %7420 = vrcp.f32 %v2774_v22  ;;  %v2780_v20 = vunpack.c.h.bf16 %v9852_v7  ;;  %v2843_v27 = vunpack.c.h.bf16 %v2533_v12  ;;  %v1423_v57 = vpop.f32.mrf.mxu3 }
 0x35a   : > { %10882 = vst [vmem:[#allocation16_spill] sm:$0xff] %v9866_v26  ;;  %v7413_v8 = vpop.eup %7412  ;;  %v2144_v16 = vpack.c.bf16 %v7411_v13, %v7409_v50  ;;  %v2087_v52 = vmul.f32 1.442695, %v1771_v25  ;;  %v2844_v62 = vunpack.c.l.bf16 %v2533_v12  ;;  %v2253_v0 = vunpack.c.l.bf16 %v2134_v63 }
 0x35b   : > { %v7415_v45 = vpop.eup %7414  ;;  %v2089_v1 = vmul.f32 1.442695, %v1772_v9  ;;  %v9869_v49 = vpack.c.bf16 %v2432_v56, %v2431_v10  ;;  %v2451_v48 = vadd.f32 1.0, %v2291_v61  ;;  %v2452_v34 = vadd.f32 1.0, %v2292_v18 }
 0x35c   : > { %v7417_v17 = vpop.eup %7416  ;;  %v2563_v59 = vpack.c.bf16 %v2472_v14, %v2471_v54  ;;  %7422 = vpow2.f32 %v2087_v52  ;;  %v2254_v22 = vunpack.c.h.bf16 %v2134_v63  ;;  %v9872_v26 = vadd.f32 %v1452_v53, %v10856_v32 }
 0x35d   : > { %v7419_v24 = vpop.eup %7418  ;;  %7424 = vpow2.f32 %v2089_v1  ;;  %v9875_v50 = vadd.f32 %v1423_v57, %v10854_v15  ;;  %v2273_v13 = vunpack.c.l.bf16 %v2144_v16  ;;  %v2274_v12 = vunpack.c.h.bf16 %v2144_v16 }
 0x35e   : > { %7426 = vrcp.f32 %v2780_v20  ;;  %v2164_v25 = vpack.c.bf16 %v7417_v17, %v7415_v45  ;;  %v2913_v56 = vunpack.c.h.bf16 %v9869_v49  ;;  %v2154_v61 = vpack.c.bf16 %v7419_v24, %v7413_v8 }
 0x35f   : > { %v9877_v10 = vpop.eup %7420  ;;  %7428 = vrcp.f32 %v2843_v27  ;;  %v1534_v63 = vpack.c.bf16 %v9872_v26, %v9875_v50  ;;  %v2553_v32 = vpack.c.bf16 %v2452_v34, %v2451_v48  ;;  %v3053_v18 = vunpack.c.h.bf16 %v2563_v59 }
 0x360   : > { %7430 = vrcp.f32 %v2844_v62  ;;  %v2413_v54 = vadd.f32 1.0, %v2253_v0  ;;  %v2414_v14 = vadd.f32 1.0, %v2254_v22  ;;  %v3054_v15 = vunpack.c.l.bf16 %v2563_v59 }
 0x361   : > { %v1614_v9 = vxor.u32 2147516416, %v1534_v63  ;;  %v2433_v53 = vadd.f32 1.0, %v2273_v13  ;;  %v2434_v16 = vadd.f32 1.0, %v2274_v12  ;;  %v2313_v45 = vunpack.c.l.bf16 %v2164_v25 }
 0x362   : > { %v7423_v20 = vpop.eup %7422  ;;  %v2314_v52 = vunpack.c.h.bf16 %v2164_v25  ;;  %7432 = vrcp.f32 %v2913_v56  ;;  %v2293_v27 = vunpack.c.l.bf16 %v2154_v61  ;;  %v2983_v57 = vunpack.c.h.bf16 %v2553_v32 }
 0x363   : > { %v7425_v1 = vpop.eup %7424  ;;  %v1773_v17 = vunpack.c.l.bf16 %v1614_v9  ;;  %v1774_v8 = vunpack.c.h.bf16 %v1614_v9  ;;  %v2294_v62 = vunpack.c.h.bf16 %v2154_v61  ;;  %7434 = vrcp.f32 %v3053_v18 }
 0x364   : > { %v9882_v24 = vpop.eup %7426  ;;  %v2173_v48 = vpack.c.bf16 %v7425_v1, %v7423_v20  ;;  %v2984_v34 = vunpack.c.l.bf16 %v2553_v32  ;;  %7436 = vrcp.f32 %v3054_v15  ;;  %v2473_v12 = vadd.f32 1.0, %v2313_v45 }
 0x365   : > { %v7429_v0 = vpop.eup %7428  ;;  %v2091_v59 = vmul.f32 1.442695, %v1773_v17  ;;  %v2093_v22 = vmul.f32 1.442695, %v1774_v8  ;;  %v2474_v63 = vadd.f32 1.0, %v2314_v52  ;;  %v2914_v56 = vunpack.c.l.bf16 %v9869_v49 }
 0x366   : > { %v7431_v13 = vpop.eup %7430  ;;  %v2331_v25 = vunpack.c.l.bf16 %v2173_v48  ;;  %v2332_v23 = vunpack.c.h.bf16 %v2173_v48  ;;  %v2544_v6 = vpack.c.bf16 %v2434_v16, %v2433_v53  ;;  %v2453_v9 = vadd.f32 1.0, %v2293_v27 }
 0x367   : > { %7438 = vpow2.f32 %v2091_v59  ;;  %v2454_v44 = vadd.f32 1.0, %v2294_v62  ;;  %v2706_v32 = vmul.f32 %v9836_v36, %v7984_v28  ;;  %v2781_v15 = vunpack.c.l.bf16 %v9852_v7 }
 0x368   : > { %v2491_v55 = vadd.f32 1.0, %v2331_v25  ;;  %v2492_v61 = vadd.f32 1.0, %v2332_v23  ;;  %7440 = vpow2.f32 %v2093_v22  ;;  %v7433_v18 = vpop.eup %7432  ;;  %v2708_v45 = vmul.f32 %v9841_v40, %v7989_v31 }
 0x369   : > { %7442 = vrcp.f32 %v2983_v57  ;;  %v7435_v20 = vpop.eup %7434  ;;  %v2564_v49 = vpack.c.bf16 %v2474_v63, %v2473_v12  ;;  %v2534_v52 = vpack.c.bf16 %v2414_v14, %v2413_v54  ;;  %v2920_v1 = vunpack.c.h.bf16 %v2544_v6 }
 0x36a   : > { %7444 = vrcp.f32 %v2984_v34  ;;  %v2573_v53 = vpack.c.bf16 %v2492_v61, %v2491_v55  ;;  %v7437_v16 = vpop.eup %7436  ;;  %v2554_v23 = vpack.c.bf16 %v2454_v44, %v2453_v9  ;;  %v9890_v62 = vpack.c.bf16 %v2706_v32, %v2708_v45 }
 0x36b   : > { %7446 = vrcp.f32 %v2914_v56  ;;  %v3060_v7 = vunpack.c.h.bf16 %v2564_v49  ;;  %v2846_v40 = vmul.f32 %v7429_v0, %v7984_v28  ;;  %v3061_v48 = vunpack.c.l.bf16 %v2564_v49 }
 0x36c   : > { %v3123_v27 = vunpack.c.h.bf16 %v2573_v53  ;;  %v3124_v17 = vunpack.c.l.bf16 %v2573_v53  ;;  %7448 = vrcp.f32 %v2781_v15  ;;  %v2850_v54 = vunpack.c.h.bf16 %v2534_v52 }
 0x36d   : > { %v7439_v8 = vpop.eup %7438  ;;  %v2921_v14 = vunpack.c.l.bf16 %v2544_v6  ;;  %v2990_v44 = vunpack.c.h.bf16 %v2554_v23  ;;  %v3056_v22 = vmul.f32 %v7435_v20, %v7984_v28  ;;  %v3058_v12 = vmul.f32 %v7437_v16, %v7989_v31 }
 0x36e   : > { %v7441_v36 = vpop.eup %7440  ;;  %7450 = vrcp.f32 %v3123_v27  ;;  %v2851_v56 = vunpack.c.l.bf16 %v2534_v52  ;;  %v2991_v61 = vunpack.c.l.bf16 %v2554_v23  ;;  %v2848_v49 = vmul.f32 %v7431_v13, %v7989_v31 }
 0x36f   : > { %v7443_v57 = vpop.eup %7442  ;;  %7452 = vrcp.f32 %v3124_v17  ;;  %v2174_v55 = vpack.c.bf16 %v7441_v36, %v7439_v8  ;;  %v2916_v20 = vmul.f32 %v7433_v18, %v7984_v28  ;;  %v3059_v52 = vpack.c.bf16 %v3056_v22, %v3058_v12 }
 0x370   : > { %v7445_v34 = vpop.eup %7444  ;;  %7454 = vrcp.f32 %v2920_v1  ;;  %v2986_v9 = vmul.f32 %v7443_v57, %v7984_v28  ;;  %v2713_v17 = vmul.f32 %v9850_v42, %v7984_v28  ;;  %v2715_v8 = vmul.f32 %v9854_v3, %v7989_v31 }
 0x371   : > { %v7447_v59 = vpop.eup %7446  ;;  %v2333_v63 = vunpack.c.l.bf16 %v2174_v55  ;;  %v2334_v25 = vunpack.c.h.bf16 %v2174_v55  ;;  %7456 = vrcp.f32 %v3060_v7  ;;  %v2988_v32 = vmul.f32 %v7445_v34, %v7989_v31 }
 0x372   : > { %v9896_v0 = vpop.eup %7448  ;;  %7458 = vrcp.f32 %v3061_v48  ;;  %v2918_v53 = vmul.f32 %v7447_v59, %v7989_v31  ;;  %v2776_v48 = vmul.f32 %v9858_v58, %v7984_v28  ;;  %v2778_v55 = vmul.f32 %v9877_v10, %v7989_v31 }
 0x373   : > { %v2493_v6 = vadd.f32 1.0, %v2333_v63  ;;  %v2494_v15 = vadd.f32 1.0, %v2334_v25  ;;  %7460 = vrcp.f32 %v2921_v14  ;;  %v2989_v18 = vpack.c.bf16 %v2986_v9, %v2988_v32 }
 0x374   : > { %v7451_v45 = vpop.eup %7450  ;;  %7462 = vrcp.f32 %v2990_v44  ;;  %v9912_v14 = vpack.c.bf16 %v2846_v40, %v2848_v49  ;;  %v2919_v3 = vpack.c.bf16 %v2916_v20, %v2918_v53  ;;  %v3274_v44 = vunpack.c.h.bf16 %v3059_v52 }
 0x375   : > { %v7453_v16 = vpop.eup %7452  ;;  %v3126_v1 = vmul.f32 %v7451_v45, %v7984_v28  ;;  %v2574_v23 = vpack.c.bf16 %v2494_v15, %v2493_v6  ;;  %7464 = vrcp.f32 %v2991_v61  ;;  %v3273_v12 = vunpack.c.l.bf16 %v3059_v52  ;;  %v9927_v52 = vpop.f32.mrf.mxu2 }
 0x376   : > { %v7455_v27 = vpop.eup %7454  ;;  %v3128_v13 = vmul.f32 %v7453_v16, %v7989_v31  ;;  %7466 = vrcp.f32 %v2850_v54  ;;  %v3174_v25 = vunpack.c.h.bf16 %v9890_v62  ;;  %v9915_v58 = vpack.c.bf16 %v2713_v17, %v2715_v8  ;;  %v9925_v16 = vpop.f32.mrf.mxu1 }
 0x377   : > { %v3130_v36 = vunpack.c.h.bf16 %v2574_v23  ;;  %v3131_v7 = vunpack.c.l.bf16 %v2574_v23  ;;  %v7457_v57 = vpop.eup %7456  ;;  %7468 = vrcp.f32 %v2851_v56  ;;  %v3254_v9 = vunpack.c.h.bf16 %v2989_v18 }
 0x378   : > { %v3129_v34 = vpack.c.bf16 %v3126_v1, %v3128_v13  ;;  %v7459_v42 = vpop.eup %7458  ;;  %v3063_v10 = vmul.f32 %v7457_v57, %v7984_v28  ;;  %v3253_v6 = vunpack.c.l.bf16 %v2989_v18  ;;  %v2779_v45 = vpack.c.bf16 %v2776_v48, %v2778_v55 }
 0x379   : > { %7470 = vrcp.f32 %v3130_v36  ;;  %v7461_v59 = vpop.eup %7460  ;;  %v3065_v40 = vmul.f32 %v7459_v42, %v7989_v31  ;;  %v2783_v49 = vmul.f32 %v9882_v24, %v7984_v28  ;;  %v3214_v20 = vunpack.c.h.bf16 %v9912_v14 }
 0x37a   : > { %v3293_v54 = vunpack.c.l.bf16 %v3129_v34  ;;  %v3294_v22 = vunpack.c.h.bf16 %v3129_v34  ;;  %7472 = vrcp.f32 %v3131_v7  ;;  %v7463_v63 = vpop.eup %7462  ;;  %v2923_v53 = vmul.f32 %v7455_v27, %v7984_v28 }
 0x37b   : > { %v7465_v56 = vpop.eup %7464  ;;  %v3234_v23 = vunpack.c.h.bf16 %v2919_v3  ;;  %v3233_v17 = vunpack.c.l.bf16 %v2919_v3  ;;  %v2925_v24 = vmul.f32 %v7461_v59, %v7989_v31  ;;  %v3414_v13 = vmul.f32 %v3254_v9, %v9774_v33 }
 0x37c   : > { %v3454_v61 = vmul.f32 %v3294_v22, %v9848_v21  ;;  %v3453_v32 = vmul.f32 %v3293_v54, %v9845_v47  ;;  %v7467_v15 = vpop.eup %7466  ;;  %v3434_v21 = vmul.f32 %v3274_v44, %v9794_v2  ;;  %v3433_v47 = vmul.f32 %v3273_v12, %v9791_v11 }
 0x37d   : > { %v7469_v1 = vpop.eup %7468  ;;  %v2993_v27 = vmul.f32 %v7463_v63, %v7984_v28  ;;  %v2995_v18 = vmul.f32 %v7465_v56, %v7989_v31  ;;  %v3066_v7 = vpack.c.bf16 %v3063_v10, %v3065_v40  ;;  %v3413_v2 = vmul.f32 %v3253_v6, %v9785_v46  ;;  %v3529_v10 = vpop.f32.mrf.mxu3 }
 0x37e   : > { %3800 = vmatpush.msrb.mxu0 %v3453_v32  ;;  %3820 = vmatpush.msra.mxu1 %v3454_v61  ;;  %v3213_v11 = vunpack.c.l.bf16 %v9912_v14  ;;  %v3194_v48 = vunpack.c.h.bf16 %v2779_v45  ;;  %v2785_v55 = vmul.f32 %v9896_v0, %v7989_v31  ;;  %v2853_v33 = vmul.f32 %v7467_v15, %v7984_v28  ;;  %v3549_v56 = vpop.f32.mrf.mxu1  ;;  %v9953_v40 = vpop.f32.mrf.mxu2 }
 0x37f   : > { %v7471_v8 = vpop.eup %7470  ;;  %v2855_v42 = vmul.f32 %v7469_v1, %v7989_v31  ;;  %v3394_v3 = vmul.f32 %v3234_v23, %v9753_v39  ;;  %v3393_v44 = vmul.f32 %v3233_v17, %v9759_v43  ;;  %v3193_v59 = vunpack.c.l.bf16 %v2779_v45 }
 0x380   : > { %v7473_v36 = vpop.eup %7472  ;;  %v3133_v57 = vmul.f32 %v7471_v8, %v7984_v28  ;;  %3801 = vmatpush.msrb.mxu0 %v3433_v47  ;;  %3821 = vmatpush.msra.mxu1 %v3434_v21  ;;  %v3334_v46 = vmul.f32 %v3174_v25, %v9678_v38  ;;  %v3374_v14 = vmul.f32 %v3214_v20, %v9741_v41  ;;  %v3275_v12 = vunpack.c.l.bf16 %v3066_v7  ;;  %v10883_v47 = vld [vmem:[#allocation38_spill] sm:$0xff] }
 0x381   : > { %v3135_v34 = vmul.f32 %v7473_v36, %v7989_v31  ;;  %v2996_v54 = vpack.c.bf16 %v2993_v27, %v2995_v18  ;;  %v2926_v0 = vpack.c.bf16 %v2923_v53, %v2925_v24  ;;  %v3373_v28 = vmul.f32 %v3213_v11, %v9745_v30  ;;  %v10884_v24 = vld [vmem:[#allocation13_spill] sm:$0xff]  ;;  %v10886_v36 = vld [vmem:[#allocation28_spill] sm:$0xff] }
 0x382   : > { %3802 = vmatpush.msrb.mxu0 %v3413_v2  ;;  %3822 = vmatpush.msra.mxu1 %v3414_v13  ;;  %v3173_v31 = vunpack.c.l.bf16 %v9890_v62  ;;  %v9949_v39 = vpack.c.bf16 %v2783_v49, %v2785_v55  ;;  %v3276_v43 = vunpack.c.h.bf16 %v3066_v7  ;;  %v3354_v38 = vmul.f32 %v3194_v48, %v9707_v4  ;;  %v10885_v13 = vld [vmem:[#allocation44_spill] sm:$0xff]  ;;  %v6628_v2 = vld [vmem:[%s10540_s5 + $0x70] sm:$0xff]  ;;  %v10887_v55 = vld [vmem:[#allocation21_spill] sm:$0xff] }
 0x383   : > { %v3136_v22 = vpack.c.bf16 %v3133_v57, %v3135_v34  ;;  %v2856_v41 = vpack.c.bf16 %v2853_v33, %v2855_v42  ;;  %v3353_v25 = vmul.f32 %v3193_v59, %v9714_v35  ;;  %v3255_v61 = vunpack.c.l.bf16 %v2996_v54  ;;  %v6620_v57 = vld [vmem:[%s10540_s5 + $0x30] sm:$0xff] }
 0x384   : > { %3803 = vmatpush.msrb.mxu0 %v3393_v44  ;;  %3823 = vmatpush.msra.mxu1 %v3394_v3  ;;  %v3256_v32 = vunpack.c.h.bf16 %v2996_v54  ;;  %v3235_v6 = vunpack.c.l.bf16 %v2926_v0  ;;  %v3435_v15 = vmul.f32 %v3275_v12, %v9832_v60  ;;  %v3236_v45 = vunpack.c.h.bf16 %v2926_v0  ;;  %v6621_v60 = vld [vmem:[%s10540_s5 + $0x38] sm:$0xff]  ;;  %v10888_v3 = vld [vmem:[#allocation41_spill] sm:$0xff] }
 0x385   : > { %v3295_v63 = vunpack.c.l.bf16 %v3136_v22  ;;  %v3296_v9 = vunpack.c.h.bf16 %v3136_v22  ;;  %v3333_v4 = vmul.f32 %v3173_v31, %v9687_v51  ;;  %v3436_v35 = vmul.f32 %v3276_v43, %v9829_v19  ;;  %v6629_v51 = vld [vmem:[%s10540_s5 + $0x78] sm:$0xff]  ;;  %v3589_v18 = vpop.f32.mrf.mxu3  ;;  %v6619_v0 = vld [vmem:[%s10540_s5 + $0x28] sm:$0xff] }
 0x386   : > { %3804 = vmatpush.msrb.mxu0 %v3373_v28  ;;  %3824 = vmatpush.msra.mxu1 %v3374_v14  ;;  %v3892_v49 = vrot.slane %v9927_v52, 7  ;;  %v3893_v20 = vrot.slane %v3529_v10, 6  ;;  %v3894_v53 = vrot.slane %v3549_v56, 5  ;;  %v3195_v19 = vunpack.c.l.bf16 %v9949_v39  ;;  %v3629_v48 = vpop.f32.mrf.mxu2  ;;  %v10890_v54 = vld [vmem:[#allocation19_spill] sm:$0xff]  ;;  %v6627_v12 = vld [vmem:[%s10540_s5 + $0x68] sm:$0xff] }
 0x387   : > { %v3455_v30 = vmul.f32 %v3295_v63, %v9875_v50  ;;  %v3456_v62 = vmul.f32 %v3296_v9, %v9872_v26  ;;  %v3175_v50 = vunpack.c.l.bf16 %v9915_v58  ;;  %v3215_v26 = vunpack.c.l.bf16 %v2856_v41  ;;  %v10891_v31 = vld [vmem:[#allocation14_spill] sm:$0xff]  ;;  %v10892_v63 = vld [vmem:[#allocation32_spill] sm:$0xff] }
 0x388   : > { %3805 = vmatpush.msrb.mxu0 %v3353_v25  ;;  %3825 = vmatpush.msra.mxu1 %v3354_v38  ;;  %v3415_v52 = vmul.f32 %v3255_v61, %v9818_v29  ;;  %v3416_v1 = vmul.f32 %v3256_v32, %v9823_v5  ;;  %v3216_v23 = vunpack.c.h.bf16 %v2856_v41  ;;  %v3395_v21 = vmul.f32 %v3235_v6, %v9809_v37  ;;  %v3609_v37 = vpop.f32.mrf.mxu1  ;;  %v6637_v10 = vld [vmem:[%s10540_s5 + $0xb8] sm:$0xff]  ;;  %v6618_v38 = vld [vmem:[%s10540_s5 + $0x20] sm:$0xff]  ;;  %v6636_v61 = vld [vmem:[%s10540_s5 + $0xb0] sm:$0xff] }
 0x389   : > { %3840 = vmatpush.msra.mxu2 %v3455_v30  ;;  %3860 = vmatpush.msra.mxu3 %v3456_v62  ;;  %v3396_v17 = vmul.f32 %v3236_v45, %v10883_v47  ;;  %v3196_v8 = vunpack.c.h.bf16 %v9949_v39  ;;  %v3895_v27 = vrot.slane %v9953_v40, 4  ;;  %v3910_v29 = vsel %vm3909_vm6, %v9925_v16, %v3892_v49  ;;  %v6645_v56 = vld [vmem:[%s10540_s5 + $0xf8] sm:$0xff]  ;;  %v6626_v41 = vld [vmem:[%s10540_s5 + $0x60] sm:$0xff]  ;;  %v6644_v30 = vld [vmem:[%s10540_s5 + $0xf0] sm:$0xff] }
 0x38a   : > { %3806 = vmatpush.msrb.mxu0 %v3333_v4  ;;  %3826 = vmatpush.msra.mxu1 %v3334_v46  ;;  %v3912_v5 = vsel %vm3911_vm7, %v3893_v20, %v3894_v53  ;;  %v3375_v7 = vmul.f32 %v3215_v26, %v10886_v36  ;;  %v3896_v11 = vrot.slane %v3589_v18, 3  ;;  %v3897_v16 = vrot.slane %v3609_v37, 2  ;;  %v10889_v46 = vld [vmem:[#allocation7_spill] sm:$0xff]  ;;  %v10893_v25 = vld [vmem:[#allocation33_spill] sm:$0xff]  ;;  %v10894_v40 = vld [vmem:[#allocation16_spill] sm:$0xff] }
 0x38b   : > { %3841 = vmatpush.msra.mxu2 %v3435_v15  ;;  %3861 = vmatpush.msra.mxu3 %v3436_v35  ;;  %v3376_v33 = vmul.f32 %v3216_v23, %v10887_v55  ;;  %v3176_v34 = vunpack.c.h.bf16 %v9915_v58  ;;  %v3898_v42 = vrot.slane %v3629_v48, 1  ;;  %v3914_v44 = vsel %vm3913_vm8, %v3910_v29, %v3912_v5  ;;  %v6617_v62 = vld [vmem:[%s10540_s5 + $0x18] sm:$0xff]  ;;  %v6635_v6 = vld [vmem:[%s10540_s5 + $0xa8] sm:$0xff]  ;;  %v6616_v45 = vld [vmem:[%s10540_s5 + $0x10] sm:$0xff] }
 0x38c   : > { %3807 = vmatpush.msrb.mxu0 %v10884_v24  ;;  %3827 = vmatpush.msra.mxu1 %v10885_v13  ;;  %v3916_v59 = vsel %vm3915_vm9, %v3895_v27, %v3896_v11  ;;  %v3355_v14 = vmul.f32 %v3195_v19, %v10889_v46  ;;  %v3356_v22 = vmul.f32 %v3196_v8, %v10890_v54  ;;  %v6625_v32 = vld [vmem:[%s10540_s5 + $0x58] sm:$0xff]  ;;  %v6643_v15 = vld [vmem:[%s10540_s5 + $0xe8] sm:$0xff]  ;;  %v6624_v4 = vld [vmem:[%s10540_s5 + $0x50] sm:$0xff] }
 0x38d   : > { %3842 = vmatpush.msra.mxu2 %v3415_v52  ;;  %3862 = vmatpush.msra.mxu3 %v3416_v1  ;;  %v3918_v58 = vsel %vm3917_vm10, %v3897_v16, %v3898_v42  ;;  %v3335_v39 = vmul.f32 %v3175_v50, %v10891_v31  ;;  %v3336_v9 = vmul.f32 %v3176_v34, %v10892_v63  ;;  %v6634_v35 = vld [vmem:[%s10540_s5 + $0xa0] sm:$0xff]  ;;  %v6615_v20 = vld [vmem:[%s10540_s5 + $0x8] sm:$0xff]  ;;  %v6633_v26 = vld [vmem:[%s10540_s5 + $0x98] sm:$0xff]  ;;  %v3649_v29 = vpop.f32.mrf.mxu3 }
 0x38e   : > { %5299 = vmatpush.bf16.msra.mxu0 %v6621_v60  ;;  %5312 = vmatpush.bf16.msrb.mxu1 %v6629_v51  ;;  %v3920_v28 = vsel %vm3919_vm12, %v3916_v59, %v3918_v58  ;;  %v6642_v49 = vld [vmem:[%s10540_s5 + $0xe0] sm:$0xff]  ;;  %v6623_v53 = vld [vmem:[%s10540_s5 + $0x48] sm:$0xff]  ;;  %v6641_v60 = vld [vmem:[%s10540_s5 + $0xd8] sm:$0xff]  ;;  %v3689_v42 = vpop.f32.mrf.mxu2 }
 0x38f   : > { %3843 = vmatpush.msra.mxu2 %v3395_v21  ;;  %3863 = vmatpush.msra.mxu3 %v3396_v17  ;;  %v3922_v43 = vsel %vm3921_vm13, %v3914_v44, %v3920_v28  ;;  %v6614_v51 = vld [vmem:[%s10540_s5] sm:$0xff]  ;;  %v6653_v23 = vld [vmem:[%s10540_s5 + $0x138] sm:$0xff]  ;;  %v6632_v47 = vld [vmem:[%s10540_s5 + $0x90] sm:$0xff]  ;;  %v3900_v28 = vrot.slane %v3689_v42, 6 }
 0x390   : > { %5922 = vmatmul.msk.f32.vlgmr.msra.gmra.mxu1 %vm3468_vm5, %v10888_v3  ;;  %5921 = vmatmul.msk.f32.vlgmr.msrb.gmra.mxu0 %vm3468_vm5, %v10888_v3  ;;  %v10062_v50 = vmul.f32 0.015625, %v3922_v43  ;;  %v6622_v19 = vld [vmem:[%s10540_s5 + $0x40] sm:$0xff]  ;;  %v6661_v21 = vld [vmem:[%s10540_s5 + $0x178] sm:$0xff]  ;;  %v6640_v17 = vld [vmem:[%s10540_s5 + $0xd0] sm:$0xff]  ;;  %v3669_v34 = vpop.f32.mrf.mxu1 }
 0x391   : > { %3844 = vmatpush.msra.mxu2 %v3375_v7  ;;  %3864 = vmatpush.msra.mxu3 %v3376_v33  ;;  %v6652_v13 = vld [vmem:[%s10540_s5 + $0x130] sm:$0xff]  ;;  %v6631_v5 = vld [vmem:[%s10540_s5 + $0x88] sm:$0xff]  ;;  %v6638_v11 = vld [vmem:[%s10540_s5 + $0xc0] sm:$0xff] }
 0x392   : > { %5300 = vmatpush.bf16.msra.mxu0 %v6620_v57  ;;  %5313 = vmatpush.bf16.msrb.mxu1 %v6628_v2  ;;  %v3958_v52 = vperm.slane %v10062_v50, 0  ;;  %v3959_v1 = vperm.slane %v10062_v50, 1  ;;  %v6660_v27 = vld [vmem:[%s10540_s5 + $0x170] sm:$0xff]  ;;  %v6639_v18 = vld [vmem:[%s10540_s5 + $0xc8] sm:$0xff]  ;;  %v3960_v7 = vperm.slane %v10062_v50, 2  ;;  %v3961_v57 = vperm.slane %v10062_v50, 3 }
 0x393   : > { %3845 = vmatpush.msra.mxu2 %v3355_v14  ;;  %3865 = vmatpush.msra.mxu3 %v3356_v22  ;;  %v6651_v37 = vld [vmem:[%s10540_s5 + $0x128] sm:$0xff]  ;;  %v6630_v2 = vld [vmem:[%s10540_s5 + $0x80] sm:$0xff]  ;;  %v6669_v16 = vld [vmem:[%s10540_s5 + $0x1b8] sm:$0xff] }
 0x394   : > { %v3998_v8 = vpack.c.bf16 %v3958_v52, %v3958_v52  ;;  %v3999_v24 = vpack.c.bf16 %v3959_v1, %v3959_v1  ;;  %v6659_v36 = vld [vmem:[%s10540_s5 + $0x168] sm:$0xff]  ;;  %v6677_v48 = vld [vmem:[%s10540_s5 + $0x1f8] sm:$0xff]  ;;  %v6650_v55 = vld [vmem:[%s10540_s5 + $0x120] sm:$0xff]  ;;  %v4001_v44 = vpack.c.bf16 %v3961_v57, %v3961_v57  ;;  %v3962_v1 = vperm.slane %v10062_v50, 4 }
 0x395   : > { %3846 = vmatpush.msra.mxu2 %v3335_v39  ;;  %3866 = vmatpush.msra.mxu3 %v3336_v9  ;;  %v6658_v33 = vld [vmem:[%s10540_s5 + $0x160] sm:$0xff]  ;;  %v3709_v59 = vpop.f32.mrf.mxu3  ;;  %v6668_v46 = vld [vmem:[%s10540_s5 + $0x1b0] sm:$0xff]  ;;  %v6649_v54 = vld [vmem:[%s10540_s5 + $0x118] sm:$0xff] }
 0x396   : > { %5301 = vmatpush.bf16.msra.mxu0 %v6619_v0  ;;  %5314 = vmatpush.bf16.msrb.mxu1 %v6627_v12  ;;  %v6676_v14 = vld [vmem:[%s10540_s5 + $0x1f0] sm:$0xff]  ;;  %v6657_v22 = vld [vmem:[%s10540_s5 + $0x158] sm:$0xff]  ;;  %v6667_v58 = vld [vmem:[%s10540_s5 + $0x1a8] sm:$0xff]  ;;  %v3899_v12 = vrot.slane %v3669_v34, 7  ;;  %v3901_v31 = vrot.slane %v3709_v59, 5 }
 0x397   : > { %3847 = vmatpush.msra.mxu2 %v10893_v25  ;;  %3867 = vmatpush.msra.mxu3 %v10894_v40  ;;  %v6675_v0 = vld [vmem:[%s10540_s5 + $0x1e8] sm:$0xff]  ;;  %v6648_v39 = vld [vmem:[%s10540_s5 + $0x110] sm:$0xff]  ;;  %v6674_v25 = vld [vmem:[%s10540_s5 + $0x1e0] sm:$0xff] }
 0x398   : > { %5923 = vmatmul.msk.f32.vlgmr.msra.gmra.mxu2 %vm3468_vm5, %v10888_v3  ;;  %5924 = vmatmul.msk.f32.vlgmr.msra.gmra.mxu3 %vm3468_vm5, %v10888_v3  ;;  %v4000_v3 = vpack.c.bf16 %v3960_v7, %v3960_v7  ;;  %v6656_v63 = vld [vmem:[%s10540_s5 + $0x150] sm:$0xff]  ;;  %v3923_v40 = vsel %vm3909_vm6, %v3649_v29, %v3899_v12  ;;  %v6671_v29 = vld [vmem:[%s10540_s5 + $0x1c8] sm:$0xff]  ;;  %v6701_v7 = vld [vmem:[%s10540_s5 + $0x2b8] sm:$0xff] }
 0x399   : > { %5325 = vmatpush.bf16.msrb.mxu2 %v6637_v10  ;;  %5338 = vmatpush.bf16.msrb.mxu3 %v6645_v56  ;;  %v6709_v57 = vld [vmem:[%s10540_s5 + $0x2f8] sm:$0xff]  ;;  %v6708_v34 = vld [vmem:[%s10540_s5 + $0x2f0] sm:$0xff]  ;;  %v6707_v59 = vld [vmem:[%s10540_s5 + $0x2e8] sm:$0xff] }
 0x39a   : > { %5302 = vmatpush.bf16.msra.mxu0 %v6618_v38  ;;  %5315 = vmatpush.bf16.msrb.mxu1 %v6626_v41  ;;  %v6666_v41 = vld [vmem:[%s10540_s5 + $0x1a0] sm:$0xff]  ;;  %v6681_v42 = vld [vmem:[%s10540_s5 + $0x218] sm:$0xff] }
 0x39d   : > { %5326 = vmatpush.bf16.msrb.mxu2 %v6636_v61  ;;  %5339 = vmatpush.bf16.msrb.mxu3 %v6644_v30  ;;  %v3924_v61 = vsel %vm3911_vm7, %v3900_v28, %v3901_v31  ;;  %v6697_v28 = vld [vmem:[%s10540_s5 + $0x298] sm:$0xff] }
 0x39e   : > { %5303 = vmatpush.bf16.msra.mxu0 %v6617_v62  ;;  %5316 = vmatpush.bf16.msrb.mxu1 %v6625_v32  ;;  %v6647_v62 = vld [vmem:[%s10540_s5 + $0x108] sm:$0xff]  ;;  %v6705_v31 = vld [vmem:[%s10540_s5 + $0x2d8] sm:$0xff] }
 0x39f   : > { %v6655_v32 = vld [vmem:[%s10540_s5 + $0x148] sm:$0xff] }
 0x3a1   : > { %5327 = vmatpush.bf16.msrb.mxu2 %v6635_v6  ;;  %5340 = vmatpush.bf16.msrb.mxu3 %v6643_v15 }
 0x3a2   : > { %5304 = vmatpush.bf16.msra.mxu0 %v6616_v45  ;;  %5317 = vmatpush.bf16.msrb.mxu1 %v6624_v4  ;;  %v3749_v43 = vpop.f32.mrf.mxu1  ;;  %v3925_v4 = vsel %vm3913_vm8, %v3923_v40, %v3924_v61  ;;  %v6716_v61 = vld [vmem:[%s10540_s5 + $0x330] sm:$0xff] }
 0x3a3   : > { %v3903_v56 = vrot.slane %v3749_v43, 3 }
 0x3a5   : > { %5328 = vmatpush.bf16.msrb.mxu2 %v6634_v35  ;;  %5341 = vmatpush.bf16.msrb.mxu3 %v6642_v49  ;;  %v6665_v35 = vld [vmem:[%s10540_s5 + $0x198] sm:$0xff] }
 0x3a6   : > { %5305 = vmatpush.bf16.msra.mxu0 %v6615_v20  ;;  %5318 = vmatpush.bf16.msrb.mxu1 %v6623_v53  ;;  %v6673_v49 = vld [vmem:[%s10540_s5 + $0x1d8] sm:$0xff]  ;;  %v6646_v53 = vld [vmem:[%s10540_s5 + $0x100] sm:$0xff] }
 0x3a9   : > { %5329 = vmatpush.bf16.msrb.mxu2 %v6633_v26  ;;  %5342 = vmatpush.bf16.msrb.mxu3 %v6641_v60  ;;  %v6654_v26 = vld [vmem:[%s10540_s5 + $0x140] sm:$0xff] }
 0x3aa   : > { %5306 = vmatpush.bf16.msra.mxu0 %v6614_v51  ;;  %5319 = vmatpush.bf16.msrb.mxu1 %v6622_v19  ;;  %v6685_v51 = vld [vmem:[%s10540_s5 + $0x238] sm:$0xff] }
 0x3ab   : > { %v3769_v38 = vpop.f32.mrf.mxu2  ;;  %v6693_v19 = vld [vmem:[%s10540_s5 + $0x278] sm:$0xff] }
 0x3ac   : > { %v3904_v30 = vrot.slane %v3769_v38, 2  ;;  %v6696_v38 = vld [vmem:[%s10540_s5 + $0x290] sm:$0xff] }
 0x3ad   : > { %5330 = vmatpush.bf16.msrb.mxu2 %v6632_v47  ;;  %5343 = vmatpush.bf16.msrb.mxu3 %v6640_v17  ;;  %v6672_v47 = vld [vmem:[%s10540_s5 + $0x1d0] sm:$0xff] }
 0x3ae   : > { %5351 = vmatpush.bf16.msrb.mxu0 %v6653_v23  ;;  %5364 = vmatpush.bf16.msra.mxu1 %v6661_v21  ;;  %v3963_v23 = vperm.slane %v10062_v50, 5  ;;  %v6664_v21 = vld [vmem:[%s10540_s5 + $0x190] sm:$0xff] }
 0x3af   : > { %5307 = vmatmul.bf16.vlgmr.msra.gmra.mxu0 %v3998_v8  ;;  %5320 = vmatmul.bf16.vlgmr.msrb.gmra.mxu1 %v3999_v24  ;;  %v6684_v17 = vld [vmem:[%s10540_s5 + $0x230] sm:$0xff]  ;;  %v4002_v24 = vpack.c.bf16 %v3962_v1, %v3962_v1 }
 0x3b0   : > { %v6692_v8 = vld [vmem:[%s10540_s5 + $0x270] sm:$0xff] }
 0x3b1   : > { %5331 = vmatpush.bf16.msrb.mxu2 %v6631_v5  ;;  %5344 = vmatpush.bf16.msrb.mxu3 %v6639_v18  ;;  %v6683_v5 = vld [vmem:[%s10540_s5 + $0x228] sm:$0xff]  ;;  %v6740_v1 = vld [vmem:[%s10540_s5 + $0x3f0] sm:$0xff] }
 0x3b2   : > { %5352 = vmatpush.bf16.msrb.mxu0 %v6652_v13  ;;  %5365 = vmatpush.bf16.msra.mxu1 %v6660_v27  ;;  %v4003_v13 = vpack.c.bf16 %v3963_v23, %v3963_v23  ;;  %v6663_v27 = vld [vmem:[%s10540_s5 + $0x188] sm:$0xff]  ;;  %v6713_v23 = vld [vmem:[%s10540_s5 + $0x318] sm:$0xff] }
 0x3b3   : > { %v6691_v18 = vld [vmem:[%s10540_s5 + $0x268] sm:$0xff] }
 0x3b5   : > { %5332 = vmatpush.bf16.msrb.mxu2 %v6630_v2  ;;  %5345 = vmatpush.bf16.msrb.mxu3 %v6638_v11  ;;  %v3964_v2 = vperm.slane %v10062_v50, 6  ;;  %v3965_v11 = vperm.slane %v10062_v50, 7  ;;  %v6700_v50 = vld [vmem:[%s10540_s5 + $0x2b0] sm:$0xff] }
 0x3b6   : > { %5353 = vmatpush.bf16.msrb.mxu0 %v6651_v37  ;;  %5366 = vmatpush.bf16.msra.mxu1 %v6659_v36  ;;  %v6662_v37 = vld [vmem:[%s10540_s5 + $0x180] sm:$0xff] }
 0x3b7   : > { %v6670_v36 = vld [vmem:[%s10540_s5 + $0x1c0] sm:$0xff] }
 0x3b8   : > { %5333 = vmatmul.bf16.vlgmr.msrb.gmra.mxu2 %v4000_v3  ;;  %5346 = vmatmul.bf16.vlgmr.msrb.gmra.mxu3 %v4001_v44  ;;  %v6689_v3 = vld [vmem:[%s10540_s5 + $0x258] sm:$0xff]  ;;  %v6699_v44 = vld [vmem:[%s10540_s5 + $0x2a8] sm:$0xff] }
 0x3b9   : > { %5377 = vmatpush.bf16.msra.mxu2 %v6669_v16  ;;  %5390 = vmatpush.bf16.msra.mxu3 %v6677_v48  ;;  %v3729_v9 = vpop.f32.mrf.mxu0  ;;  %v6682_v16 = vld [vmem:[%s10540_s5 + $0x220] sm:$0xff] }
 0x3ba   : > { %5354 = vmatpush.bf16.msrb.mxu0 %v6650_v55  ;;  %5367 = vmatpush.bf16.msra.mxu1 %v6658_v33  ;;  %v3902_v10 = vrot.slane %v3729_v9, 4  ;;  %v6690_v48 = vld [vmem:[%s10540_s5 + $0x260] sm:$0xff]  ;;  %v4004_v55 = vpack.c.bf16 %v3964_v2, %v3964_v2  ;;  %v4005_v33 = vpack.c.bf16 %v3965_v11, %v3965_v11  ;;  %v6757_v2 = vld [vmem:[%s10540_s5 + $0x478] sm:$0xff]  ;;  %v10895_v11 = vlaneseq }
 0x3bc   : > { %v3926_v15 = vsel %vm3915_vm9, %v3902_v10, %v3903_v56  ;;  %v6717_v10 = vld [vmem:[%s10540_s5 + $0x338] sm:$0xff]  ;;  %vm10395_vm14 = vcmp.lt.s32.totalorder %v10895_v11, 512 }
 0x3bd   : > { %5378 = vmatpush.bf16.msra.mxu2 %v6668_v46  ;;  %5391 = vmatpush.bf16.msra.mxu3 %v6676_v14  ;;  %v6680_v46 = vld [vmem:[%s10540_s5 + $0x210] sm:$0xff]  ;;  %v6725_v56 = vld [vmem:[%s10540_s5 + $0x378] sm:$0xff] }
 0x3be   : > { %5355 = vmatpush.bf16.msrb.mxu0 %v6649_v54  ;;  %5368 = vmatpush.bf16.msra.mxu1 %v6657_v22  ;;  %v6688_v14 = vld [vmem:[%s10540_s5 + $0x250] sm:$0xff]  ;;  %v6698_v54 = vld [vmem:[%s10540_s5 + $0x2a0] sm:$0xff] }
 0x3bf   : > { %v6706_v22 = vld [vmem:[%s10540_s5 + $0x2e0] sm:$0xff] }
 0x3c0   : > { %v3789_v6 = vpop.f32.mrf.mxu3 }
 0x3c1   : > { %5379 = vmatpush.bf16.msra.mxu2 %v6667_v58  ;;  %5392 = vmatpush.bf16.msra.mxu3 %v6675_v0  ;;  %v3905_v45 = vrot.slane %v3789_v6, 1  ;;  %v6679_v58 = vld [vmem:[%s10540_s5 + $0x208] sm:$0xff] }
 0x3c2   : > { %5356 = vmatpush.bf16.msrb.mxu0 %v6648_v39  ;;  %5369 = vmatpush.bf16.msra.mxu1 %v6656_v63  ;;  %v6687_v0 = vld [vmem:[%s10540_s5 + $0x248] sm:$0xff]  ;;  %v6678_v39 = vld [vmem:[%s10540_s5 + $0x200] sm:$0xff] }
 0x3c3   : > { %v3927_v20 = vsel %vm3917_vm10, %v3904_v30, %v3905_v45  ;;  %v6686_v63 = vld [vmem:[%s10540_s5 + $0x240] sm:$0xff]  ;;  %v6724_v30 = vld [vmem:[%s10540_s5 + $0x370] sm:$0xff]  ;;  %v6715_v6 = vld [vmem:[%s10540_s5 + $0x328] sm:$0xff] }
 0x3c4   : > { %v3928_v60 = vsel %vm3919_vm12, %v3926_v15, %v3927_v20  ;;  %v6723_v15 = vld [vmem:[%s10540_s5 + $0x368] sm:$0xff]  ;;  %v6733_v20 = vld [vmem:[%s10540_s5 + $0x3b8] sm:$0xff] }
 0x3c5   : > { %5380 = vmatpush.bf16.msra.mxu2 %v6666_v41  ;;  %5393 = vmatpush.bf16.msra.mxu3 %v6674_v25  ;;  %v10189_v52 = vsel %vm3921_vm13, %v3925_v4, %v3928_v60  ;;  %v6704_v41 = vld [vmem:[%s10540_s5 + $0x2d0] sm:$0xff]  ;;  %v6722_v60 = vld [vmem:[%s10540_s5 + $0x360] sm:$0xff] }
 0x3c6   : > { %5357 = vmatpush.bf16.msrb.mxu0 %v6647_v62  ;;  %5370 = vmatpush.bf16.msra.mxu1 %v6655_v32  ;;  %v10274_v12 = vmul.f32 0.015625, %v10189_v52  ;;  %v6695_v62 = vld [vmem:[%s10540_s5 + $0x288] sm:$0xff]  ;;  %v6732_v52 = vld [vmem:[%s10540_s5 + $0x3b0] sm:$0xff] }
 0x3c7   : > { %v6703_v32 = vld [vmem:[%s10540_s5 + $0x2c8] sm:$0xff] }
 0x3c8   : > { %v3966_v9 = vperm.slane %v10274_v12, 0  ;;  %v3967_v43 = vperm.slane %v10274_v12, 1  ;;  %v3968_v45 = vperm.slane %v10274_v12, 2  ;;  %v3969_v4 = vperm.slane %v10274_v12, 3 }
 0x3c9   : > { %5381 = vmatpush.bf16.msra.mxu2 %v6665_v35  ;;  %5394 = vmatpush.bf16.msra.mxu3 %v6673_v49  ;;  %v6694_v35 = vld [vmem:[%s10540_s5 + $0x280] sm:$0xff] }
 0x3ca   : > { %5358 = vmatpush.bf16.msrb.mxu0 %v6646_v53  ;;  %5371 = vmatpush.bf16.msra.mxu1 %v6654_v26  ;;  %v4006_v25 = vpack.c.bf16 %v3966_v9, %v3966_v9  ;;  %v4007_v40 = vpack.c.bf16 %v3967_v43, %v3967_v43  ;;  %v6702_v49 = vld [vmem:[%s10540_s5 + $0x2c0] sm:$0xff]  ;;  %v6741_v53 = vld [vmem:[%s10540_s5 + $0x3f8] sm:$0xff] }
 0x3cb   : > { %v6714_v26 = vld [vmem:[%s10540_s5 + $0x320] sm:$0xff] }
 0x3cc   : > { %v6746_v9 = vld [vmem:[%s10540_s5 + $0x420] sm:$0xff] }
 0x3cd   : > { %5382 = vmatpush.bf16.msra.mxu2 %v6664_v21  ;;  %5395 = vmatpush.bf16.msra.mxu3 %v6672_v47  ;;  %v6721_v21 = vld [vmem:[%s10540_s5 + $0x358] sm:$0xff]  ;;  %v6731_v47 = vld [vmem:[%s10540_s5 + $0x3a8] sm:$0xff]  ;;  %v6754_v43 = vld [vmem:[%s10540_s5 + $0x460] sm:$0xff] }
 0x3ce   : > { %5403 = vmatpush.bf16.msra.mxu0 %v6685_v51  ;;  %5416 = vmatpush.bf16.msrb.mxu1 %v6693_v19  ;;  %v4008_v51 = vpack.c.bf16 %v3968_v45, %v3968_v45  ;;  %v4009_v19 = vpack.c.bf16 %v3969_v4, %v3969_v4  ;;  %v6743_v45 = vld [vmem:[%s10540_s5 + $0x408] sm:$0xff] }
 0x3cf   : > { %5359 = vmatmul.bf16.vlgmr.msrb.gmra.mxu0 %v4002_v24  ;;  %5372 = vmatmul.bf16.vlgmr.msra.gmra.mxu1 %v4003_v13  ;;  %v6720_v24 = vld [vmem:[%s10540_s5 + $0x350] sm:$0xff]  ;;  %v6730_v13 = vld [vmem:[%s10540_s5 + $0x3a0] sm:$0xff]  ;;  %v6751_v4 = vld [vmem:[%s10540_s5 + $0x448] sm:$0xff] }
 0x3d1   : > { %5383 = vmatpush.bf16.msra.mxu2 %v6663_v27  ;;  %5396 = vmatpush.bf16.msra.mxu3 %v6671_v29  ;;  %v6738_v27 = vld [vmem:[%s10540_s5 + $0x3e0] sm:$0xff]  ;;  %v6711_v29 = vld [vmem:[%s10540_s5 + $0x308] sm:$0xff] }
 0x3d2   : > { %5404 = vmatpush.bf16.msra.mxu0 %v6684_v17  ;;  %5417 = vmatpush.bf16.msrb.mxu1 %v6692_v8  ;;  %v6739_v17 = vld [vmem:[%s10540_s5 + $0x3e8] sm:$0xff]  ;;  %v6712_v8 = vld [vmem:[%s10540_s5 + $0x310] sm:$0xff] }
 0x3d5   : > { %5384 = vmatpush.bf16.msra.mxu2 %v6662_v37  ;;  %5397 = vmatpush.bf16.msra.mxu3 %v6670_v36  ;;  %v6737_v37 = vld [vmem:[%s10540_s5 + $0x3d8] sm:$0xff]  ;;  %v6710_v36 = vld [vmem:[%s10540_s5 + $0x300] sm:$0xff] }
 0x3d6   : > { %5405 = vmatpush.bf16.msra.mxu0 %v6683_v5  ;;  %5418 = vmatpush.bf16.msrb.mxu1 %v6691_v18  ;;  %v6719_v5 = vld [vmem:[%s10540_s5 + $0x348] sm:$0xff]  ;;  %v6729_v18 = vld [vmem:[%s10540_s5 + $0x398] sm:$0xff] }
 0x3d8   : > { %5385 = vmatmul.bf16.vlgmr.msra.gmra.mxu2 %v4004_v55  ;;  %5398 = vmatmul.bf16.vlgmr.msra.gmra.mxu3 %v4005_v33  ;;  %v3971_v55 = vperm.slane %v10274_v12, 5  ;;  %v10898_v33 = vmov 0.0  }
 0x3d9   : > { %5429 = vmatpush.bf16.msrb.mxu2 %v6701_v7  ;;  %5442 = vmatpush.bf16.msrb.mxu3 %v6709_v57  ;;  %v6718_v7 = vld [vmem:[%s10540_s5 + $0x340] sm:$0xff]  ;;  %v6749_v57 = vld [vmem:[%s10540_s5 + $0x438] sm:$0xff]  ;;  %315 = vst.msk [vmem:[#allocation2 + $0x10] sm:$0xf] %vm10395_vm14, %v10898_v33 }
 0x3da   : > { %5406 = vmatpush.bf16.msra.mxu0 %v6682_v16  ;;  %5419 = vmatpush.bf16.msrb.mxu1 %v6690_v48  ;;  %v3970_v48 = vperm.slane %v10274_v12, 4 }
 0x3dd   : > { %5430 = vmatpush.bf16.msrb.mxu2 %v6700_v50  ;;  %5443 = vmatpush.bf16.msrb.mxu3 %v6708_v34  ;;  %v6728_v50 = vld [vmem:[%s10540_s5 + $0x390] sm:$0xff] }
 0x3de   : > { %5407 = vmatpush.bf16.msra.mxu0 %v6681_v42  ;;  %5420 = vmatpush.bf16.msrb.mxu1 %v6689_v3  ;;  %v6736_v34 = vld [vmem:[%s10540_s5 + $0x3d0] sm:$0xff] }
 0x3df   : > { %v6748_v42 = vld [vmem:[%s10540_s5 + $0x430] sm:$0xff] }
 0x3e0   : > { %v6756_v3 = vld [vmem:[%s10540_s5 + $0x470] sm:$0xff] }
 0x3e1   : > { %5431 = vmatpush.bf16.msrb.mxu2 %v6699_v44  ;;  %5444 = vmatpush.bf16.msrb.mxu3 %v6707_v59  ;;  %v4010_v44 = vpack.c.bf16 %v3970_v48, %v3970_v48  ;;  %v4011_v59 = vpack.c.bf16 %v3971_v55, %v3971_v55 }
 0x3e2   : > { %5408 = vmatpush.bf16.msra.mxu0 %v6680_v46  ;;  %5421 = vmatpush.bf16.msrb.mxu1 %v6688_v14  ;;  %v6727_v46 = vld [vmem:[%s10540_s5 + $0x388] sm:$0xff] }
 0x3e3   : > { %v6735_v14 = vld [vmem:[%s10540_s5 + $0x3c8] sm:$0xff] }
 0x3e5   : > { %5432 = vmatpush.bf16.msrb.mxu2 %v6698_v54  ;;  %5445 = vmatpush.bf16.msrb.mxu3 %v6706_v22  ;;  %v6747_v54 = vld [vmem:[%s10540_s5 + $0x428] sm:$0xff] }
 0x3e6   : > { %5409 = vmatpush.bf16.msra.mxu0 %v6679_v58  ;;  %5422 = vmatpush.bf16.msrb.mxu1 %v6687_v0  ;;  %v6755_v22 = vld [vmem:[%s10540_s5 + $0x468] sm:$0xff]  ;;  %v6726_v58 = vld [vmem:[%s10540_s5 + $0x380] sm:$0xff] }
 0x3e7   : > { %v6734_v0 = vld [vmem:[%s10540_s5 + $0x3c0] sm:$0xff] }
 0x3e9   : > { %5433 = vmatpush.bf16.msrb.mxu2 %v6697_v28  ;;  %5446 = vmatpush.bf16.msrb.mxu3 %v6705_v31  ;;  %v3972_v28 = vperm.slane %v10274_v12, 6  ;;  %v3973_v31 = vperm.slane %v10274_v12, 7 }
 0x3ea   : > { %5410 = vmatpush.bf16.msra.mxu0 %v6678_v39  ;;  %5423 = vmatpush.bf16.msrb.mxu1 %v6686_v63  ;;  %v6765_v39 = vld [vmem:[%s10540_s5 + $0x4b8] sm:$0xff] }
 0x3eb   : > { %v6773_v63 = vld [vmem:[%s10540_s5 + $0x4f8] sm:$0xff]  ;;  %v4012_v12 = vpack.c.bf16 %v3972_v28, %v3972_v28 }
 0x3ed   : > { %5434 = vmatpush.bf16.msrb.mxu2 %v6696_v38  ;;  %5447 = vmatpush.bf16.msrb.mxu3 %v6704_v41  ;;  %v6772_v38 = vld [vmem:[%s10540_s5 + $0x4f0] sm:$0xff]  ;;  %v6745_v41 = vld [vmem:[%s10540_s5 + $0x418] sm:$0xff] }
 0x3ee   : > { %5455 = vmatpush.bf16.msrb.mxu0 %v6717_v10  ;;  %5468 = vmatpush.bf16.msra.mxu1 %v6725_v56  ;;  %v4013_v10 = vpack.c.bf16 %v3973_v31, %v3973_v31  ;;  %v6764_v56 = vld [vmem:[%s10540_s5 + $0x4b0] sm:$0xff] }
 0x3ef   : > { %5411 = vmatmul.bf16.vlgmr.msra.gmra.mxu0 %v4006_v25  ;;  %5424 = vmatmul.bf16.vlgmr.msrb.gmra.mxu1 %v4007_v40  ;;  %v6753_v25 = vld [vmem:[%s10540_s5 + $0x458] sm:$0xff]  ;;  %v6763_v40 = vld [vmem:[%s10540_s5 + $0x4a8] sm:$0xff] }
 0x3f1   : > { %5435 = vmatpush.bf16.msrb.mxu2 %v6695_v62  ;;  %5448 = vmatpush.bf16.msrb.mxu3 %v6703_v32  ;;  %v6752_v62 = vld [vmem:[%s10540_s5 + $0x450] sm:$0xff] }
 0x3f2   : > { %5456 = vmatpush.bf16.msrb.mxu0 %v6716_v61  ;;  %5469 = vmatpush.bf16.msra.mxu1 %v6724_v30  ;;  %v6771_v61 = vld [vmem:[%s10540_s5 + $0x4e8] sm:$0xff]  ;;  %v6744_v30 = vld [vmem:[%s10540_s5 + $0x410] sm:$0xff] }
 0x3f5   : > { %5436 = vmatpush.bf16.msrb.mxu2 %v6694_v35  ;;  %5449 = vmatpush.bf16.msrb.mxu3 %v6702_v49 }
 0x3f6   : > { %5457 = vmatpush.bf16.msrb.mxu0 %v6715_v6  ;;  %5470 = vmatpush.bf16.msra.mxu1 %v6723_v15  ;;  %v6762_v6 = vld [vmem:[%s10540_s5 + $0x4a0] sm:$0xff] }
 0x3f7   : > { %v6770_v15 = vld [vmem:[%s10540_s5 + $0x4e0] sm:$0xff] }
 0x3f8   : > { %5437 = vmatmul.bf16.vlgmr.msrb.gmra.mxu2 %v4008_v51  ;;  %5450 = vmatmul.bf16.vlgmr.msrb.gmra.mxu3 %v4009_v19 }
 0x3f9   : > { %5481 = vmatpush.bf16.msra.mxu2 %v6733_v20  ;;  %5494 = vmatpush.bf16.msra.mxu3 %v6741_v53  ;;  %v6761_v20 = vld [vmem:[%s10540_s5 + $0x498] sm:$0xff] }
 0x3fa   : > { %5458 = vmatpush.bf16.msrb.mxu0 %v6714_v26  ;;  %5471 = vmatpush.bf16.msra.mxu1 %v6722_v60  ;;  %v6769_v53 = vld [vmem:[%s10540_s5 + $0x4d8] sm:$0xff]  ;;  %v6742_v26 = vld [vmem:[%s10540_s5 + $0x400] sm:$0xff] }
 0x3fb   : > { %v6750_v60 = vld [vmem:[%s10540_s5 + $0x440] sm:$0xff] }
 0x3fd   : > { %5482 = vmatpush.bf16.msra.mxu2 %v6732_v52  ;;  %5495 = vmatpush.bf16.msra.mxu3 %v6740_v1 }
 0x3fe   : > { %5459 = vmatpush.bf16.msrb.mxu0 %v6713_v23  ;;  %5472 = vmatpush.bf16.msra.mxu1 %v6721_v21  ;;  %v3467_v21 = vld [vmem:[#allocation2 + $0x10] sm:$0xf] }
 0x401   : > { %5483 = vmatpush.bf16.msra.mxu2 %v6731_v47  ;;  %5496 = vmatpush.bf16.msra.mxu3 %v6739_v17  ;;  %v6760_v47 = vld [vmem:[%s10540_s5 + $0x490] sm:$0xff] }
 0x402   : > { %5460 = vmatpush.bf16.msrb.mxu0 %v6712_v8  ;;  %5473 = vmatpush.bf16.msra.mxu1 %v6720_v24  ;;  %v6768_v17 = vld [vmem:[%s10540_s5 + $0x4d0] sm:$0xff] }
 0x405   : > { %5484 = vmatpush.bf16.msra.mxu2 %v6730_v13  ;;  %5497 = vmatpush.bf16.msra.mxu3 %v6738_v27  ;;  %v6759_v27 = vld [vmem:[%s10540_s5 + $0x488] sm:$0xff] }
 0x406   : > { %5461 = vmatpush.bf16.msrb.mxu0 %v6711_v29  ;;  %5474 = vmatpush.bf16.msra.mxu1 %v6719_v5  ;;  %v6767_v29 = vld [vmem:[%s10540_s5 + $0x4c8] sm:$0xff]  ;;  %v6758_v5 = vld [vmem:[%s10540_s5 + $0x480] sm:$0xff] }
 0x409   : > { %5485 = vmatpush.bf16.msra.mxu2 %v6729_v18  ;;  %5498 = vmatpush.bf16.msra.mxu3 %v6737_v37  ;;  %v6766_v18 = vld [vmem:[%s10540_s5 + $0x4c0] sm:$0xff] }
 0x40a   : > { %5462 = vmatpush.bf16.msrb.mxu0 %v6710_v36  ;;  %5475 = vmatpush.bf16.msra.mxu1 %v6718_v7  ;;  %v4338_v7 = vld [vmem:[%s10541_s6] sm:$0x1] }
 0x40d   : > { %5486 = vmatpush.bf16.msra.mxu2 %v6728_v50  ;;  %5499 = vmatpush.bf16.msra.mxu3 %v6736_v34  ;;  %v3829_v32 = vpop.f32.mrf.mxu1  ;;  %v3809_v49 = vpop.f32.mrf.mxu0 }
 0x40e   : > { %5507 = vmatpush.bf16.msra.mxu0 %v6749_v57  ;;  %5520 = vmatpush.bf16.msrb.mxu1 %v6757_v2  ;;  %v3906_v35 = vrot.slane %v3829_v32, 7 }
 0x40f   : > { %5463 = vmatmul.bf16.vlgmr.msrb.gmra.mxu0 %v4010_v44  ;;  %5476 = vmatmul.bf16.vlgmr.msra.gmra.mxu1 %v4011_v59 }
 0x410   : > { %v3930_v23 = vsel %vm3909_vm6, %v3809_v49, %v3906_v35 }
 0x411   : > { %5487 = vmatpush.bf16.msra.mxu2 %v6727_v46  ;;  %5500 = vmatpush.bf16.msra.mxu3 %v6735_v14 }
 0x412   : > { %5508 = vmatpush.bf16.msra.mxu0 %v6748_v42  ;;  %5521 = vmatpush.bf16.msrb.mxu1 %v6756_v3 }
 0x415   : > { %5488 = vmatpush.bf16.msra.mxu2 %v6726_v58  ;;  %5501 = vmatpush.bf16.msra.mxu3 %v6734_v0 }
 0x416   : > { %5509 = vmatpush.bf16.msra.mxu0 %v6747_v54  ;;  %5522 = vmatpush.bf16.msrb.mxu1 %v6755_v22 }
 0x418   : > { %5489 = vmatmul.bf16.vlgmr.msra.gmra.mxu2 %v4012_v12  ;;  %5502 = vmatmul.bf16.vlgmr.msra.gmra.mxu3 %v4013_v10 }
 0x419   : > { %5533 = vmatpush.bf16.msrb.mxu2 %v6765_v39  ;;  %5546 = vmatpush.bf16.msrb.mxu3 %v6773_v63 }
 0x41a   : > { %5510 = vmatpush.bf16.msra.mxu0 %v6746_v9  ;;  %5523 = vmatpush.bf16.msrb.mxu1 %v6754_v43 }
 0x41b   : > { %v3849_v51 = vpop.f32.mrf.mxu2  ;;  %v3869_v19 = vpop.f32.mrf.mxu3 }
 0x41c   : > { %v3907_v52 = vrot.slane %v3849_v51, 6  ;;  %v3908_v1 = vrot.slane %v3869_v19, 5 }
 0x41d   : > { %5534 = vmatpush.bf16.msrb.mxu2 %v6764_v56  ;;  %5547 = vmatpush.bf16.msrb.mxu3 %v6772_v38 }
 0x41e   : > { %5511 = vmatpush.bf16.msra.mxu0 %v6745_v41  ;;  %5524 = vmatpush.bf16.msrb.mxu1 %v6753_v25  ;;  %v3931_v8 = vsel %vm3911_vm7, %v3907_v52, %v3908_v1 }
 0x41f   : > { %v3932_v24 = vsel %vm3913_vm8, %v3930_v23, %v3931_v8 }
 0x420   : > { %v3938_v13 = vadd.f32 %v3932_v24, %v3467_v21 }
 0x421   : > { %5535 = vmatpush.bf16.msrb.mxu2 %v6763_v40  ;;  %5548 = vmatpush.bf16.msrb.mxu3 %v6771_v61 }
 0x422   : > { %5512 = vmatpush.bf16.msra.mxu0 %v6744_v30  ;;  %5525 = vmatpush.bf16.msrb.mxu1 %v6752_v62  ;;  %3945 = vst.msk [vmem:[#allocation2 + $0x10] sm:$0xf] %vm10395_vm14, %v3938_v13 }
 0x425   : > { %5536 = vmatpush.bf16.msrb.mxu2 %v6762_v6  ;;  %5549 = vmatpush.bf16.msrb.mxu3 %v6770_v15 }
 0x426   : > { %5513 = vmatpush.bf16.msra.mxu0 %v6743_v45  ;;  %5526 = vmatpush.bf16.msrb.mxu1 %v6751_v4 }
 0x429   : > { %5537 = vmatpush.bf16.msrb.mxu2 %v6761_v20  ;;  %5550 = vmatpush.bf16.msrb.mxu3 %v6769_v53  ;;  %v3951_v37 = vld [vmem:[#allocation2 + $0x10] sm:$0xf] }
 0x42a   : > { %5514 = vmatpush.bf16.msra.mxu0 %v6742_v26  ;;  %5527 = vmatpush.bf16.msrb.mxu1 %v6750_v60  ;;  %v3954_v36 = vmul.f32 0.015625, %v3951_v37 }
 0x42c   : > { %v5308_v57 = vpop.f32.mrf.mxu0  ;;  %v5321_v2 = vpop.f32.mrf.mxu1  ;;  %v3974_v11 = vperm.slane %v3954_v36, 0  ;;  %v3976_v16 = vperm.slane %v3954_v36, 2  ;;  %v3975_v48 = vperm.slane %v3954_v36, 1  ;;  %v3977_v55 = vperm.slane %v3954_v36, 3 }
 0x42d   : > { %5538 = vmatpush.bf16.msrb.mxu2 %v6760_v47  ;;  %5551 = vmatpush.bf16.msrb.mxu3 %v6768_v17  ;;  %v5309_v33 = vadd.f32 %v5308_v57, %v4338_v7 }
 0x42e   : > { %v4014_v50 = vpack.c.bf16 %v3974_v11, %v3974_v11  ;;  %v4016_v34 = vpack.c.bf16 %v3976_v16, %v3976_v16  ;;  %v4015_v42 = vpack.c.bf16 %v3975_v48, %v3975_v48  ;;  %v4017_v3 = vpack.c.bf16 %v3977_v55, %v3977_v55 }
 0x42f   : > { %v5322_v44 = vadd.f32 %v5321_v2, %v5309_v33 }
 0x430   : > { %5515 = vmatmul.bf16.vlgmr.msra.gmra.mxu0 %v4014_v50  ;;  %5528 = vmatmul.bf16.vlgmr.msrb.gmra.mxu1 %v4015_v42 }
 0x431   : > { %5539 = vmatpush.bf16.msrb.mxu2 %v6759_v27  ;;  %5552 = vmatpush.bf16.msrb.mxu3 %v6767_v29 }
 0x434   : > { %v5310_v59 = vpop.f32.mrf.mxu0  ;;  %v5323_v46 = vpop.f32.mrf.mxu1 }
 0x435   : > { %5540 = vmatpush.bf16.msrb.mxu2 %v6758_v5  ;;  %5553 = vmatpush.bf16.msrb.mxu3 %v6766_v18 }
 0x438   : > { %5541 = vmatmul.bf16.vlgmr.msrb.gmra.mxu2 %v4016_v34  ;;  %5554 = vmatmul.bf16.vlgmr.msrb.gmra.mxu3 %v4017_v3 }
 0x43b   : > { %v5334_v14 = vpop.f32.mrf.mxu2  ;;  %v5347_v54 = vpop.f32.mrf.mxu3 }
 0x43c   : > { %v5335_v22 = vadd.f32 %v5334_v14, %v5322_v44 }
 0x43e   : > { %v5348_v58 = vadd.f32 %v5347_v54, %v5335_v22 }
 0x443   : > { %v5336_v0 = vpop.f32.mrf.mxu2  ;;  %v5349_v28 = vpop.f32.mrf.mxu3 }
 0x44c   : > { %v5360_v31 = vpop.f32.mrf.mxu0  ;;  %v5373_v39 = vpop.f32.mrf.mxu1 }
 0x44d   : > { %v5361_v63 = vadd.f32 %v5360_v31, %v5348_v58 }
 0x44f   : > { %v5374_v9 = vadd.f32 %v5373_v39, %v5361_v63 }
 0x454   : > { %v5362_v43 = vpop.f32.mrf.mxu0  ;;  %v5375_v12 = vpop.f32.mrf.mxu1 }
 0x45b   : > { %v5386_v10 = vpop.f32.mrf.mxu2  ;;  %v5399_v56 = vpop.f32.mrf.mxu3 }
 0x45c   : > { %v5387_v38 = vadd.f32 %v5386_v10, %v5374_v9 }
 0x45e   : > { %v5400_v41 = vadd.f32 %v5399_v56, %v5387_v38 }
 0x463   : > { %v5388_v25 = vpop.f32.mrf.mxu2  ;;  %v5401_v40 = vpop.f32.mrf.mxu3 }
 0x46c   : > { %v5412_v61 = vpop.f32.mrf.mxu0  ;;  %v5425_v30 = vpop.f32.mrf.mxu1 }
 0x46d   : > { %v5413_v51 = vadd.f32 %v5412_v61, %v5400_v41 }
 0x46f   : > { %v5426_v19 = vadd.f32 %v5425_v30, %v5413_v51 }
 0x474   : > { %v5414_v62 = vpop.f32.mrf.mxu0  ;;  %v5427_v32 = vpop.f32.mrf.mxu1 }
 0x47b   : > { %v5438_v6 = vpop.f32.mrf.mxu2  ;;  %v5451_v15 = vpop.f32.mrf.mxu3 }
 0x47c   : > { %v5439_v23 = vadd.f32 %v5438_v6, %v5426_v19 }
 0x47e   : > { %v5452_v21 = vadd.f32 %v5451_v15, %v5439_v23 }
 0x483   : > { %v5440_v45 = vpop.f32.mrf.mxu2  ;;  %v5453_v4 = vpop.f32.mrf.mxu3 }
 0x48c   : > { %v5464_v35 = vpop.f32.mrf.mxu0  ;;  %v5477_v49 = vpop.f32.mrf.mxu1 }
 0x48d   : > { %v5465_v47 = vadd.f32 %v5464_v35, %v5452_v21 }
 0x48f   : > { %v5478_v17 = vadd.f32 %v5477_v49, %v5465_v47 }
 0x494   : > { %v5466_v20 = vpop.f32.mrf.mxu0  ;;  %v5479_v53 = vpop.f32.mrf.mxu1 }
 0x49b   : > { %v5490_v26 = vpop.f32.mrf.mxu2  ;;  %v5503_v60 = vpop.f32.mrf.mxu3 }
 0x49c   : > { %v5491_v8 = vadd.f32 %v5490_v26, %v5478_v17 }
 0x49e   : > { %v5504_v24 = vadd.f32 %v5503_v60, %v5491_v8 }
 0x4a3   : > { %v5492_v52 = vpop.f32.mrf.mxu2  ;;  %v5505_v1 = vpop.f32.mrf.mxu3 }
 0x4ad   : > { %v5516_v13 = vpop.f32.mrf.mxu0  ;;  %v5529_v29 = vpop.f32.mrf.mxu1 }
 0x4ae   : > { %v5517_v27 = vadd.f32 %v5516_v13, %v5504_v24 }
 0x4b0   : > { %v5530_v5 = vadd.f32 %v5529_v29, %v5517_v27 }
 0x4b5   : > { %v5518_v7 = vpop.f32.mrf.mxu0  ;;  %v5531_v2 = vpop.f32.mrf.mxu1 }
 0x4bb   : > { %v5542_v18 = vpop.f32.mrf.mxu2  ;;  %v5555_v36 = vpop.f32.mrf.mxu3 }
 0x4bc   : > { %v5543_v37 = vadd.f32 %v5542_v18, %v5530_v5 }
 0x4be   : > { %v5556_v57 = vadd.f32 %v5555_v36, %v5543_v37 }
 0x4c0   : > { %5559 = vst [vmem:[%s302_s17] sm:$0x1] %v5556_v57 }
 0x4c3   : > { %v5544_v11 = vpop.f32.mrf.mxu2  ;;  %v5557_v16 = vpop.f32.mrf.mxu3 }
 0x4c4 PF: > { %s17_s26 = sadd.s32 1, %s7498_s26   ;;  %s10899_s24 = smov %s7494_s25 }
 0x4c5   : > { %p14_p5 = scmp.ge.s32.totalorder %s17_s26, 4   ;;  %s10900_s25 = smov %s10902_s27 }
 0x4c7   :  { %16 = sbr.rel (!%p14_p5) target bundleno = 2 (0x2), region = 86 }

</bundles_post_ra>
